<compile_context>
chip_gen: v7x
topology: tpu7x:2x2x1
jax: 0.10.0
libtpu: 0.0.40
codegen_flags: <defaults>
</compile_context>

<pallas_src>
import functools
import math
from types import SimpleNamespace

import jax
import jax.numpy as jnp
from jax.experimental import pallas as pl
from jax.experimental.pallas import tpu as pltpu


# ----------------------------------------------------------------------------
# small helpers
# ----------------------------------------------------------------------------
def _round_up(v, m):
    return ((v + m - 1) // m) * m


def _dot(a_bf16, b_bf16):
    # MXU matmul (bf16 operands), f32 accumulation.
    return jnp.dot(a_bf16, b_bf16, preferred_element_type=jnp.float32)


def _sigmoid(t):
    return 1.0 / (1.0 + jnp.exp(-t))


def _silu(t):
    return t * _sigmoid(t)


# ----------------------------------------------------------------------------
# Fused kernel: one grid step per EnTransformer layer.
#   step 0      : embedding lookup + input projection (pl.when)
#   every step  : one E(n) layer; h/x live in VMEM scratch
#   last step   : ca-row select + output proj + classifier head (pl.when)
# ----------------------------------------------------------------------------
def _fused_kernel(onehot_ref, table_ref, w_in_ref, b_in_ref, x_in_ref,
                  grow_ref, gcol_ref, scat_ref, sel_ref,
                  w1a_ref, w1b_ref, w1c_ref, b1_ref, w2_ref, b2_ref,
                  wa_ref, ba_ref, wc1_ref, bc1_ref, wc2r_ref, bc2_ref,
                  wn1a_ref, wn1b_ref, bn1_ref, wn2_ref, bn2_ref,
                  weo_ref, beo_ref, wm1_ref, bm1_ref, wm2_ref, bm2_ref,
                  out_ref, h_s, x_s):
    layer = pl.program_id(0)
    n_layers = pl.num_programs(0)

    # ---- first grid step: embedding lookup + EnTransformer input proj ----
    @pl.when(layer == 0)
    def _init():
        emb = _dot(onehot_ref[...], table_ref[...])                  # [N, IN]
        h_s[...] = _dot(emb.astype(jnp.bfloat16), w_in_ref[...]) + b_in_ref[...]
        x_s[...] = x_in_ref[...]

    grow = grow_ref[...]                                             # [E, N] bf16
    gcol = gcol_ref[...]                                             # [E, N] bf16
    scat = scat_ref[...]                                             # [N, E] bf16

    h = h_s[...]                                                     # [N, H]  f32
    x = x_s[...]                                                     # [N, XP] f32
    h_bf = h.astype(jnp.bfloat16)                                    # hoisted cast

    # ---- per-edge gathers (one-hot matmuls on the MXU) ----
    h_i = _dot(grow, h_bf)                                           # [E, H]
    h_j = _dot(gcol, h_bf)                                           # [E, H]
    # coordinates: hi/lo bf16 split -> exact one-hot gather, near-f32 values
    x_hi = x.astype(jnp.bfloat16)
    x_lo = (x - x_hi.astype(jnp.float32)).astype(jnp.bfloat16)
    x_i = _dot(grow, x_hi) + _dot(grow, x_lo)                        # [E, XP]
    x_j = _dot(gcol, x_hi) + _dot(gcol, x_lo)
    rel = x_i - x_j
    d2 = jnp.sum(rel * rel, axis=-1, keepdims=True)                  # [E, 1]

    # ---- edge MLP: two accumulating K=H matmuls (no [E, 2H] concat) ----
    pre = (_dot(h_i.astype(jnp.bfloat16), w1a_ref[0])
           + _dot(h_j.astype(jnp.bfloat16), w1b_ref[0])
           + d2 * w1c_ref[0] + b1_ref[0])
    m = _silu(pre)
    m = _silu(_dot(m.astype(jnp.bfloat16), w2_ref[0]) + b2_ref[0])   # [E, H]
    m_bf = m.astype(jnp.bfloat16)                                    # hoisted cast

    # ---- multi-head sigmoid gate (head-expanded weights, [H, H]) ----
    gate = _sigmoid(_dot(m_bf, wa_ref[0]) + ba_ref[0])
    m_att_bf = (m * gate).astype(jnp.bfloat16)

    # ---- coordinate update; 1-wide projection on VPU + lane reduce ----
    ch = _silu(_dot(m_bf, wc1_ref[0]) + bc1_ref[0])                  # [E, H]
    c = jnp.sum(ch * wc2r_ref[0], axis=-1, keepdims=True) + bc2_ref[0]
    upd = rel * c                                                    # [E, XP]
    upd_hi = upd.astype(jnp.bfloat16)
    upd_lo = (upd - upd_hi.astype(jnp.float32)).astype(jnp.bfloat16)
    x_s[...] = x + _dot(scat, upd_hi) + _dot(scat, upd_lo)

    # ---- residual node update: two accumulating K=H matmuls ----
    agg = _dot(scat, m_att_bf)                                       # [N, H]
    nh = _silu(_dot(h_bf, wn1a_ref[0])
               + _dot(agg.astype(jnp.bfloat16), wn1b_ref[0]) + bn1_ref[0])
    h_new = h + _dot(nh.astype(jnp.bfloat16), wn2_ref[0]) + bn2_ref[0]
    h_s[...] = h_new

    # ---- last grid step: ca select -> output proj -> classifier head ----
    @pl.when(layer == n_layers - 1)
    def _head():
        h_sel = _dot(sel_ref[...], h_new.astype(jnp.bfloat16))       # [S, H]
        he = _dot(h_sel.astype(jnp.bfloat16), weo_ref[...]) + beo_ref[...]
        z = jnp.maximum(_dot(he.astype(jnp.bfloat16), wm1_ref[...]) + bm1_ref[...],
                        0.0)
        # nn.Dropout(p=0.1) is identity at inference time.
        out_ref[...] = _dot(z.astype(jnp.bfloat16), wm2_ref[...]) + bm2_ref[...]


# ----------------------------------------------------------------------------
# Parameter init (PyTorch-Linear-style uniform(+-1/sqrt(fan_in))).
# Per-layer weights stacked along a leading [n_layers, ...] axis; matmul
# weights cast to bf16, biases / VPU-path vectors kept f32.
# ----------------------------------------------------------------------------
def init_model(key, input_nf=9, output_nf=20, hidden_nf=128, n_layers=4,
               n_heads=4):
    assert hidden_nf % n_heads == 0
    H = hidden_nf
    hd = H // n_heads
    in_pad = _round_up(input_nf, 16)
    out_pad = _round_up(output_nf, 128)
    cfg = dict(input_nf=input_nf, in_pad=in_pad, output_nf=output_nf,
               hidden_nf=H, n_layers=n_layers, n_heads=n_heads,
               out_pad=out_pad, x_pad=8)

    keys = iter(jax.random.split(key, 16 + 16 * n_layers))
    bf = lambda a: a.astype(jnp.bfloat16)

    def lin(fan_in, fan_out):
        bound = 1.0 / math.sqrt(fan_in)
        w = jax.random.uniform(next(keys), (fan_in, fan_out), jnp.float32,
                               -bound, bound)
        b = jax.random.uniform(next(keys), (1, fan_out), jnp.float32,
                               -bound, bound)
        return w, b

    # nn.Embedding(input_nf, input_nf), zero-padded to the 16-aligned width.
    table = jax.random.normal(next(keys), (input_nf, input_nf), jnp.float32)
    table_p = jnp.zeros((in_pad, in_pad), jnp.float32).at[:input_nf, :input_nf].set(table)
    w_in, b_in = lin(input_nf, H)
    w_in_p = jnp.zeros((in_pad, H), jnp.float32).at[:input_nf].set(w_in)

    names = ('w1a', 'w1b', 'w1c', 'b1', 'w2', 'b2', 'wa', 'ba',
             'wc1', 'bc1', 'wc2r', 'bc2', 'wn1a', 'wn1b', 'bn1', 'wn2', 'bn2')
    acc = {k: [] for k in names}
    for _ in range(n_layers):
        w1, b1 = lin(2 * H + 1, H)          # edge MLP layer 1 on [h_i|h_j|d2]
        w2, b2 = lin(H, H)                  # edge MLP layer 2
        wa, ba = lin(H, n_heads)            # multi-head sigmoid gate
        wc1, bc1 = lin(H, H)                # coord MLP layer 1
        wc2, bc2 = lin(H, 1)                # coord MLP layer 2 (scalar out)
        wn1, bn1 = lin(2 * H, H)            # node MLP layer 1 on [h|agg]
        wn2, bn2 = lin(H, H)                # node MLP layer 2
        acc['w1a'].append(w1[:H]); acc['w1b'].append(w1[H:2 * H])
        acc['w1c'].append(w1[2 * H:]); acc['b1'].append(b1)
        acc['w2'].append(w2); acc['b2'].append(b2)
        # head-expand gate weights: expanded column j == original column j//hd
        acc['wa'].append(jnp.repeat(wa, hd, axis=1))        # [H, H]
        acc['ba'].append(jnp.repeat(ba, hd, axis=1))        # [1, H]
        acc['wc1'].append(wc1); acc['bc1'].append(bc1)
        acc['wc2r'].append(wc2.T)                           # [1, H] row (VPU path)
        acc['bc2'].append(bc2)                              # [1, 1]
        acc['wn1a'].append(wn1[:H]); acc['wn1b'].append(wn1[H:])
        acc['bn1'].append(bn1)
        acc['wn2'].append(wn2); acc['bn2'].append(bn2)
    st = lambda k: jnp.stack(acc[k], axis=0)

    weo, beo = lin(H, H)                    # EnTransformer output projection
    wm1, bm1 = lin(H, 2 * H)                # head Linear 1
    wm2, bm2 = lin(2 * H, output_nf)        # head Linear 2
    wm2_p = jnp.zeros((2 * H, out_pad), jnp.float32).at[:, :output_nf].set(wm2)
    bm2_p = jnp.zeros((1, out_pad), jnp.float32).at[:, :output_nf].set(bm2)

    params = dict(
        table=bf(table_p), w_in=bf(w_in_p), b_in=b_in,
        w1a=bf(st('w1a')), w1b=bf(st('w1b')), w1c=st('w1c'), b1=st('b1'),
        w2=bf(st('w2')), b2=st('b2'),
        wa=bf(st('wa')), ba=st('ba'),
        wc1=bf(st('wc1')), bc1=st('bc1'), wc2r=st('wc2r'), bc2=st('bc2'),
        wn1a=bf(st('wn1a')), wn1b=bf(st('wn1b')), bn1=st('bn1'),
        wn2=bf(st('wn2')), bn2=st('bn2'),
        weo=bf(weo), beo=beo, wm1=bf(wm1), bm1=bm1,
        wm2=bf(wm2_p), bm2=bm2_p)
    return cfg, params


# ----------------------------------------------------------------------------
# Forward: one-hot / padding glue in plain JAX, hot path = one pallas_call.
# ----------------------------------------------------------------------------
def _forward_core(cfg, params, h_idx, x, edges, ca_idx):
    H = cfg['hidden_nf']
    L = cfg['n_layers']
    INP = cfg['in_pad']
    XP = cfg['x_pad']
    OUTP = cfg['out_pad']

    n = h_idx.shape[0]
    e = edges.shape[1]
    s = ca_idx.shape[0]
    n_pad = _round_up(max(n, 8), 128)
    e_pad = _round_up(max(e, 8), 128)
    s_pad = _round_up(max(s, 1), 8)

    def pad_idx(idx, length, sentinel):
        idx = idx.astype(jnp.int32)
        return jnp.concatenate(
            [idx, jnp.full((length - idx.shape[0],), sentinel, jnp.int32)])

    # nn.Embedding lookup as a one-hot matmul; padded rows are all-zero.
    onehot = jax.nn.one_hot(pad_idx(h_idx, n_pad, INP), INP, dtype=jnp.bfloat16)

    # One-hot gather/scatter matrices (exact 0/1 in bf16), zero-padded to 128.
    row, col = edges[0], edges[1]
    g_row = jax.nn.one_hot(pad_idx(row, e_pad, n_pad), n_pad, dtype=jnp.bfloat16)
    g_col = jax.nn.one_hot(pad_idx(col, e_pad, n_pad), n_pad, dtype=jnp.bfloat16)
    scat = g_row.T                                          # [N, E] scatter-add to edge source
    sel = jax.nn.one_hot(pad_idx(ca_idx, s_pad, n_pad), n_pad, dtype=jnp.bfloat16)

    xp = jnp.zeros((n_pad, XP), jnp.float32).at[:n, :x.shape[1]].set(
        x.astype(jnp.float32))

    def full(shape):
        nd = len(shape)
        return pl.BlockSpec(shape, lambda l, _nd=nd: (0,) * _nd)

    def perl(shape):
        nd = len(shape)
        return pl.BlockSpec((1,) + shape, lambda l, _nd=nd: (l,) + (0,) * _nd)

    args = [
        (onehot,           full((n_pad, INP))),
        (params['table'],  full((INP, INP))),
        (params['w_in'],   full((INP, H))),
        (params['b_in'],   full((1, H))),
        (xp,               full((n_pad, XP))),
        (g_row,            full((e_pad, n_pad))),
        (g_col,            full((e_pad, n_pad))),
        (scat,             full((n_pad, e_pad))),
        (sel,              full((s_pad, n_pad))),
        (params['w1a'],    perl((H, H))),
        (params['w1b'],    perl((H, H))),
        (params['w1c'],    perl((1, H))),
        (params['b1'],     perl((1, H))),
        (params['w2'],     perl((H, H))),
        (params['b2'],     perl((1, H))),
        (params['wa'],     perl((H, H))),
        (params['ba'],     perl((1, H))),
        (params['wc1'],    perl((H, H))),
        (params['bc1'],    perl((1, H))),
        (params['wc2r'],   perl((1, H))),
        (params['bc2'],    perl((1, 1))),
        (params['wn1a'],   perl((H, H))),
        (params['wn1b'],   perl((H, H))),
        (params['bn1'],    perl((1, H))),
        (params['wn2'],    perl((H, H))),
        (params['bn2'],    perl((1, H))),
        (params['weo'],    full((H, H))),
        (params['beo'],    full((1, H))),
        (params['wm1'],    full((H, 2 * H))),
        (params['bm1'],    full((1, 2 * H))),
        (params['wm2'],    full((2 * H, OUTP))),
        (params['bm2'],    full((1, OUTP))),
    ]
    inputs = [a for a, _ in args]
    in_specs = [spec for _, spec in args]

    out_bytes = s_pad * OUTP * 4
    in_bytes = sum(int(a.size) * a.dtype.itemsize for a in inputs)

    # Advisory cost estimate for the XLA scheduler.
    mm = L * (2 * e_pad * n_pad * H            # feature gathers
              + 6 * e_pad * n_pad * XP         # coord gathers + scatter (hi/lo)
              + 5 * e_pad * H * H              # edge MLP, gate, coord MLP
              + n_pad * e_pad * H              # message aggregation
              + 3 * n_pad * H * H)             # node MLP
    mm += n_pad * INP * INP + n_pad * INP * H  # embed + input proj
    mm += s_pad * (n_pad * H + H * H + 2 * H * H + 2 * H * OUTP)
    cost = pl.CostEstimate(flops=int(2 * mm),
                           transcendentals=int(L * e_pad * H * 4),
                           bytes_accessed=int(in_bytes + out_bytes))

    # VMEM limit sized from the resident footprint (inputs overestimate the
    # pipelined per-layer weights), clamped to v7x's 64 MiB physical VMEM.
    scratch_bytes = (n_pad * H + n_pad * XP) * 4
    act_bytes = 8 * e_pad * H * 4
    resident = in_bytes + scratch_bytes + act_bytes + out_bytes
    vmem_limit = int(min(64 * 1024 * 1024,
                         max(32 * 1024 * 1024, 2 * resident)))

    out_padded = pl.pallas_call(
        _fused_kernel,
        out_shape=jax.ShapeDtypeStruct((s_pad, OUTP), jnp.float32),
        grid=(L,),
        in_specs=in_specs,
        out_specs=pl.BlockSpec((s_pad, OUTP), lambda l: (0, 0)),
        scratch_shapes=[pltpu.VMEM((n_pad, H), jnp.float32),   # h residual stream
                        pltpu.VMEM((n_pad, XP), jnp.float32)], # coordinates
        compiler_params=pltpu.CompilerParams(
            dimension_semantics=("arbitrary",),
            vmem_limit_bytes=vmem_limit),
        cost_estimate=cost,
    )(*inputs)

    return out_padded[:s, :cfg['output_nf']]


def make_forward(cfg):
    jitted = jax.jit(functools.partial(_forward_core, cfg))

    def forward(params, h_idx, x, edges, batch):
        """Matches ResEnTransformer.forward(h, x, edges, batch)."""
        ca_idx = jnp.atleast_1d(jnp.asarray(batch.ca_idx))
        # Reference mask logic is all-True (no-op) for single-graph batches.
        # TODO(synk): multi-graph mask semantics of EnTransformer unavailable.
        return jitted(params, h_idx, x, edges, ca_idx)

    return forward


if __name__ == "__main__":
    key = jax.random.PRNGKey(0)
    k_p, k_h, k_x, k_e = jax.random.split(key, 4)

    input_nf, output_nf, hidden_nf = 9, 20, 128
    n_layers, n_heads = 3, 4
    n_nodes, n_edges = 16, 48

    cfg, params = init_model(k_p, input_nf, output_nf, hidden_nf,
                             n_layers, n_heads)

    h_idx = jax.random.randint(k_h, (n_nodes,), 0, input_nf)
    x = jax.random.normal(k_x, (n_nodes, 3), jnp.float32)
    rows = jax.random.randint(k_e, (n_edges,), 0, n_nodes)
    offs = jax.random.randint(jax.random.fold_in(k_e, 1), (n_edges,), 1,
                              n_nodes)
    cols = (rows + offs) % n_nodes
    edges = jnp.stack([rows, cols]).astype(jnp.int32)

    batch = SimpleNamespace(batch=jnp.zeros((n_nodes,), jnp.int32),
                            ca_idx=jnp.array([5], jnp.int32))

    forward = make_forward(cfg)
    out = forward(params, h_idx, x, edges, batch)
    jax.block_until_ready(out)
    assert out.shape == (1, output_nf) and out.dtype == jnp.float32
    assert bool(jnp.all(jnp.isfinite(out)))
    print("KERNEL_OK")
</pallas_src>

<mosaic_0001>
module attributes {stable_mosaic.version = 11 : i64} {
  func.func @_fused_kernel(%arg0: i32, %arg1: memref<128x16xbf16, #tpu.memory_space<vmem>>, %arg2: memref<16x16xbf16, #tpu.memory_space<vmem>>, %arg3: memref<16x128xbf16, #tpu.memory_space<vmem>>, %arg4: memref<1x128xf32, #tpu.memory_space<vmem>>, %arg5: memref<128x8xf32, #tpu.memory_space<vmem>>, %arg6: memref<128x128xbf16, #tpu.memory_space<vmem>>, %arg7: memref<128x128xbf16, #tpu.memory_space<vmem>>, %arg8: memref<128x128xbf16, #tpu.memory_space<vmem>>, %arg9: memref<8x128xbf16, #tpu.memory_space<vmem>>, %arg10: memref<1x128x128xbf16, #tpu.memory_space<vmem>>, %arg11: memref<1x128x128xbf16, #tpu.memory_space<vmem>>, %arg12: memref<1x1x128xf32, #tpu.memory_space<vmem>>, %arg13: memref<1x1x128xf32, #tpu.memory_space<vmem>>, %arg14: memref<1x128x128xbf16, #tpu.memory_space<vmem>>, %arg15: memref<1x1x128xf32, #tpu.memory_space<vmem>>, %arg16: memref<1x128x128xbf16, #tpu.memory_space<vmem>>, %arg17: memref<1x1x128xf32, #tpu.memory_space<vmem>>, %arg18: memref<1x128x128xbf16, #tpu.memory_space<vmem>>, %arg19: memref<1x1x128xf32, #tpu.memory_space<vmem>>, %arg20: memref<1x1x128xf32, #tpu.memory_space<vmem>>, %arg21: memref<1x1x1xf32, #tpu.memory_space<vmem>>, %arg22: memref<1x128x128xbf16, #tpu.memory_space<vmem>>, %arg23: memref<1x128x128xbf16, #tpu.memory_space<vmem>>, %arg24: memref<1x1x128xf32, #tpu.memory_space<vmem>>, %arg25: memref<1x128x128xbf16, #tpu.memory_space<vmem>>, %arg26: memref<1x1x128xf32, #tpu.memory_space<vmem>>, %arg27: memref<128x128xbf16, #tpu.memory_space<vmem>>, %arg28: memref<1x128xf32, #tpu.memory_space<vmem>>, %arg29: memref<128x256xbf16, #tpu.memory_space<vmem>>, %arg30: memref<1x256xf32, #tpu.memory_space<vmem>>, %arg31: memref<256x128xbf16, #tpu.memory_space<vmem>>, %arg32: memref<1x128xf32, #tpu.memory_space<vmem>>, %arg33: memref<8x128xf32, #tpu.memory_space<vmem>>, %arg34: memref<128x128xf32, #tpu.memory_space<vmem>>, %arg35: memref<128x8xf32, #tpu.memory_space<vmem>>) attributes {dimension_semantics = [#tpu.dimension_semantics<arbitrary>], iteration_bounds = array<i64: 3>, scalar_prefetch = 0 : i64, scratch_operands = 2 : i64, tpu.core_type = #tpu.core_type<tc>, window_params = [{pipeline_mode = #tpu.pipeline_mode<synchronous>, transform_indices = @transform_0, window_bounds = array<i64: 128, 16>}, {pipeline_mode = #tpu.pipeline_mode<synchronous>, transform_indices = @transform_1, window_bounds = array<i64: 16, 16>}, {pipeline_mode = #tpu.pipeline_mode<synchronous>, transform_indices = @transform_2, window_bounds = array<i64: 16, 128>}, {pipeline_mode = #tpu.pipeline_mode<synchronous>, transform_indices = @transform_3, window_bounds = array<i64: 1, 128>}, {pipeline_mode = #tpu.pipeline_mode<synchronous>, transform_indices = @transform_4, window_bounds = array<i64: 128, 8>}, {pipeline_mode = #tpu.pipeline_mode<synchronous>, transform_indices = @transform_5, window_bounds = array<i64: 128, 128>}, {pipeline_mode = #tpu.pipeline_mode<synchronous>, transform_indices = @transform_6, window_bounds = array<i64: 128, 128>}, {pipeline_mode = #tpu.pipeline_mode<synchronous>, transform_indices = @transform_7, window_bounds = array<i64: 128, 128>}, {pipeline_mode = #tpu.pipeline_mode<synchronous>, transform_indices = @transform_8, window_bounds = array<i64: 8, 128>}, {transform_indices = @transform_9, window_bounds = array<i64: 1, 128, 128>}, {transform_indices = @transform_10, window_bounds = array<i64: 1, 128, 128>}, {transform_indices = @transform_11, window_bounds = array<i64: 1, 1, 128>}, {transform_indices = @transform_12, window_bounds = array<i64: 1, 1, 128>}, {transform_indices = @transform_13, window_bounds = array<i64: 1, 128, 128>}, {transform_indices = @transform_14, window_bounds = array<i64: 1, 1, 128>}, {transform_indices = @transform_15, window_bounds = array<i64: 1, 128, 128>}, {transform_indices = @transform_16, window_bounds = array<i64: 1, 1, 128>}, {transform_indices = @transform_17, window_bounds = array<i64: 1, 128, 128>}, {transform_indices = @transform_18, window_bounds = array<i64: 1, 1, 128>}, {transform_indices = @transform_19, window_bounds = array<i64: 1, 1, 128>}, {transform_indices = @transform_20, window_bounds = array<i64: 1, 1, 1>}, {transform_indices = @transform_21, window_bounds = array<i64: 1, 128, 128>}, {transform_indices = @transform_22, window_bounds = array<i64: 1, 128, 128>}, {transform_indices = @transform_23, window_bounds = array<i64: 1, 1, 128>}, {transform_indices = @transform_24, window_bounds = array<i64: 1, 128, 128>}, {transform_indices = @transform_25, window_bounds = array<i64: 1, 1, 128>}, {pipeline_mode = #tpu.pipeline_mode<synchronous>, transform_indices = @transform_26, window_bounds = array<i64: 128, 128>}, {pipeline_mode = #tpu.pipeline_mode<synchronous>, transform_indices = @transform_27, window_bounds = array<i64: 1, 128>}, {pipeline_mode = #tpu.pipeline_mode<synchronous>, transform_indices = @transform_28, window_bounds = array<i64: 128, 256>}, {pipeline_mode = #tpu.pipeline_mode<synchronous>, transform_indices = @transform_29, window_bounds = array<i64: 1, 256>}, {pipeline_mode = #tpu.pipeline_mode<synchronous>, transform_indices = @transform_30, window_bounds = array<i64: 256, 128>}, {pipeline_mode = #tpu.pipeline_mode<synchronous>, transform_indices = @transform_31, window_bounds = array<i64: 1, 128>}, {pipeline_mode = #tpu.pipeline_mode<synchronous>, transform_indices = @transform_32, window_bounds = array<i64: 8, 128>}]} {
    %c0_i32 = arith.constant 0 : i32
    %0 = arith.cmpi eq, %arg0, %c0_i32 : i32
    %1 = arith.extui %0 : i1 to i32
    %c0_i32_0 = arith.constant 0 : i32
    %2 = arith.cmpi ne, %1, %c0_i32_0 : i32
    scf.if %2 {
      %c0_99 = arith.constant 0 : index
      %c0_100 = arith.constant 0 : index
      %155 = vector.load %arg1[%c0_99, %c0_100] : memref<128x16xbf16, #tpu.memory_space<vmem>>, vector<128x16xbf16>
      %c0_101 = arith.constant 0 : index
      %c0_102 = arith.constant 0 : index
      %156 = vector.load %arg2[%c0_101, %c0_102] : memref<16x16xbf16, #tpu.memory_space<vmem>>, vector<16x16xbf16>
      %cst_103 = arith.constant dense<0.000000e+00> : vector<128x16xf32>
      %157 = tpu.matmul %155, %156, %cst_103 {dimension_numbers = #tpu.dot_dimension_numbers<[1], [0], [0], [1], [0, 0, 1, 1], [], []>} : vector<128x16xbf16>, vector<16x16xbf16>, vector<128x16xf32> -> vector<128x16xf32>
      %158 = arith.truncf %157 : vector<128x16xf32> to vector<128x16xbf16>
      %c0_104 = arith.constant 0 : index
      %c0_105 = arith.constant 0 : index
      %159 = vector.load %arg3[%c0_104, %c0_105] : memref<16x128xbf16, #tpu.memory_space<vmem>>, vector<16x128xbf16>
      %cst_106 = arith.constant dense<0.000000e+00> : vector<128x128xf32>
      %160 = tpu.matmul %158, %159, %cst_106 {dimension_numbers = #tpu.dot_dimension_numbers<[1], [0], [0], [1], [0, 0, 1, 1], [], []>} : vector<128x16xbf16>, vector<16x128xbf16>, vector<128x128xf32> -> vector<128x128xf32>
      %c0_107 = arith.constant 0 : index
      %c0_108 = arith.constant 0 : index
      %161 = vector.load %arg4[%c0_107, %c0_108] : memref<1x128xf32, #tpu.memory_space<vmem>>, vector<1x128xf32>
      %162 = vector.broadcast %161 : vector<1x128xf32> to vector<128x128xf32>
      %163 = arith.addf %160, %162 : vector<128x128xf32>
      %c0_109 = arith.constant 0 : index
      %c0_110 = arith.constant 0 : index
      %164 = vector.load %arg34[%c0_109, %c0_110] : memref<128x128xf32, #tpu.memory_space<vmem>>, vector<128x128xf32>
      tpu.vector_store %arg34[%c0_109, %c0_110], %163 {strides = array<i32>} : memref<128x128xf32, #tpu.memory_space<vmem>>, vector<128x128xf32>,
      %c0_111 = arith.constant 0 : index
      %c0_112 = arith.constant 0 : index
      %165 = vector.load %arg5[%c0_111, %c0_112] : memref<128x8xf32, #tpu.memory_space<vmem>>, vector<128x8xf32>
      %c0_113 = arith.constant 0 : index
      %c0_114 = arith.constant 0 : index
      %166 = vector.load %arg35[%c0_113, %c0_114] : memref<128x8xf32, #tpu.memory_space<vmem>>, vector<128x8xf32>
      tpu.vector_store %arg35[%c0_113, %c0_114], %165 {strides = array<i32>} : memref<128x8xf32, #tpu.memory_space<vmem>>, vector<128x8xf32>,
    } else {
    }
    %c0 = arith.constant 0 : index
    %c0_1 = arith.constant 0 : index
    %3 = vector.load %arg6[%c0, %c0_1] : memref<128x128xbf16, #tpu.memory_space<vmem>>, vector<128x128xbf16>
    %c0_2 = arith.constant 0 : index
    %c0_3 = arith.constant 0 : index
    %4 = vector.load %arg7[%c0_2, %c0_3] : memref<128x128xbf16, #tpu.memory_space<vmem>>, vector<128x128xbf16>
    %c0_4 = arith.constant 0 : index
    %c0_5 = arith.constant 0 : index
    %5 = vector.load %arg8[%c0_4, %c0_5] : memref<128x128xbf16, #tpu.memory_space<vmem>>, vector<128x128xbf16>
    %c0_6 = arith.constant 0 : index
    %c0_7 = arith.constant 0 : index
    %6 = vector.load %arg34[%c0_6, %c0_7] : memref<128x128xf32, #tpu.memory_space<vmem>>, vector<128x128xf32>
    %c0_8 = arith.constant 0 : index
    %c0_9 = arith.constant 0 : index
    %7 = vector.load %arg35[%c0_8, %c0_9] : memref<128x8xf32, #tpu.memory_space<vmem>>, vector<128x8xf32>
    %8 = arith.truncf %6 : vector<128x128xf32> to vector<128x128xbf16>
    %cst = arith.constant dense<0.000000e+00> : vector<128x128xf32>
    %9 = tpu.matmul %3, %8, %cst {dimension_numbers = #tpu.dot_dimension_numbers<[1], [0], [0], [1], [0, 0, 1, 1], [], []>} : vector<128x128xbf16>, vector<128x128xbf16>, vector<128x128xf32> -> vector<128x128xf32>
    %cst_10 = arith.constant dense<0.000000e+00> : vector<128x128xf32>
    %10 = tpu.matmul %4, %8, %cst_10 {dimension_numbers = #tpu.dot_dimension_numbers<[1], [0], [0], [1], [0, 0, 1, 1], [], []>} : vector<128x128xbf16>, vector<128x128xbf16>, vector<128x128xf32> -> vector<128x128xf32>
    %11 = arith.truncf %7 : vector<128x8xf32> to vector<128x8xbf16>
    %12 = arith.extf %11 : vector<128x8xbf16> to vector<128x8xf32>
    %13 = arith.subf %7, %12 : vector<128x8xf32>
    %14 = arith.truncf %13 : vector<128x8xf32> to vector<128x8xbf16>
    %cst_11 = arith.constant dense<0.000000e+00> : vector<128x8xf32>
    %15 = tpu.matmul %3, %11, %cst_11 {dimension_numbers = #tpu.dot_dimension_numbers<[1], [0], [0], [1], [0, 0, 1, 1], [], []>} : vector<128x128xbf16>, vector<128x8xbf16>, vector<128x8xf32> -> vector<128x8xf32>
    %cst_12 = arith.constant dense<0.000000e+00> : vector<128x8xf32>
    %16 = tpu.matmul %3, %14, %cst_12 {dimension_numbers = #tpu.dot_dimension_numbers<[1], [0], [0], [1], [0, 0, 1, 1], [], []>} : vector<128x128xbf16>, vector<128x8xbf16>, vector<128x8xf32> -> vector<128x8xf32>
    %17 = arith.addf %15, %16 : vector<128x8xf32>
    %cst_13 = arith.constant dense<0.000000e+00> : vector<128x8xf32>
    %18 = tpu.matmul %4, %11, %cst_13 {dimension_numbers = #tpu.dot_dimension_numbers<[1], [0], [0], [1], [0, 0, 1, 1], [], []>} : vector<128x128xbf16>, vector<128x8xbf16>, vector<128x8xf32> -> vector<128x8xf32>
    %cst_14 = arith.constant dense<0.000000e+00> : vector<128x8xf32>
    %19 = tpu.matmul %4, %14, %cst_14 {dimension_numbers = #tpu.dot_dimension_numbers<[1], [0], [0], [1], [0, 0, 1, 1], [], []>} : vector<128x128xbf16>, vector<128x8xbf16>, vector<128x8xf32> -> vector<128x8xf32>
    %20 = arith.addf %18, %19 : vector<128x8xf32>
    %21 = arith.subf %17, %20 : vector<128x8xf32>
    %22 = arith.mulf %21, %21 : vector<128x8xf32>
    %cst_15 = arith.constant dense<0.000000e+00> : vector<128xf32>
    %23 = vector.multi_reduction <add>, %22, %cst_15 [1] : vector<128x8xf32> to vector<128xf32>
    %24 = vector.shape_cast %23 : vector<128xf32> to vector<128x1xf32>
    %25 = arith.truncf %9 : vector<128x128xf32> to vector<128x128xbf16>
    %c0_16 = arith.constant 0 : index
    %c0_17 = arith.constant 0 : index
    %c0_18 = arith.constant 0 : index
    %26 = vector.load %arg10[%c0_16, %c0_17, %c0_18] : memref<1x128x128xbf16, #tpu.memory_space<vmem>>, vector<1x128x128xbf16>
    %27 = vector.shape_cast %26 : vector<1x128x128xbf16> to vector<128x128xbf16>
    %cst_19 = arith.constant dense<0.000000e+00> : vector<128x128xf32>
    %28 = tpu.matmul %25, %27, %cst_19 {dimension_numbers = #tpu.dot_dimension_numbers<[1], [0], [0], [1], [0, 0, 1, 1], [], []>} : vector<128x128xbf16>, vector<128x128xbf16>, vector<128x128xf32> -> vector<128x128xf32>
    %29 = arith.truncf %10 : vector<128x128xf32> to vector<128x128xbf16>
    %c0_20 = arith.constant 0 : index
    %c0_21 = arith.constant 0 : index
    %c0_22 = arith.constant 0 : index
    %30 = vector.load %arg11[%c0_20, %c0_21, %c0_22] : memref<1x128x128xbf16, #tpu.memory_space<vmem>>, vector<1x128x128xbf16>
    %31 = vector.shape_cast %30 : vector<1x128x128xbf16> to vector<128x128xbf16>
    %cst_23 = arith.constant dense<0.000000e+00> : vector<128x128xf32>
    %32 = tpu.matmul %29, %31, %cst_23 {dimension_numbers = #tpu.dot_dimension_numbers<[1], [0], [0], [1], [0, 0, 1, 1], [], []>} : vector<128x128xbf16>, vector<128x128xbf16>, vector<128x128xf32> -> vector<128x128xf32>
    %33 = arith.addf %28, %32 : vector<128x128xf32>
    %c0_24 = arith.constant 0 : index
    %c0_25 = arith.constant 0 : index
    %c0_26 = arith.constant 0 : index
    %34 = vector.load %arg12[%c0_24, %c0_25, %c0_26] : memref<1x1x128xf32, #tpu.memory_space<vmem>>, vector<1x1x128xf32>
    %35 = vector.shape_cast %34 : vector<1x1x128xf32> to vector<1x128xf32>
    %36 = vector.broadcast %24 : vector<128x1xf32> to vector<128x128xf32>
    %37 = vector.broadcast %35 : vector<1x128xf32> to vector<128x128xf32>
    %38 = arith.mulf %36, %37 : vector<128x128xf32>
    %39 = arith.addf %33, %38 : vector<128x128xf32>
    %c0_27 = arith.constant 0 : index
    %c0_28 = arith.constant 0 : index
    %c0_29 = arith.constant 0 : index
    %40 = vector.load %arg13[%c0_27, %c0_28, %c0_29] : memref<1x1x128xf32, #tpu.memory_space<vmem>>, vector<1x1x128xf32>
    %41 = vector.shape_cast %40 : vector<1x1x128xf32> to vector<1x128xf32>
    %42 = vector.broadcast %41 : vector<1x128xf32> to vector<128x128xf32>
    %43 = arith.addf %39, %42 : vector<128x128xf32>
    %cst_30 = arith.constant 0.000000e+00 : f32
    %44 = vector.broadcast %cst_30 : f32 to vector<128x128xf32>
    %45 = arith.subf %44, %43 : vector<128x128xf32>
    %46 = math.exp %45 : vector<128x128xf32>
    %cst_31 = arith.constant 1.000000e+00 : f32
    %47 = vector.broadcast %cst_31 : f32 to vector<128x128xf32>
    %48 = arith.addf %47, %46 : vector<128x128xf32>
    %cst_32 = arith.constant 1.000000e+00 : f32
    %49 = vector.broadcast %cst_32 : f32 to vector<128x128xf32>
    %50 = arith.divf %49, %48 : vector<128x128xf32>
    %51 = arith.mulf %43, %50 : vector<128x128xf32>
    %52 = arith.truncf %51 : vector<128x128xf32> to vector<128x128xbf16>
    %c0_33 = arith.constant 0 : index
    %c0_34 = arith.constant 0 : index
    %c0_35 = arith.constant 0 : index
    %53 = vector.load %arg14[%c0_33, %c0_34, %c0_35] : memref<1x128x128xbf16, #tpu.memory_space<vmem>>, vector<1x128x128xbf16>
    %54 = vector.shape_cast %53 : vector<1x128x128xbf16> to vector<128x128xbf16>
    %cst_36 = arith.constant dense<0.000000e+00> : vector<128x128xf32>
    %55 = tpu.matmul %52, %54, %cst_36 {dimension_numbers = #tpu.dot_dimension_numbers<[1], [0], [0], [1], [0, 0, 1, 1], [], []>} : vector<128x128xbf16>, vector<128x128xbf16>, vector<128x128xf32> -> vector<128x128xf32>
    %c0_37 = arith.constant 0 : index
    %c0_38 = arith.constant 0 : index
    %c0_39 = arith.constant 0 : index
    %56 = vector.load %arg15[%c0_37, %c0_38, %c0_39] : memref<1x1x128xf32, #tpu.memory_space<vmem>>, vector<1x1x128xf32>
    %57 = vector.shape_cast %56 : vector<1x1x128xf32> to vector<1x128xf32>
    %58 = vector.broadcast %57 : vector<1x128xf32> to vector<128x128xf32>
    %59 = arith.addf %55, %58 : vector<128x128xf32>
    %cst_40 = arith.constant 0.000000e+00 : f32
    %60 = vector.broadcast %cst_40 : f32 to vector<128x128xf32>
    %61 = arith.subf %60, %59 : vector<128x128xf32>
    %62 = math.exp %61 : vector<128x128xf32>
    %cst_41 = arith.constant 1.000000e+00 : f32
    %63 = vector.broadcast %cst_41 : f32 to vector<128x128xf32>
    %64 = arith.addf %63, %62 : vector<128x128xf32>
    %cst_42 = arith.constant 1.000000e+00 : f32
    %65 = vector.broadcast %cst_42 : f32 to vector<128x128xf32>
    %66 = arith.divf %65, %64 : vector<128x128xf32>
    %67 = arith.mulf %59, %66 : vector<128x128xf32>
    %68 = arith.truncf %67 : vector<128x128xf32> to vector<128x128xbf16>
    %c0_43 = arith.constant 0 : index
    %c0_44 = arith.constant 0 : index
    %c0_45 = arith.constant 0 : index
    %69 = vector.load %arg16[%c0_43, %c0_44, %c0_45] : memref<1x128x128xbf16, #tpu.memory_space<vmem>>, vector<1x128x128xbf16>
    %70 = vector.shape_cast %69 : vector<1x128x128xbf16> to vector<128x128xbf16>
    %cst_46 = arith.constant dense<0.000000e+00> : vector<128x128xf32>
    %71 = tpu.matmul %68, %70, %cst_46 {dimension_numbers = #tpu.dot_dimension_numbers<[1], [0], [0], [1], [0, 0, 1, 1], [], []>} : vector<128x128xbf16>, vector<128x128xbf16>, vector<128x128xf32> -> vector<128x128xf32>
    %c0_47 = arith.constant 0 : index
    %c0_48 = arith.constant 0 : index
    %c0_49 = arith.constant 0 : index
    %72 = vector.load %arg17[%c0_47, %c0_48, %c0_49] : memref<1x1x128xf32, #tpu.memory_space<vmem>>, vector<1x1x128xf32>
    %73 = vector.shape_cast %72 : vector<1x1x128xf32> to vector<1x128xf32>
    %74 = vector.broadcast %73 : vector<1x128xf32> to vector<128x128xf32>
    %75 = arith.addf %71, %74 : vector<128x128xf32>
    %cst_50 = arith.constant 0.000000e+00 : f32
    %76 = vector.broadcast %cst_50 : f32 to vector<128x128xf32>
    %77 = arith.subf %76, %75 : vector<128x128xf32>
    %78 = math.exp %77 : vector<128x128xf32>
    %cst_51 = arith.constant 1.000000e+00 : f32
    %79 = vector.broadcast %cst_51 : f32 to vector<128x128xf32>
    %80 = arith.addf %79, %78 : vector<128x128xf32>
    %cst_52 = arith.constant 1.000000e+00 : f32
    %81 = vector.broadcast %cst_52 : f32 to vector<128x128xf32>
    %82 = arith.divf %81, %80 : vector<128x128xf32>
    %83 = arith.mulf %67, %82 : vector<128x128xf32>
    %84 = arith.truncf %83 : vector<128x128xf32> to vector<128x128xbf16>
    %c0_53 = arith.constant 0 : index
    %c0_54 = arith.constant 0 : index
    %c0_55 = arith.constant 0 : index
    %85 = vector.load %arg18[%c0_53, %c0_54, %c0_55] : memref<1x128x128xbf16, #tpu.memory_space<vmem>>, vector<1x128x128xbf16>
    %86 = vector.shape_cast %85 : vector<1x128x128xbf16> to vector<128x128xbf16>
    %cst_56 = arith.constant dense<0.000000e+00> : vector<128x128xf32>
    %87 = tpu.matmul %68, %86, %cst_56 {dimension_numbers = #tpu.dot_dimension_numbers<[1], [0], [0], [1], [0, 0, 1, 1], [], []>} : vector<128x128xbf16>, vector<128x128xbf16>, vector<128x128xf32> -> vector<128x128xf32>
    %c0_57 = arith.constant 0 : index
    %c0_58 = arith.constant 0 : index
    %c0_59 = arith.constant 0 : index
    %88 = vector.load %arg19[%c0_57, %c0_58, %c0_59] : memref<1x1x128xf32, #tpu.memory_space<vmem>>, vector<1x1x128xf32>
    %89 = vector.shape_cast %88 : vector<1x1x128xf32> to vector<1x128xf32>
    %90 = vector.broadcast %89 : vector<1x128xf32> to vector<128x128xf32>
    %91 = arith.addf %87, %90 : vector<128x128xf32>
    %cst_60 = arith.constant 0.000000e+00 : f32
    %92 = vector.broadcast %cst_60 : f32 to vector<128x128xf32>
    %93 = arith.subf %92, %91 : vector<128x128xf32>
    %94 = math.exp %93 : vector<128x128xf32>
    %cst_61 = arith.constant 1.000000e+00 : f32
    %95 = vector.broadcast %cst_61 : f32 to vector<128x128xf32>
    %96 = arith.addf %95, %94 : vector<128x128xf32>
    %cst_62 = arith.constant 1.000000e+00 : f32
    %97 = vector.broadcast %cst_62 : f32 to vector<128x128xf32>
    %98 = arith.divf %97, %96 : vector<128x128xf32>
    %99 = arith.mulf %91, %98 : vector<128x128xf32>
    %c0_63 = arith.constant 0 : index
    %c0_64 = arith.constant 0 : index
    %c0_65 = arith.constant 0 : index
    %100 = vector.load %arg20[%c0_63, %c0_64, %c0_65] : memref<1x1x128xf32, #tpu.memory_space<vmem>>, vector<1x1x128xf32>
    %101 = vector.shape_cast %100 : vector<1x1x128xf32> to vector<1x128xf32>
    %102 = vector.broadcast %101 : vector<1x128xf32> to vector<128x128xf32>
    %103 = arith.mulf %99, %102 : vector<128x128xf32>
    %cst_66 = arith.constant dense<0.000000e+00> : vector<128xf32>
    %104 = vector.multi_reduction <add>, %103, %cst_66 [1] : vector<128x128xf32> to vector<128xf32>
    %105 = vector.shape_cast %104 : vector<128xf32> to vector<128x1xf32>
    %c0_67 = arith.constant 0 : index
    %c0_68 = arith.constant 0 : index
    %c0_69 = arith.constant 0 : index
    %106 = vector.load %arg21[%c0_67, %c0_68, %c0_69] : memref<1x1x1xf32, #tpu.memory_space<vmem>>, vector<1x1x1xf32>
    %107 = vector.shape_cast %106 : vector<1x1x1xf32> to vector<1x1xf32>
    %108 = vector.broadcast %107 : vector<1x1xf32> to vector<128x1xf32>
    %109 = arith.addf %105, %108 : vector<128x1xf32>
    %110 = vector.broadcast %109 : vector<128x1xf32> to vector<128x8xf32>
    %111 = arith.mulf %21, %110 : vector<128x8xf32>
    %112 = arith.truncf %111 : vector<128x8xf32> to vector<128x8xbf16>
    %113 = arith.extf %112 : vector<128x8xbf16> to vector<128x8xf32>
    %114 = arith.subf %111, %113 : vector<128x8xf32>
    %115 = arith.truncf %114 : vector<128x8xf32> to vector<128x8xbf16>
    %cst_70 = arith.constant dense<0.000000e+00> : vector<128x8xf32>
    %116 = tpu.matmul %5, %112, %cst_70 {dimension_numbers = #tpu.dot_dimension_numbers<[1], [0], [0], [1], [0, 0, 1, 1], [], []>} : vector<128x128xbf16>, vector<128x8xbf16>, vector<128x8xf32> -> vector<128x8xf32>
    %117 = arith.addf %7, %116 : vector<128x8xf32>
    %cst_71 = arith.constant dense<0.000000e+00> : vector<128x8xf32>
    %118 = tpu.matmul %5, %115, %cst_71 {dimension_numbers = #tpu.dot_dimension_numbers<[1], [0], [0], [1], [0, 0, 1, 1], [], []>} : vector<128x128xbf16>, vector<128x8xbf16>, vector<128x8xf32> -> vector<128x8xf32>
    %119 = arith.addf %117, %118 : vector<128x8xf32>
    %c0_72 = arith.constant 0 : index
    %c0_73 = arith.constant 0 : index
    %120 = vector.load %arg35[%c0_72, %c0_73] : memref<128x8xf32, #tpu.memory_space<vmem>>, vector<128x8xf32>
    tpu.vector_store %arg35[%c0_72, %c0_73], %119 {strides = array<i32>} : memref<128x8xf32, #tpu.memory_space<vmem>>, vector<128x8xf32>,
    %cst_74 = arith.constant dense<0.000000e+00> : vector<128x128xf32>
    %121 = tpu.matmul %5, %84, %cst_74 {dimension_numbers = #tpu.dot_dimension_numbers<[1], [0], [0], [1], [0, 0, 1, 1], [], []>} : vector<128x128xbf16>, vector<128x128xbf16>, vector<128x128xf32> -> vector<128x128xf32>
    %c0_75 = arith.constant 0 : index
    %c0_76 = arith.constant 0 : index
    %c0_77 = arith.constant 0 : index
    %122 = vector.load %arg22[%c0_75, %c0_76, %c0_77] : memref<1x128x128xbf16, #tpu.memory_space<vmem>>, vector<1x128x128xbf16>
    %123 = vector.shape_cast %122 : vector<1x128x128xbf16> to vector<128x128xbf16>
    %cst_78 = arith.constant dense<0.000000e+00> : vector<128x128xf32>
    %124 = tpu.matmul %8, %123, %cst_78 {dimension_numbers = #tpu.dot_dimension_numbers<[1], [0], [0], [1], [0, 0, 1, 1], [], []>} : vector<128x128xbf16>, vector<128x128xbf16>, vector<128x128xf32> -> vector<128x128xf32>
    %125 = arith.truncf %121 : vector<128x128xf32> to vector<128x128xbf16>
    %c0_79 = arith.constant 0 : index
    %c0_80 = arith.constant 0 : index
    %c0_81 = arith.constant 0 : index
    %126 = vector.load %arg23[%c0_79, %c0_80, %c0_81] : memref<1x128x128xbf16, #tpu.memory_space<vmem>>, vector<1x128x128xbf16>
    %127 = vector.shape_cast %126 : vector<1x128x128xbf16> to vector<128x128xbf16>
    %cst_82 = arith.constant dense<0.000000e+00> : vector<128x128xf32>
    %128 = tpu.matmul %125, %127, %cst_82 {dimension_numbers = #tpu.dot_dimension_numbers<[1], [0], [0], [1], [0, 0, 1, 1], [], []>} : vector<128x128xbf16>, vector<128x128xbf16>, vector<128x128xf32> -> vector<128x128xf32>
    %129 = arith.addf %124, %128 : vector<128x128xf32>
    %c0_83 = arith.constant 0 : index
    %c0_84 = arith.constant 0 : index
    %c0_85 = arith.constant 0 : index
    %130 = vector.load %arg24[%c0_83, %c0_84, %c0_85] : memref<1x1x128xf32, #tpu.memory_space<vmem>>, vector<1x1x128xf32>
    %131 = vector.shape_cast %130 : vector<1x1x128xf32> to vector<1x128xf32>
    %132 = vector.broadcast %131 : vector<1x128xf32> to vector<128x128xf32>
    %133 = arith.addf %129, %132 : vector<128x128xf32>
    %cst_86 = arith.constant 0.000000e+00 : f32
    %134 = vector.broadcast %cst_86 : f32 to vector<128x128xf32>
    %135 = arith.subf %134, %133 : vector<128x128xf32>
    %136 = math.exp %135 : vector<128x128xf32>
    %cst_87 = arith.constant 1.000000e+00 : f32
    %137 = vector.broadcast %cst_87 : f32 to vector<128x128xf32>
    %138 = arith.addf %137, %136 : vector<128x128xf32>
    %cst_88 = arith.constant 1.000000e+00 : f32
    %139 = vector.broadcast %cst_88 : f32 to vector<128x128xf32>
    %140 = arith.divf %139, %138 : vector<128x128xf32>
    %141 = arith.mulf %133, %140 : vector<128x128xf32>
    %142 = arith.truncf %141 : vector<128x128xf32> to vector<128x128xbf16>
    %c0_89 = arith.constant 0 : index
    %c0_90 = arith.constant 0 : index
    %c0_91 = arith.constant 0 : index
    %143 = vector.load %arg25[%c0_89, %c0_90, %c0_91] : memref<1x128x128xbf16, #tpu.memory_space<vmem>>, vector<1x128x128xbf16>
    %144 = vector.shape_cast %143 : vector<1x128x128xbf16> to vector<128x128xbf16>
    %cst_92 = arith.constant dense<0.000000e+00> : vector<128x128xf32>
    %145 = tpu.matmul %142, %144, %cst_92 {dimension_numbers = #tpu.dot_dimension_numbers<[1], [0], [0], [1], [0, 0, 1, 1], [], []>} : vector<128x128xbf16>, vector<128x128xbf16>, vector<128x128xf32> -> vector<128x128xf32>
    %146 = arith.addf %6, %145 : vector<128x128xf32>
    %c0_93 = arith.constant 0 : index
    %c0_94 = arith.constant 0 : index
    %c0_95 = arith.constant 0 : index
    %147 = vector.load %arg26[%c0_93, %c0_94, %c0_95] : memref<1x1x128xf32, #tpu.memory_space<vmem>>, vector<1x1x128xf32>
    %148 = vector.shape_cast %147 : vector<1x1x128xf32> to vector<1x128xf32>
    %149 = vector.broadcast %148 : vector<1x128xf32> to vector<128x128xf32>
    %150 = arith.addf %146, %149 : vector<128x128xf32>
    %c0_96 = arith.constant 0 : index
    %c0_97 = arith.constant 0 : index
    %151 = vector.load %arg34[%c0_96, %c0_97] : memref<128x128xf32, #tpu.memory_space<vmem>>, vector<128x128xf32>
    tpu.vector_store %arg34[%c0_96, %c0_97], %150 {strides = array<i32>} : memref<128x128xf32, #tpu.memory_space<vmem>>, vector<128x128xf32>,
    %c2_i32 = arith.constant 2 : i32
    %152 = arith.cmpi eq, %arg0, %c2_i32 : i32
    %153 = arith.extui %152 : i1 to i32
    %c0_i32_98 = arith.constant 0 : i32
    %154 = arith.cmpi ne, %153, %c0_i32_98 : i32
    scf.if %154 {
      %c0_99 = arith.constant 0 : index
      %c0_100 = arith.constant 0 : index
      %155 = vector.load %arg9[%c0_99, %c0_100] : memref<8x128xbf16, #tpu.memory_space<vmem>>, vector<8x128xbf16>
      %156 = arith.truncf %150 : vector<128x128xf32> to vector<128x128xbf16>
      %cst_101 = arith.constant dense<0.000000e+00> : vector<8x128xf32>
      %157 = tpu.matmul %155, %156, %cst_101 {dimension_numbers = #tpu.dot_dimension_numbers<[1], [0], [0], [1], [0, 0, 1, 1], [], []>} : vector<8x128xbf16>, vector<128x128xbf16>, vector<8x128xf32> -> vector<8x128xf32>
      %158 = arith.truncf %157 : vector<8x128xf32> to vector<8x128xbf16>
      %c0_102 = arith.constant 0 : index
      %c0_103 = arith.constant 0 : index
      %159 = vector.load %arg27[%c0_102, %c0_103] : memref<128x128xbf16, #tpu.memory_space<vmem>>, vector<128x128xbf16>
      %cst_104 = arith.constant dense<0.000000e+00> : vector<8x128xf32>
      %160 = tpu.matmul %158, %159, %cst_104 {dimension_numbers = #tpu.dot_dimension_numbers<[1], [0], [0], [1], [0, 0, 1, 1], [], []>} : vector<8x128xbf16>, vector<128x128xbf16>, vector<8x128xf32> -> vector<8x128xf32>
      %c0_105 = arith.constant 0 : index
      %c0_106 = arith.constant 0 : index
      %161 = vector.load %arg28[%c0_105, %c0_106] : memref<1x128xf32, #tpu.memory_space<vmem>>, vector<1x128xf32>
      %162 = vector.broadcast %161 : vector<1x128xf32> to vector<8x128xf32>
      %163 = arith.addf %160, %162 : vector<8x128xf32>
      %164 = arith.truncf %163 : vector<8x128xf32> to vector<8x128xbf16>
      %c0_107 = arith.constant 0 : index
      %c0_108 = arith.constant 0 : index
      %165 = vector.load %arg29[%c0_107, %c0_108] : memref<128x256xbf16, #tpu.memory_space<vmem>>, vector<128x256xbf16>
      %cst_109 = arith.constant dense<0.000000e+00> : vector<8x256xf32>
      %166 = tpu.matmul %164, %165, %cst_109 {dimension_numbers = #tpu.dot_dimension_numbers<[1], [0], [0], [1], [0, 0, 1, 1], [], []>} : vector<8x128xbf16>, vector<128x256xbf16>, vector<8x256xf32> -> vector<8x256xf32>
      %c0_110 = arith.constant 0 : index
      %c0_111 = arith.constant 0 : index
      %167 = vector.load %arg30[%c0_110, %c0_111] : memref<1x256xf32, #tpu.memory_space<vmem>>, vector<1x256xf32>
      %168 = vector.broadcast %167 : vector<1x256xf32> to vector<8x256xf32>
      %169 = arith.addf %166, %168 : vector<8x256xf32>
      %cst_112 = arith.constant 0.000000e+00 : f32
      %170 = vector.broadcast %cst_112 : f32 to vector<8x256xf32>
      %171 = arith.maximumf %169, %170 : vector<8x256xf32>
      %172 = arith.truncf %171 : vector<8x256xf32> to vector<8x256xbf16>
      %c0_113 = arith.constant 0 : index
      %c0_114 = arith.constant 0 : index
      %173 = vector.load %arg31[%c0_113, %c0_114] : memref<256x128xbf16, #tpu.memory_space<vmem>>, vector<256x128xbf16>
      %cst_115 = arith.constant dense<0.000000e+00> : vector<8x128xf32>
      %174 = tpu.matmul %172, %173, %cst_115 {dimension_numbers = #tpu.dot_dimension_numbers<[1], [0], [0], [1], [0, 0, 1, 1], [], []>} : vector<8x256xbf16>, vector<256x128xbf16>, vector<8x128xf32> -> vector<8x128xf32>
      %c0_116 = arith.constant 0 : index
      %c0_117 = arith.constant 0 : index
      %175 = vector.load %arg32[%c0_116, %c0_117] : memref<1x128xf32, #tpu.memory_space<vmem>>, vector<1x128xf32>
      %176 = vector.broadcast %175 : vector<1x128xf32> to vector<8x128xf32>
      %177 = arith.addf %174, %176 : vector<8x128xf32>
      %c0_118 = arith.constant 0 : index
      %c0_119 = arith.constant 0 : index
      %178 = vector.load %arg33[%c0_118, %c0_119] : memref<8x128xf32, #tpu.memory_space<vmem>>, vector<8x128xf32>
      tpu.vector_store %arg33[%c0_118, %c0_119], %177 {strides = array<i32>} : memref<8x128xf32, #tpu.memory_space<vmem>>, vector<8x128xf32>,
    } else {
    }
    return
  }
  func.func @transform_0(%arg0: i32) -> (i32, i32) {
    %c0_i32 = arith.constant 0 : i32
    %c0_i32_0 = arith.constant 0 : i32
    %c0_i32_1 = arith.constant 0 : i32
    return %c0_i32, %c0_i32_0 : i32, i32
  }
  func.func @transform_1(%arg0: i32) -> (i32, i32) {
    %c0_i32 = arith.constant 0 : i32
    %c0_i32_0 = arith.constant 0 : i32
    %c0_i32_1 = arith.constant 0 : i32
    return %c0_i32, %c0_i32_0 : i32, i32
  }
  func.func @transform_2(%arg0: i32) -> (i32, i32) {
    %c0_i32 = arith.constant 0 : i32
    %c0_i32_0 = arith.constant 0 : i32
    %c0_i32_1 = arith.constant 0 : i32
    return %c0_i32, %c0_i32_0 : i32, i32
  }
  func.func @transform_3(%arg0: i32) -> (i32, i32) {
    %c0_i32 = arith.constant 0 : i32
    %c0_i32_0 = arith.constant 0 : i32
    %c0_i32_1 = arith.constant 0 : i32
    return %c0_i32, %c0_i32_0 : i32, i32
  }
  func.func @transform_4(%arg0: i32) -> (i32, i32) {
    %c0_i32 = arith.constant 0 : i32
    %c0_i32_0 = arith.constant 0 : i32
    %c0_i32_1 = arith.constant 0 : i32
    return %c0_i32, %c0_i32_0 : i32, i32
  }
  func.func @transform_5(%arg0: i32) -> (i32, i32) {
    %c0_i32 = arith.constant 0 : i32
    %c0_i32_0 = arith.constant 0 : i32
    %c0_i32_1 = arith.constant 0 : i32
    return %c0_i32, %c0_i32_0 : i32, i32
  }
  func.func @transform_6(%arg0: i32) -> (i32, i32) {
    %c0_i32 = arith.constant 0 : i32
    %c0_i32_0 = arith.constant 0 : i32
    %c0_i32_1 = arith.constant 0 : i32
    return %c0_i32, %c0_i32_0 : i32, i32
  }
  func.func @transform_7(%arg0: i32) -> (i32, i32) {
    %c0_i32 = arith.constant 0 : i32
    %c0_i32_0 = arith.constant 0 : i32
    %c0_i32_1 = arith.constant 0 : i32
    return %c0_i32, %c0_i32_0 : i32, i32
  }
  func.func @transform_8(%arg0: i32) -> (i32, i32) {
    %c0_i32 = arith.constant 0 : i32
    %c0_i32_0 = arith.constant 0 : i32
    %c0_i32_1 = arith.constant 0 : i32
    return %c0_i32, %c0_i32_0 : i32, i32
  }
  func.func @transform_9(%arg0: i32) -> (i32, i32, i32) {
    %c0_i32 = arith.constant 0 : i32
    %c0_i32_0 = arith.constant 0 : i32
    %c0_i32_1 = arith.constant 0 : i32
    return %arg0, %c0_i32, %c0_i32_0 : i32, i32, i32
  }
  func.func @transform_10(%arg0: i32) -> (i32, i32, i32) {
    %c0_i32 = arith.constant 0 : i32
    %c0_i32_0 = arith.constant 0 : i32
    %c0_i32_1 = arith.constant 0 : i32
    return %arg0, %c0_i32, %c0_i32_0 : i32, i32, i32
  }
  func.func @transform_11(%arg0: i32) -> (i32, i32, i32) {
    %c0_i32 = arith.constant 0 : i32
    %c0_i32_0 = arith.constant 0 : i32
    %c0_i32_1 = arith.constant 0 : i32
    return %arg0, %c0_i32, %c0_i32_0 : i32, i32, i32
  }
  func.func @transform_12(%arg0: i32) -> (i32, i32, i32) {
    %c0_i32 = arith.constant 0 : i32
    %c0_i32_0 = arith.constant 0 : i32
    %c0_i32_1 = arith.constant 0 : i32
    return %arg0, %c0_i32, %c0_i32_0 : i32, i32, i32
  }
  func.func @transform_13(%arg0: i32) -> (i32, i32, i32) {
    %c0_i32 = arith.constant 0 : i32
    %c0_i32_0 = arith.constant 0 : i32
    %c0_i32_1 = arith.constant 0 : i32
    return %arg0, %c0_i32, %c0_i32_0 : i32, i32, i32
  }
  func.func @transform_14(%arg0: i32) -> (i32, i32, i32) {
    %c0_i32 = arith.constant 0 : i32
    %c0_i32_0 = arith.constant 0 : i32
    %c0_i32_1 = arith.constant 0 : i32
    return %arg0, %c0_i32, %c0_i32_0 : i32, i32, i32
  }
  func.func @transform_15(%arg0: i32) -> (i32, i32, i32) {
    %c0_i32 = arith.constant 0 : i32
    %c0_i32_0 = arith.constant 0 : i32
    %c0_i32_1 = arith.constant 0 : i32
    return %arg0, %c0_i32, %c0_i32_0 : i32, i32, i32
  }
  func.func @transform_16(%arg0: i32) -> (i32, i32, i32) {
    %c0_i32 = arith.constant 0 : i32
    %c0_i32_0 = arith.constant 0 : i32
    %c0_i32_1 = arith.constant 0 : i32
    return %arg0, %c0_i32, %c0_i32_0 : i32, i32, i32
  }
  func.func @transform_17(%arg0: i32) -> (i32, i32, i32) {
    %c0_i32 = arith.constant 0 : i32
    %c0_i32_0 = arith.constant 0 : i32
    %c0_i32_1 = arith.constant 0 : i32
    return %arg0, %c0_i32, %c0_i32_0 : i32, i32, i32
  }
  func.func @transform_18(%arg0: i32) -> (i32, i32, i32) {
    %c0_i32 = arith.constant 0 : i32
    %c0_i32_0 = arith.constant 0 : i32
    %c0_i32_1 = arith.constant 0 : i32
    return %arg0, %c0_i32, %c0_i32_0 : i32, i32, i32
  }
  func.func @transform_19(%arg0: i32) -> (i32, i32, i32) {
    %c0_i32 = arith.constant 0 : i32
    %c0_i32_0 = arith.constant 0 : i32
    %c0_i32_1 = arith.constant 0 : i32
    return %arg0, %c0_i32, %c0_i32_0 : i32, i32, i32
  }
  func.func @transform_20(%arg0: i32) -> (i32, i32, i32) {
    %c0_i32 = arith.constant 0 : i32
    %c0_i32_0 = arith.constant 0 : i32
    %c0_i32_1 = arith.constant 0 : i32
    return %arg0, %c0_i32, %c0_i32_0 : i32, i32, i32
  }
  func.func @transform_21(%arg0: i32) -> (i32, i32, i32) {
    %c0_i32 = arith.constant 0 : i32
    %c0_i32_0 = arith.constant 0 : i32
    %c0_i32_1 = arith.constant 0 : i32
    return %arg0, %c0_i32, %c0_i32_0 : i32, i32, i32
  }
  func.func @transform_22(%arg0: i32) -> (i32, i32, i32) {
    %c0_i32 = arith.constant 0 : i32
    %c0_i32_0 = arith.constant 0 : i32
    %c0_i32_1 = arith.constant 0 : i32
    return %arg0, %c0_i32, %c0_i32_0 : i32, i32, i32
  }
  func.func @transform_23(%arg0: i32) -> (i32, i32, i32) {
    %c0_i32 = arith.constant 0 : i32
    %c0_i32_0 = arith.constant 0 : i32
    %c0_i32_1 = arith.constant 0 : i32
    return %arg0, %c0_i32, %c0_i32_0 : i32, i32, i32
  }
  func.func @transform_24(%arg0: i32) -> (i32, i32, i32) {
    %c0_i32 = arith.constant 0 : i32
    %c0_i32_0 = arith.constant 0 : i32
    %c0_i32_1 = arith.constant 0 : i32
    return %arg0, %c0_i32, %c0_i32_0 : i32, i32, i32
  }
  func.func @transform_25(%arg0: i32) -> (i32, i32, i32) {
    %c0_i32 = arith.constant 0 : i32
    %c0_i32_0 = arith.constant 0 : i32
    %c0_i32_1 = arith.constant 0 : i32
    return %arg0, %c0_i32, %c0_i32_0 : i32, i32, i32
  }
  func.func @transform_26(%arg0: i32) -> (i32, i32) {
    %c0_i32 = arith.constant 0 : i32
    %c0_i32_0 = arith.constant 0 : i32
    %c0_i32_1 = arith.constant 0 : i32
    return %c0_i32, %c0_i32_0 : i32, i32
  }
  func.func @transform_27(%arg0: i32) -> (i32, i32) {
    %c0_i32 = arith.constant 0 : i32
    %c0_i32_0 = arith.constant 0 : i32
    %c0_i32_1 = arith.constant 0 : i32
    return %c0_i32, %c0_i32_0 : i32, i32
  }
  func.func @transform_28(%arg0: i32) -> (i32, i32) {
    %c0_i32 = arith.constant 0 : i32
    %c0_i32_0 = arith.constant 0 : i32
    %c0_i32_1 = arith.constant 0 : i32
    return %c0_i32, %c0_i32_0 : i32, i32
  }
  func.func @transform_29(%arg0: i32) -> (i32, i32) {
    %c0_i32 = arith.constant 0 : i32
    %c0_i32_0 = arith.constant 0 : i32
    %c0_i32_1 = arith.constant 0 : i32
    return %c0_i32, %c0_i32_0 : i32, i32
  }
  func.func @transform_30(%arg0: i32) -> (i32, i32) {
    %c0_i32 = arith.constant 0 : i32
    %c0_i32_0 = arith.constant 0 : i32
    %c0_i32_1 = arith.constant 0 : i32
    return %c0_i32, %c0_i32_0 : i32, i32
  }
  func.func @transform_31(%arg0: i32) -> (i32, i32) {
    %c0_i32 = arith.constant 0 : i32
    %c0_i32_0 = arith.constant 0 : i32
    %c0_i32_1 = arith.constant 0 : i32
    return %c0_i32, %c0_i32_0 : i32, i32
  }
  func.func @transform_32(%arg0: i32) -> (i32, i32) {
    %c0_i32 = arith.constant 0 : i32
    %c0_i32_0 = arith.constant 0 : i32
    %c0_i32_1 = arith.constant 0 : i32
    return %c0_i32, %c0_i32_0 : i32, i32
  }
}

</mosaic_0001>

<bundles_post_ra>
// kernel: _forward_core.1
= control target key start
LH: loop header
LB: loop body
LE: loop exit
PB: predicated region body
PF: predicated region fallthrough
CT: control target
= control target key end

     0   :  { %s8957_s6 = smov 1   ;;  %s8958_s10 = smov 2   ;;  %s10943_s0 = inlined_call_operand.smem [shape: u32[33], index: -1, kind: input, shape index: {}] }
   0x1   :  { %s9021_s5 = sld [smem:[%s10943_s0]]   ;;  %s8959_s14 = smov 3  }
   0x2   :  { %s9026_s9 = sld [smem:[%s10943_s0 + %s8957_s6]]   ;;  %s8960_s18 = smov 4  }
   0x3   :  { %s9031_s13 = sld [smem:[%s10943_s0 + %s8958_s10]]   ;;  %s8961_s22 = smov 5  }
   0x4   :  { %s9036_s17 = sld [smem:[%s10943_s0 + %s8959_s14]]   ;;  %s8962_s26 = smov 6  }
   0x5   :  { %s9041_s21 = sld [smem:[%s10943_s0 + %s8960_s18]]   ;;  %s8963_s30 = smov 7  }
   0x6   :  { %s9046_s25 = sld [smem:[%s10943_s0 + %s8961_s22]]   ;;  %s8964_s4 = smov 8  }
   0x7   :  { %11016 = sst [smem:[#allocation42_spill]] %s9021_s5  ;;  %s8965_s10 = smov 9  }
   0x8   :  { %s9051_s29 = sld [smem:[%s10943_s0 + %s8962_s26]]   ;;  %s8966_s15 = smov 10  }
   0x9   :  { %11017 = sst [smem:[#allocation43_spill]] %s9031_s13  ;;  %s8967_s20 = smov 11  }
   0xa   :  { %11018 = sst [smem:[#allocation44_spill]] %s9036_s17  ;;  %s8968_s26 = smov 12  }
   0xb   :  { %11019 = sst [smem:[#allocation45_spill]] %s9041_s21  ;;  %s8969_s1 = smov 13  }
   0xc   :  { %11020 = sst [smem:[#allocation46_spill]] %s9046_s25  ;;  %s8970_s7 = smov 14  }
   0xd   :  { %s9056_s3 = sld [smem:[%s10943_s0 + %s8963_s30]]   ;;  %s8972_s22 = smov 16  }
   0xe   :  { %11021 = sst [smem:[#allocation47_spill]] %s9051_s29  ;;  %s8973_s28 = smov 17  }
   0xf   :  { %s9061_s8 = sld [smem:[%s10943_s0 + %s8964_s4]]  }
  0x10   :  { %s9066_s14 = sld [smem:[%s10943_s0 + %s8965_s10]]  }
  0x11   :  { %s9071_s19 = sld [smem:[%s10943_s0 + %s8966_s15]]   ;;  %s8971_s15 = smov 15  }
  0x12   :  { %s9076_s24 = sld [smem:[%s10943_s0 + %s8967_s20]]  }
  0x13   :  { %11022 = sst [smem:[#allocation48_spill]] %s9056_s3 }
  0x14   :  { %s9081_s30 = sld [smem:[%s10943_s0 + %s8968_s26]]  }
  0x15   :  { %11023 = sst [smem:[#allocation49_spill]] %s9061_s8 }
  0x16   :  { %11024 = sst [smem:[#allocation50_spill]] %s9066_s14 }
  0x17   :  { %11025 = sst [smem:[#allocation51_spill]] %s9071_s19 }
  0x18   :  { %11026 = sst [smem:[#allocation52_spill]] %s9076_s24 }
  0x19   :  { %s9086_s6 = sld [smem:[%s10943_s0 + %s8969_s1]]  }
  0x1a   :  { %s9091_s12 = sld [smem:[%s10943_s0 + %s8970_s7]]   ;;  %s8974_s7 = smov 18  }
  0x1b   :  { %s9096_s20 = sld [smem:[%s10943_s0 + %s8971_s15]]   ;;  %s8975_s15 = smov 19  }
  0x1c   :  { %s9101_s27 = sld [smem:[%s10943_s0 + %s8972_s22]]   ;;  %s8976_s22 = smov 20  }
  0x1d   :  { %s9106_s4 = sld [smem:[%s10943_s0 + %s8973_s28]]   ;;  %s8977_s28 = smov 21  }
  0x1e   :  { %s9111_s8 = sld [smem:[%s10943_s0 + %s8974_s7]]   ;;  %s8978_s7 = smov 22  }
  0x1f   :  { %11027 = sst [smem:[#allocation53_spill]] %s9086_s6 }
  0x20   :  { %11028 = sst [smem:[#allocation54_spill]] %s9091_s12 }
  0x21   :  { %s9116_s3 = sld [smem:[%s10943_s0 + %s8975_s15]]   ;;  %s8979_s15 = smov 23  }
  0x22   :  { %s9121_s29 = sld [smem:[%s10943_s0 + %s8976_s22]]   ;;  %s8980_s22 = smov 24  }
  0x23   :  { %11029 = sst [smem:[#allocation55_spill]] %s9106_s4 }
  0x24   :  { %11030 = sst [smem:[#allocation56_spill]] %s9111_s8 }
  0x25   :  { %s9126_s25 = sld [smem:[%s10943_s0 + %s8977_s28]]   ;;  %s8981_s28 = smov 25  }
  0x26   :  { %s9131_s17 = sld [smem:[%s10943_s0 + %s8978_s7]]   ;;  %s8982_s7 = smov 26  }
  0x27   :  { %11031 = sst [smem:[#allocation57_spill]] %s9116_s3 }
  0x28   :  { %11032 = sst [smem:[#allocation58_spill]] %s9121_s29 }
  0x29   :  { %s9136_s21 = sld [smem:[%s10943_s0 + %s8979_s15]]   ;;  %s8983_s15 = smov 27  }
  0x2a   :  { %s9141_s13 = sld [smem:[%s10943_s0 + %s8980_s22]]   ;;  %s8984_s22 = smov 28  }
  0x2b   :  { %11033 = sst [smem:[#allocation59_spill]] %s9126_s25 }
  0x2c   :  { %s9146_s5 = sld [smem:[%s10943_s0 + %s8981_s28]]   ;;  %s8985_s28 = smov 29  }
  0x2d   :  { %s9151_s29 = sld [smem:[%s10943_s0 + %s8982_s7]]   ;;  %s8986_s7 = smov 30  }
  0x2e   :  { %s9156_s3 = sld [smem:[%s10943_s0 + %s8983_s15]]   ;;  %s8987_s15 = smov 31  }
  0x2f   :  { %11034 = sst [smem:[#allocation60_spill]] %s9136_s21 }
  0x30   :  { %s9161_s19 = sld [smem:[%s10943_s0 + %s8984_s22]]   ;;  %s8988_s22 = smov 32  }
  0x31   :  { %s9166_s14 = sld [smem:[%s10943_s0 + %s8985_s28]]  }
  0x32   :  { %11035 = sst [smem:[#allocation61_spill]] %s9146_s5 }
  0x33   :  { %11036 = sst [smem:[#allocation62_spill]] %s9151_s29 }
  0x34   :  { %11037 = sst [smem:[#allocation63_spill]] %s9156_s3 }
  0x35   :  { %s9171_s24 = sld [smem:[%s10943_s0 + %s8986_s7]]  }
  0x36   :  { %11038 = sst [smem:[#allocation64_spill]] %s9161_s19 }
  0x37   :  { %11039 = sst [smem:[#allocation65_spill]] %s9166_s14 }
  0x38   :  { %s9176_s5 = sld [smem:[%s10943_s0 + %s8987_s15]]  }
  0x39   :  { %s9181_s19 = sld [smem:[%s10943_s0 + %s8988_s22]]  }
  0x3e   :  { %11040 = sst [smem:[#allocation66_spill]] %s9176_s5 }
  0x3f   :  { %11041 = sst [smem:[#allocation67_spill]] %s9181_s19 }
  0x40   :  { %70 = vsyncpa [#allocation5], 0 }
  0x41   :  { %71 = vsyncpa [#allocation7], 0 }
  0x42   :  { %73 = vsyncpa [#allocation7 + $0x1], 0 }
  0x43   :  { %74 = vsyncpa [#allocation10], 0 }
  0x44   :  { %76 = vsyncpa [#allocation10 + $0x1], 0 }
  0x45   :  { %77 = vsyncpa [#allocation13], 0 }
  0x46   :  { %79 = vsyncpa [#allocation13 + $0x1], 0 }
  0x47   :  { %80 = vsyncpa [#allocation16], 0 }
  0x48   :  { %82 = vsyncpa [#allocation16 + $0x1], 0 }
  0x49   :  { %83 = vsyncpa [#allocation19], 0 }
  0x4a   :  { %85 = vsyncpa [#allocation19 + $0x1], 0 }
  0x4b   :  { %86 = vsyncpa [#allocation22], 0 }
  0x4c   :  { %88 = vsyncpa [#allocation22 + $0x1], 0 }
  0x4d   :  { %89 = vsyncpa [#allocation25], 0 }
  0x4e   :  { %90 = vsyncpa [#allocation28], 0 }
  0x4f   :  { %91 = vsyncpa [#allocation31], 0  ;;  %s9183_s28 = smov 0   ;;  %s9185_s0 = smov 0  }
  0x50   :  { %s9187_s1 = smov 0   ;;  %s9189_s2 = smov 0  }
  0x51 LB: > { %s11042_s6 = sld [smem:[#allocation53_spill]]  ;;  %s11043_s5 = sld [smem:[#allocation66_spill]]  ;;  %s8955_s2 = sphi %s9189_s2, %s11177_s2   ;;  %s8951_s1 = sphi %s9187_s1, %s11180_s1   ;;  %s8947_s0 = sphi %s9185_s0, %s11179_s0   ;;  %s8943_s28 = sphi %s9183_s28, %s11178_s28  }
  0x52   : > { %s11044_s4 = sld [smem:[#allocation55_spill]]  ;;  %s11046_s12 = sld [smem:[#allocation54_spill]] }
  0x53   : > { %s11045_s3 = sld [smem:[#allocation63_spill]]  ;;  %s11047_s8 = sld [smem:[#allocation56_spill]] }
  0x54   : > { %s11048_s29 = sld [smem:[#allocation62_spill]]  ;;  %s11049_s14 = sld [smem:[#allocation65_spill]] }
  0x55   : > { %11050 = sst [smem:[#allocation68_spill]] %s8947_s0  ;;  %s9204_s7 = sadd.s32 4294967295, %s8955_s2  }
  0x56   : > { %11051 = sst [smem:[#allocation69_spill]] %s8951_s1  ;;  %p6390_p0 = scmp.ge.s32.totalorder %s8955_s2, 1 }
  0x57   : > { %11052 = sst [smem:[#allocation70_spill]] %s9204_s7  ;;  %p10951_p1 = scmp.eq.s32.totalorder %s9204_s7, 0 }
  0x58   : > { %p880_p2 = scmp.lt.s32.totalorder %s8955_s2, 4  ;;  %s8989_s11 = smov [#allocation24]  }
  0x59   : > { %s929_s15 = sshll.u32 %s8989_s11, 4  ;;  %s8990_s16 = smov [#allocation27]   ;;  %s930_s15 = int_to_ptr.vmem [resolvable:$true] %s929_s15 }
  0x5a   : > { %p9210_p4 = pnand %p6390_p0, %p880_p2  ;;  %s957_s18 = sshll.u32 %s8990_s16, 4  ;;  %s9222_s18 = int_to_ptr.vmem [resolvable:$true] %s957_s18 }
  0x5b   : > { %s8357_s23 = scalar_lea.hbm %s11048_s29, 1024 }
  0x5c   : > { %s11053_s10 = scalar_select %p9210_p4, 1, 0 }
  0x5d   : > { %p7711_p5 = pneg %p9210_p4  ;;  %p8358_p7 = scmp.ne.s32.totalorder %s11048_s29, %s8357_s23 }
  0x5e   : > { %11054 = sst [smem:[#allocation71_spill]] %s11053_s10  ;;  %p8364_p11 = scmp.lt.u32.totalorder %s8357_s23, %s11048_s29 }
  0x5f   : > { %p9218_p6 = pnand %p7711_p5, %p10951_p1 }
  0x61   : > { %s11055_s22 = scalar_select %p9218_p6, 1, 0 }
  0x62   : > { %p9228_p8 = pneg %p9218_p6 }
  0x64   : > { %s11056_s26 = scalar_select %p9228_p8, 1, 0 }
  0x65   : > { %p8360_p9 = pnand %p9228_p8, %p8358_p7 }
  0x67   : > { %p8361_p10 = pneg %p8360_p9 }
  0x69   : > { %p8366_p12 = pnand %p8364_p11, %p8361_p10 }
  0x6b   : > { %8369 = shalt.err (!%p8366_p12)
}
  0x6c   : > { %s8370_s11 = scalar_lea.vmem %s930_s15, 1024  ;;  %p8378_p5 = scmp.lt.s32.totalorder %s930_s15, %s930_s15 }
  0x6d   : > { %p8371_p13 = scmp.ne.s32.totalorder %s930_s15, %s8370_s11  ;;  %p8379_p3 = scmp.lt.s32.totalorder %s8370_s11, %s8370_s11 }
  0x6f   : > { %p8373_p0 = pnand %p8371_p13, %p9228_p8  ;;  %p8380_p1 = por %p8379_p3, %p8378_p5 }
  0x71   : > { %p8374_p2 = pneg %p8373_p0 }
  0x73   : > { %p8381_p4 = pnand %p8380_p1, %p8374_p2 }
  0x75   : > { %8384 = shalt.err (!%p8381_p4)
}
  0x76   : > { %s10953_s16 = smov 64   ;;  %s10955_s23 = smov 4  }
  0x77   : > { %7717 = dma.hbm_to_vmem [thread:$0]  (!%p9218_p6), %s11048_s29, 1024, %s930_s15, [#allocation25], %s10953_s16, %s10953_s16, %s10955_s23  }
  0x78   : > { %s8385_s19 = scalar_lea.hbm %s11049_s14, 32 }
  0x79   : > { %p8386_p7 = scmp.ne.s32.totalorder %s11049_s14, %s8385_s19  ;;  %p8392_p1 = scmp.lt.u32.totalorder %s8385_s19, %s11049_s14 }
  0x7b   : > { %p8388_p9 = pnand %p8386_p7, %p9228_p8 }
  0x7d   : > { %p8389_p3 = pneg %p8388_p9 }
  0x7f   : > { %p8394_p4 = pnand %p8392_p1, %p8389_p3 }
  0x81   : > { %8397 = shalt.err (!%p8394_p4)
}
  0x82   : > { %s8398_s11 = scalar_lea.vmem %s9222_s18, 32  ;;  %p8406_p13 = scmp.lt.s32.totalorder %s9222_s18, %s9222_s18 }
  0x83   : > { %p8399_p10 = scmp.ne.s32.totalorder %s9222_s18, %s8398_s11  ;;  %p8407_p0 = scmp.lt.s32.totalorder %s8398_s11, %s8398_s11 }
  0x85   : > { %p8401_p11 = pnand %p8399_p10, %p9228_p8  ;;  %p8408_p2 = por %p8407_p0, %p8406_p13 }
  0x87   : > { %p8402_p12 = pneg %p8401_p11 }
  0x89   : > { %p8409_p5 = pnand %p8408_p2, %p8402_p12 }
  0x8b   : > { %8412 = shalt.err (!%p8409_p5)
}
  0x8c   : > { %7723 = dma.hbm_to_vmem [thread:$0]  (!%p9218_p6), %s11049_s14, 32, %s9222_s18, [#allocation28]  }
  0x8d   : > { %s9259_s19 = sadd.s32 1, %s8955_s2   ;;  %s371_s15 = sadd.s32 1, %s8951_s1 }
  0x8e   : > { %11057 = sst [smem:[#allocation72_spill]] %s9259_s19  ;;  %s368_s11 = ssub.s32 %s8955_s2, %s9259_s19 }
  0x8f   : > { %p378_p7 = scmp.ne.s32.totalorder %s8951_s1, %s8947_s0  ;;  %p369_p9 = scmp.eq.s32.totalorder %s368_s11, 0 }
  0x90   : > { %p379_p3 = scmp.eq.s32.totalorder %s8955_s2, 0  ;;  %p384_p1 = scmp.ne.s32.totalorder %s8947_s0, %s8943_s28 }
  0x91   : > { %p7773_p4 = scmp.lt.s32.totalorder %s8955_s2, 3  ;;  %p11059_p11 = scmp.eq.s32.totalorder %s9204_s7, 0 }
  0x92   : > { %s9271_s16 = scalar_select %p369_p9, %s8951_s1, %s371_s15  }
  0x93   : > { %p380_p10 = por %p379_p3, %p378_p7  ;;  %p9275_p12 = por %p11059_p11, %p384_p1 }
  0x94   : > { %11058 = sst [smem:[#allocation73_spill]] %s9271_s16  ;;  %s9280_s18 = sand.u32 1, %s8955_s2  }
  0x95   : > { %s11060_s23 = scalar_select %p9275_p12, 1, 0 }
  0x96   : > { %s9283_s14 = sand.u32 1, %s8951_s1   ;;  %s9286_s11 = sshll.u32 %s8955_s2, 4 }
  0x97   : > { %11061 = sst [smem:[#allocation74_spill]] %s11060_s23  ;;  %s1017_s28 = scalar_lea.vmem [#allocation6], %s9283_s14 }
  0x98   : > { %s1024_s15 = sshll.u32 %s1017_s28, 4  ;;  %s9291_s29 = scalar_lea.hbm %s9081_s30, %s9286_s11  ;;  %s9293_s15 = int_to_ptr.vmem [resolvable:$true] %s1024_s15 }
  0x99   : > { %p9295_p13 = pnand %p7773_p4, %p380_p10  ;;  %s9301_s1 = scalar_lea.hbm %s11046_s12, %s9286_s11 }
  0x9a   : > { %s1055_s19 = scalar_lea.vmem [#allocation9], %s9283_s14  ;;  %s8413_s28 = scalar_lea.hbm %s9291_s29, 16 }
  0x9b   : > { %s11062_s16 = scalar_select %p9295_p13, 1, 0 }
  0x9c   : > { %s9304_s23 = sshll.u32 %s1055_s19, 4  ;;  %p8414_p0 = scmp.ne.s32.totalorder %s9291_s29, %s8413_s28  ;;  %s1063_s23 = int_to_ptr.vmem [resolvable:$true] %s9304_s23 }
  0x9d   : > { %p9311_p2 = pneg %p9295_p13  ;;  %s8418_s10 = scalar_lea.hbm %s9081_s30, 48 }
  0x9e   : > { %p8419_p9 = scmp.lt.u32.totalorder %s9291_s29, %s9081_s30  ;;  %p8420_p3 = scmp.lt.u32.totalorder %s8418_s10, %s8413_s28 }
  0x9f   : > { %s11063_s7 = scalar_select %p9311_p2, 1, 0 }
  0xa0   : > { %p8416_p5 = pnand %p9311_p2, %p8414_p0  ;;  %p8421_p1 = por %p8420_p3, %p8419_p9 }
  0xa1   : > { %p8422_p4 = scmp.lt.u32.totalorder %s8413_s28, %s9291_s29 }
  0xa2   : > { %p8417_p7 = pneg %p8416_p5 }
  0xa3   : > { %p8423_p10 = por %p8422_p4, %p8421_p1 }
  0xa5   : > { %p8424_p11 = pnand %p8423_p10, %p8417_p7 }
  0xa7   : > { %8427 = shalt.err (!%p8424_p11)
}
  0xa8   : > { %s8428_s19 = scalar_lea.vmem %s9293_s15, 16  ;;  %s8993_s0 = smov [#allocation6]  }
  0xa9   : > { %p8429_p12 = scmp.ne.s32.totalorder %s9293_s15, %s8428_s19  ;;  %s8433_s21 = sshll.u32 %s8993_s0, 4  ;;  %s8434_s21 = int_to_ptr.vmem [resolvable:$false] %s8433_s21 }
  0xaa   : > { %s8435_s25 = scalar_lea.vmem %s8434_s21, 32  ;;  %p8436_p0 = scmp.lt.s32.totalorder %s9293_s15, %s8434_s21 }
  0xab   : > { %p8431_p6 = pnand %p8429_p12, %p9311_p2  ;;  %p8437_p5 = scmp.lt.s32.totalorder %s8435_s25, %s8428_s19 }
  0xad   : > { %p8432_p8 = pneg %p8431_p6  ;;  %p8438_p9 = por %p8437_p5, %p8436_p0 }
  0xaf   : > { %p8439_p3 = pnand %p8438_p9, %p8432_p8 }
  0xb1   : > { %8442 = shalt.err (!%p8439_p3)
}
  0xb2   : > { %s11064_s10 = scalar_lea.sflag [#allocation7], %s9280_s18  ;;  %s10977_s21 = scalar_lea.sflag [#allocation10], %s9280_s18 }
  0xb3   : > { %7733 = dma.hbm_to_vmem [thread:$0]  (!%p9295_p13), %s9291_s29, 16, %s9293_s15, %s11064_s10  }
  0xb4   : > { %s8443_s25 = scalar_lea.hbm %s9301_s1, 16  ;;  %s8448_s0 = scalar_lea.hbm %s11046_s12, 48 }
  0xb5   : > { %p8444_p6 = scmp.ne.s32.totalorder %s9301_s1, %s8443_s25  ;;  %p8449_p7 = scmp.lt.u32.totalorder %s9301_s1, %s11046_s12 }
  0xb6   : > { %p8450_p1 = scmp.lt.u32.totalorder %s8448_s0, %s8443_s25  ;;  %p8452_p10 = scmp.lt.u32.totalorder %s8443_s25, %s9301_s1 }
  0xb7   : > { %p8446_p8 = pnand %p8444_p6, %p9311_p2 }
  0xb8   : > { %p8451_p4 = por %p8450_p1, %p8449_p7 }
  0xb9   : > { %p8447_p12 = pneg %p8446_p8 }
  0xba   : > { %p8453_p11 = por %p8452_p10, %p8451_p4 }
  0xbc   : > { %p8454_p0 = pnand %p8453_p11, %p8447_p12 }
  0xbe   : > { %8457 = shalt.err (!%p8454_p0)
}
  0xbf   : > { %s8458_s28 = scalar_lea.vmem %s1063_s23, 16  ;;  %s8994_s29 = smov [#allocation9]  }
  0xc0   : > { %p8459_p5 = scmp.ne.s32.totalorder %s1063_s23, %s8458_s28  ;;  %s8463_s15 = sshll.u32 %s8994_s29, 4  ;;  %s8464_s15 = int_to_ptr.vmem [resolvable:$false] %s8463_s15 }
  0xc1   : > { %s8465_s19 = scalar_lea.vmem %s8464_s15, 32  ;;  %p8466_p6 = scmp.lt.s32.totalorder %s1063_s23, %s8464_s15 }
  0xc2   : > { %p8461_p9 = pnand %p8459_p5, %p9311_p2  ;;  %p8467_p8 = scmp.lt.s32.totalorder %s8465_s19, %s8458_s28 }
  0xc4   : > { %p8462_p3 = pneg %p8461_p9  ;;  %p8468_p13 = por %p8467_p8, %p8466_p6 }
  0xc6   : > { %p8469_p1 = pnand %p8468_p13, %p8462_p3 }
  0xc8   : > { %8472 = shalt.err (!%p8469_p1)
}
  0xc9   : > { %p11065_p7 = scmp.ne.s32.totalorder %s11062_s16, 0  ;;  %s9351_s10 = scalar_lea.hbm %s9101_s27, %s9286_s11 }
  0xca   : > { %s1093_s25 = scalar_lea.vmem [#allocation12], %s9283_s14  ;;  %s10978_s28 = scalar_lea.sflag [#allocation13], %s9280_s18 }
  0xcb   : > { %7739 = dma.hbm_to_vmem [thread:$0]  (!%p11065_p7), %s9301_s1, 16, %s1063_s23, %s10977_s21  }
  0xcc   : > { %s1100_s0 = sshll.u32 %s1093_s25, 4  ;;  %s8473_s29 = scalar_lea.hbm %s9351_s10, 16  ;;  %s1101_s0 = int_to_ptr.vmem [resolvable:$true] %s1100_s0 }
  0xcd   : > { %p8474_p13 = scmp.ne.s32.totalorder %s9351_s10, %s8473_s29  ;;  %s8478_s15 = scalar_lea.hbm %s9101_s27, 48 }
  0xce   : > { %p8479_p10 = scmp.lt.u32.totalorder %s9351_s10, %s9101_s27  ;;  %p8480_p11 = scmp.lt.u32.totalorder %s8478_s15, %s8473_s29 }
  0xcf   : > { %p8476_p12 = pnand %p8474_p13, %p9311_p2  ;;  %p8482_p5 = scmp.lt.u32.totalorder %s8473_s29, %s9351_s10 }
  0xd0   : > { %p8481_p0 = por %p8480_p11, %p8479_p10 }
  0xd1   : > { %p8477_p4 = pneg %p8476_p12 }
  0xd2   : > { %p8483_p9 = por %p8482_p5, %p8481_p0 }
  0xd4   : > { %p8484_p3 = pnand %p8483_p9, %p8477_p4 }
  0xd6   : > { %8487 = shalt.err (!%p8484_p3)
}
  0xd7   : > { %s8488_s1 = scalar_lea.vmem %s1101_s0, 16  ;;  %s8995_s23 = smov [#allocation12]  }
  0xd8   : > { %p8489_p6 = scmp.ne.s32.totalorder %s1101_s0, %s8488_s1  ;;  %s8493_s19 = sshll.u32 %s8995_s23, 4  ;;  %s8494_s19 = int_to_ptr.vmem [resolvable:$false] %s8493_s19 }
  0xd9   : > { %s8495_s25 = scalar_lea.vmem %s8494_s19, 32  ;;  %p8496_p13 = scmp.lt.s32.totalorder %s1101_s0, %s8494_s19 }
  0xda   : > { %p8491_p8 = pnand %p8489_p6, %p9311_p2  ;;  %p8497_p12 = scmp.lt.s32.totalorder %s8495_s25, %s8488_s1 }
  0xdc   : > { %p8492_p1 = pneg %p8491_p8  ;;  %p8498_p7 = por %p8497_p12, %p8496_p13 }
  0xde   : > { %p8499_p10 = pnand %p8498_p7, %p8492_p1 }
  0xe0   : > { %8502 = shalt.err (!%p8499_p10)
}
  0xe1   : > { %p11066_p11 = scmp.ne.s32.totalorder %s11062_s16, 0  ;;  %s9372_s29 = scalar_lea.hbm %s11047_s8, %s9286_s11 }
  0xe2   : > { %s1131_s15 = scalar_lea.vmem [#allocation15], %s9283_s14  ;;  %s9378_s23 = sshll.u32 %s9283_s14, 6 }
  0xe3   : > { %7745 = dma.hbm_to_vmem [thread:$0]  (!%p11066_p11), %s9351_s10, 16, %s1101_s0, %s10978_s28  }
  0xe4   : > { %s1138_s1 = sshll.u32 %s1131_s15, 4  ;;  %s10979_s19 = scalar_lea.sflag [#allocation16], %s9280_s18  ;;  %s9375_s1 = int_to_ptr.vmem [resolvable:$true] %s1138_s1 }
  0xe5   : > { %s8503_s25 = scalar_lea.hbm %s9372_s29, 16  ;;  %s8508_s21 = scalar_lea.hbm %s11047_s8, 48 }
  0xe6   : > { %p8504_p7 = scmp.ne.s32.totalorder %s9372_s29, %s8503_s25  ;;  %p8509_p5 = scmp.lt.u32.totalorder %s9372_s29, %s11047_s8 }
  0xe7   : > { %p8510_p9 = scmp.lt.u32.totalorder %s8508_s21, %s8503_s25  ;;  %p8512_p6 = scmp.lt.u32.totalorder %s8503_s25, %s9372_s29 }
  0xe8   : > { %p8506_p4 = pnand %p8504_p7, %p9311_p2 }
  0xe9   : > { %p8511_p3 = por %p8510_p9, %p8509_p5 }
  0xea   : > { %p8507_p0 = pneg %p8506_p4 }
  0xeb   : > { %p8513_p8 = por %p8512_p6, %p8511_p3 }
  0xed   : > { %p8514_p1 = pnand %p8513_p8, %p8507_p0 }
  0xef   : > { %8517 = shalt.err (!%p8514_p1)
}
  0xf0   : > { %s8518_s10 = scalar_lea.vmem %s9375_s1, 16  ;;  %s8996_s0 = smov [#allocation15]  }
  0xf1   : > { %p8519_p13 = scmp.ne.s32.totalorder %s9375_s1, %s8518_s10  ;;  %s8523_s15 = sshll.u32 %s8996_s0, 4  ;;  %s8524_s15 = int_to_ptr.vmem [resolvable:$false] %s8523_s15 }
  0xf2   : > { %s8525_s28 = scalar_lea.vmem %s8524_s15, 32  ;;  %p8526_p7 = scmp.lt.s32.totalorder %s9375_s1, %s8524_s15 }
  0xf3   : > { %p8521_p12 = pnand %p8519_p13, %p9311_p2  ;;  %p8527_p4 = scmp.lt.s32.totalorder %s8525_s28, %s8518_s10 }
  0xf5   : > { %p8522_p10 = pneg %p8521_p12  ;;  %p8528_p5 = por %p8527_p4, %p8526_p7 }
  0xf7   : > { %p8529_p9 = pnand %p8528_p5, %p8522_p10 }
  0xf9   : > { %8532 = shalt.err (!%p8529_p9)
}
  0xfa   : > { %7751 = dma.hbm_to_vmem [thread:$0]  (!%p11066_p11), %s9372_s29, 16, %s9375_s1, %s10979_s19  }
  0xfb   : > { %s9401_s21 = sshll.u32 %s8955_s2, 10  ;;  %s1182_s25 = scalar_lea.vmem [#allocation18], %s9378_s23 }
  0xfc   : > { %s9405_s28 = scalar_lea.hbm %s9131_s17, %s9401_s21  ;;  %s1189_s10 = sshll.u32 %s1182_s25, 4  ;;  %s9408_s10 = int_to_ptr.vmem [resolvable:$true] %s1189_s10 }
  0xfd   : > { %s10982_s0 = scalar_lea.sflag [#allocation19], %s9280_s18  ;;  %s8533_s15 = scalar_lea.hbm %s9405_s28, 1024 }
  0xfe   : > { %p8534_p0 = scmp.ne.s32.totalorder %s9405_s28, %s8533_s15  ;;  %s8538_s29 = scalar_lea.hbm %s9131_s17, 3072 }
  0xff   : > { %p8539_p8 = scmp.lt.u32.totalorder %s9405_s28, %s9131_s17  ;;  %p8540_p1 = scmp.lt.u32.totalorder %s8538_s29, %s8533_s15 }
 0x100   : > { %p8536_p3 = pnand %p8534_p0, %p9311_p2  ;;  %p8542_p12 = scmp.lt.u32.totalorder %s8533_s15, %s9405_s28 }
 0x101   : > { %p8541_p13 = por %p8540_p1, %p8539_p8 }
 0x102   : > { %p8537_p6 = pneg %p8536_p3 }
 0x103   : > { %p8543_p10 = por %p8542_p12, %p8541_p13 }
 0x105   : > { %p8544_p7 = pnand %p8543_p10, %p8537_p6 }
 0x107   : > { %8547 = shalt.err (!%p8544_p7)
}
 0x108   : > { %s8548_s2 = scalar_lea.vmem %s9408_s10, 1024  ;;  %s8997_s1 = smov [#allocation18]  }
 0x109   : > { %p8549_p4 = scmp.ne.s32.totalorder %s9408_s10, %s8548_s2  ;;  %s8553_s25 = sshll.u32 %s8997_s1, 4  ;;  %s8554_s25 = int_to_ptr.vmem [resolvable:$false] %s8553_s25 }
 0x10a   : > { %s8555_s19 = scalar_lea.vmem %s8554_s25, 2048  ;;  %p8556_p0 = scmp.lt.s32.totalorder %s9408_s10, %s8554_s25 }
 0x10b   : > { %p8551_p5 = pnand %p8549_p4, %p9311_p2  ;;  %p8557_p3 = scmp.lt.s32.totalorder %s8555_s19, %s8548_s2 }
 0x10d   : > { %p8552_p9 = pneg %p8551_p5  ;;  %p8558_p8 = por %p8557_p3, %p8556_p0 }
 0x10f   : > { %p8559_p1 = pnand %p8558_p8, %p8552_p9 }
 0x111   : > { %8562 = shalt.err (!%p8559_p1)
}
 0x112   : > { %s11067_s15 = smov 4   ;;  %s11068_s29 = smov 64  }
 0x113   : > { %7757 = dma.hbm_to_vmem [thread:$0]  (!%p11066_p11), %s9405_s28, 1024, %s9408_s10, %s10982_s0, %s11068_s29, %s11068_s29, %s11067_s15  }
 0x114   : > { %s9435_s19 = scalar_lea.hbm %s9141_s13, %s9401_s21  ;;  %s1220_s2 = scalar_lea.vmem [#allocation21], %s9378_s23 }
 0x115   : > { %s1227_s1 = sshll.u32 %s1220_s2, 4  ;;  %s1217_s25 = scalar_lea.sflag [#allocation22], %s9280_s18  ;;  %s9438_s1 = int_to_ptr.vmem [resolvable:$true] %s1227_s1 }
 0x116   : > { %s8563_s8 = scalar_lea.hbm %s9435_s19, 1024  ;;  %s8568_s12 = scalar_lea.hbm %s9141_s13, 3072 }
 0x117   : > { %p8564_p6 = scmp.ne.s32.totalorder %s9435_s19, %s8563_s8  ;;  %p8569_p10 = scmp.lt.u32.totalorder %s9435_s19, %s9141_s13 }
 0x118   : > { %p8570_p7 = scmp.lt.u32.totalorder %s8568_s12, %s8563_s8  ;;  %p8572_p5 = scmp.lt.u32.totalorder %s8563_s8, %s9435_s19 }
 0x119   : > { %p8566_p13 = pnand %p8564_p6, %p9311_p2 }
 0x11a   : > { %p8571_p4 = por %p8570_p7, %p8569_p10 }
 0x11b   : > { %p8567_p12 = pneg %p8566_p13 }
 0x11c   : > { %p8573_p9 = por %p8572_p5, %p8571_p4 }
 0x11e   : > { %p8574_p0 = pnand %p8573_p9, %p8567_p12 }
 0x120   : > { %8577 = shalt.err (!%p8574_p0)
}
 0x121   : > { %s8578_s28 = scalar_lea.vmem %s9438_s1, 1024  ;;  %s8998_s10 = smov [#allocation21]  }
 0x122   : > { %p8579_p3 = scmp.ne.s32.totalorder %s9438_s1, %s8578_s28  ;;  %s8583_s2 = sshll.u32 %s8998_s10, 4  ;;  %s8584_s2 = int_to_ptr.vmem [resolvable:$false] %s8583_s2 }
 0x123   : > { %s8585_s0 = scalar_lea.vmem %s8584_s2, 2048  ;;  %p8586_p6 = scmp.lt.s32.totalorder %s9438_s1, %s8584_s2 }
 0x124   : > { %p8581_p8 = pnand %p8579_p3, %p9311_p2  ;;  %p8587_p13 = scmp.lt.s32.totalorder %s8585_s0, %s8578_s28 }
 0x126   : > { %p8582_p1 = pneg %p8581_p8  ;;  %p8588_p10 = por %p8587_p13, %p8586_p6 }
 0x128   : > { %p8589_p7 = pnand %p8588_p10, %p8582_p1 }
 0x12a   : > { %8592 = shalt.err (!%p8589_p7)
}
 0x12b   : > { %7763 = dma.hbm_to_vmem [thread:$0]  (!%p11066_p11), %s9435_s19, 1024, %s9438_s1, %s1217_s25, %s11068_s29, %s11068_s29, %s11067_s15  }
 0x12c   : > { %s8999_s8 = smov [#allocation4]   ;;  %s9000_s0 = smov [#allocation26]  }
 0x12d   : > { %s895_s12 = sshll.u32 %s8999_s8, 4  ;;  %s943_s28 = sshll.u32 %s9000_s0, 4  ;;  %s896_s12 = int_to_ptr.vmem [resolvable:$true] %s895_s12  ;;  %s944_s28 = int_to_ptr.vmem [resolvable:$true] %s943_s28 }
 0x12e   : > { %s8593_s10 = scalar_lea.hbm %s9026_s9, 128  ;;  %p11069_p4 = scmp.ne.s32.totalorder %s11056_s26, 0 }
 0x12f   : > { %p8594_p12 = scmp.ne.s32.totalorder %s9026_s9, %s8593_s10  ;;  %p8600_p0 = scmp.lt.u32.totalorder %s8593_s10, %s9026_s9 }
 0x131   : > { %p8596_p5 = pnand %p8594_p12, %p11069_p4 }
 0x133   : > { %p8597_p9 = pneg %p8596_p5 }
 0x135   : > { %p8602_p3 = pnand %p8600_p0, %p8597_p9 }
 0x137   : > { %8605 = shalt.err (!%p8602_p3)
}
 0x138   : > { %s8606_s2 = scalar_lea.vmem %s896_s12, 128  ;;  %p8614_p13 = scmp.lt.s32.totalorder %s896_s12, %s896_s12 }
 0x139   : > { %p8607_p8 = scmp.ne.s32.totalorder %s896_s12, %s8606_s2  ;;  %p8615_p10 = scmp.lt.s32.totalorder %s8606_s2, %s8606_s2 }
 0x13b   : > { %p8609_p1 = pnand %p8607_p8, %p11069_p4  ;;  %p8616_p7 = por %p8615_p10, %p8614_p13 }
 0x13d   : > { %p8610_p6 = pneg %p8609_p1 }
 0x13f   : > { %p8617_p11 = pnand %p8616_p7, %p8610_p6 }
 0x141   : > { %8620 = shalt.err (!%p8617_p11)
}
 0x142   : > { %p11070_p2 = scmp.ne.s32.totalorder %s11055_s22, 0  ;;  %s8621_s19 = scalar_lea.hbm %s11045_s3, 16 }
 0x143   : > { %p8622_p12 = scmp.ne.s32.totalorder %s11045_s3, %s8621_s19  ;;  %p8628_p0 = scmp.lt.u32.totalorder %s8621_s19, %s11045_s3 }
 0x144   : > { %7714 = dma.hbm_to_vmem [thread:$0]  (!%p11070_p2), %s9026_s9, 128, %s896_s12, [#allocation5], %s11068_s29, %s11068_s29, %s11067_s15  }
 0x145   : > { %p8624_p5 = pnand %p8622_p12, %p11069_p4 }
 0x147   : > { %p8625_p9 = pneg %p8624_p5 }
 0x149   : > { %p8630_p3 = pnand %p8628_p0, %p8625_p9 }
 0x14b   : > { %8633 = shalt.err (!%p8630_p3)
}
 0x14c   : > { %s8634_s1 = scalar_lea.vmem %s944_s28, 16  ;;  %s8641_s8 = scalar_lea.vmem %s944_s28, 32 }
 0x14d   : > { %p8635_p11 = scmp.ne.s32.totalorder %s944_s28, %s8634_s1  ;;  %p8642_p6 = scmp.lt.s32.totalorder %s944_s28, %s944_s28 }
 0x14e   : > { %p8643_p13 = scmp.lt.s32.totalorder %s8641_s8, %s8634_s1 }
 0x14f   : > { %p8637_p8 = pnand %p8635_p11, %p11069_p4 }
 0x150   : > { %p8644_p10 = por %p8643_p13, %p8642_p6 }
 0x151   : > { %p8638_p1 = pneg %p8637_p8 }
 0x153   : > { %p8645_p7 = pnand %p8644_p10, %p8638_p1 }
 0x155   : > { %8648 = shalt.err (!%p8645_p7)
}
 0x156   : > { %7720 = dma.hbm_to_vmem [thread:$0]  (!%p11070_p2), %s11045_s3, 16, %s944_s28, [#allocation25]  }
 0x157   : > { %s9001_s12 = smov [#allocation29]   ;;  %s9002_s10 = smov [#allocation30]  }
 0x158   : > { %s967_s0 = sshll.u32 %s9001_s12, 4  ;;  %s981_s2 = sshll.u32 %s9002_s10, 4  ;;  %s968_s0 = int_to_ptr.vmem [resolvable:$true] %s967_s0  ;;  %s982_s2 = int_to_ptr.vmem [resolvable:$true] %s981_s2 }
 0x159   : > { %s8649_s19 = scalar_lea.hbm %s9171_s24, 2048 }
 0x15a   : > { %p8650_p12 = scmp.ne.s32.totalorder %s9171_s24, %s8649_s19  ;;  %p8656_p0 = scmp.lt.u32.totalorder %s8649_s19, %s9171_s24 }
 0x15c   : > { %p8652_p5 = pnand %p8650_p12, %p11069_p4 }
 0x15e   : > { %p8653_p9 = pneg %p8652_p5 }
 0x160   : > { %p8658_p3 = pnand %p8656_p0, %p8653_p9 }
 0x162   : > { %8661 = shalt.err (!%p8658_p3)
}
 0x163   : > { %s8662_s1 = scalar_lea.vmem %s968_s0, 2048  ;;  %p8670_p6 = scmp.lt.s32.totalorder %s968_s0, %s968_s0 }
 0x164   : > { %p8663_p11 = scmp.ne.s32.totalorder %s968_s0, %s8662_s1  ;;  %p8671_p13 = scmp.lt.s32.totalorder %s8662_s1, %s8662_s1 }
 0x166   : > { %p8665_p8 = pnand %p8663_p11, %p11069_p4  ;;  %p8672_p10 = por %p8671_p13, %p8670_p6 }
 0x168   : > { %p8666_p1 = pneg %p8665_p8 }
 0x16a   : > { %p8673_p7 = pnand %p8672_p10, %p8666_p1 }
 0x16c   : > { %8676 = shalt.err (!%p8673_p7)
}
 0x16d   : > { %7726 = dma.hbm_to_vmem [thread:$0]  (!%p11070_p2), %s9171_s24, 2048, %s968_s0, [#allocation28], %s11068_s29, %s11068_s29, %s11067_s15  }
 0x16e   : > { %s8677_s28 = scalar_lea.hbm %s11043_s5, 16 }
 0x16f   : > { %p8678_p12 = scmp.ne.s32.totalorder %s11043_s5, %s8677_s28  ;;  %p8684_p0 = scmp.lt.u32.totalorder %s8677_s28, %s11043_s5 }
 0x171   : > { %p8680_p5 = pnand %p8678_p12, %p11069_p4 }
 0x173   : > { %p8681_p9 = pneg %p8680_p5 }
 0x175   : > { %p8686_p3 = pnand %p8684_p0, %p8681_p9 }
 0x177   : > { %8689 = shalt.err (!%p8686_p3)
}
 0x178   : > { %s8690_s8 = scalar_lea.vmem %s982_s2, 16  ;;  %s8697_s12 = scalar_lea.vmem %s982_s2, 32 }
 0x179   : > { %p8691_p11 = scmp.ne.s32.totalorder %s982_s2, %s8690_s8  ;;  %p8698_p6 = scmp.lt.s32.totalorder %s982_s2, %s982_s2 }
 0x17a   : > { %p8699_p13 = scmp.lt.s32.totalorder %s8697_s12, %s8690_s8 }
 0x17b   : > { %p8693_p8 = pnand %p8691_p11, %p11069_p4 }
 0x17c   : > { %p8700_p10 = por %p8699_p13, %p8698_p6 }
 0x17d   : > { %p8694_p1 = pneg %p8693_p8 }
 0x17f   : > { %p8701_p7 = pnand %p8700_p10, %p8694_p1 }
 0x181   : > { %8704 = shalt.err (!%p8701_p7)
}
 0x182   : > { %7729 = dma.hbm_to_vmem [thread:$0]  (!%p11070_p2), %s11043_s5, 16, %s982_s2, [#allocation31]  }
 0x183   : > { %s9511_s0 = scalar_lea.hbm %s11042_s6, %s9401_s21  ;;  %s1035_s26 = scalar_lea.vmem [#allocation8], %s9378_s23 }
 0x184   : > { %s1042_s10 = sshll.u32 %s1035_s26, 4  ;;  %s8705_s19 = scalar_lea.hbm %s9511_s0, 1024  ;;  %s9514_s10 = int_to_ptr.vmem [resolvable:$true] %s1042_s10 }
 0x185   : > { %p8706_p4 = scmp.ne.s32.totalorder %s9511_s0, %s8705_s19  ;;  %p11071_p12 = scmp.ne.s32.totalorder %s11063_s7, 0 }
 0x186   : > { %s8710_s22 = scalar_lea.hbm %s11042_s6, 3072  ;;  %p8711_p0 = scmp.lt.u32.totalorder %s9511_s0, %s11042_s6 }
 0x187   : > { %p8708_p5 = pnand %p8706_p4, %p11071_p12  ;;  %p8712_p3 = scmp.lt.u32.totalorder %s8710_s22, %s8705_s19 }
 0x188   : > { %p8714_p2 = scmp.lt.u32.totalorder %s8705_s19, %s9511_s0 }
 0x189   : > { %p8709_p9 = pneg %p8708_p5  ;;  %p8713_p11 = por %p8712_p3, %p8711_p0 }
 0x18b   : > { %p8715_p8 = por %p8714_p2, %p8713_p11 }
 0x18d   : > { %p8716_p1 = pnand %p8715_p8, %p8709_p9 }
 0x18f   : > { %8719 = shalt.err (!%p8716_p1)
}
 0x190   : > { %s8720_s2 = scalar_lea.vmem %s9514_s10, 1024  ;;  %s9003_s1 = smov [#allocation8]  }
 0x191   : > { %p8721_p6 = scmp.ne.s32.totalorder %s9514_s10, %s8720_s2  ;;  %s8725_s28 = sshll.u32 %s9003_s1, 4  ;;  %s8726_s28 = int_to_ptr.vmem [resolvable:$false] %s8725_s28 }
 0x192   : > { %s8727_s8 = scalar_lea.vmem %s8726_s28, 2048  ;;  %p8728_p7 = scmp.lt.s32.totalorder %s9514_s10, %s8726_s28 }
 0x193   : > { %p8723_p13 = pnand %p8721_p6, %p11071_p12  ;;  %p8729_p4 = scmp.lt.s32.totalorder %s8727_s8, %s8720_s2 }
 0x195   : > { %p8724_p10 = pneg %p8723_p13  ;;  %p8730_p5 = por %p8729_p4, %p8728_p7 }
 0x197   : > { %p8731_p0 = pnand %p8730_p5, %p8724_p10 }
 0x199   : > { %8734 = shalt.err (!%p8731_p0)
}
 0x19a   : > { %p11072_p9 = scmp.ne.s32.totalorder %s11062_s16, 0  ;;  %s11073_s12 = scalar_lea.sflag [#allocation7], %s9280_s18 }
 0x19b   : > { %s9540_s26 = scalar_lea.hbm %s9096_s20, %s9401_s21  ;;  %s1073_s19 = scalar_lea.vmem [#allocation11], %s9378_s23 }
 0x19c   : > { %7736 = dma.hbm_to_vmem [thread:$0]  (!%p11072_p9), %s9511_s0, 1024, %s9514_s10, %s11073_s12, %s11068_s29, %s11068_s29, %s11067_s15  }
 0x19d   : > { %s1080_s22 = sshll.u32 %s1073_s19, 4  ;;  %s8735_s2 = scalar_lea.hbm %s9540_s26, 1024  ;;  %s9543_s22 = int_to_ptr.vmem [resolvable:$true] %s1080_s22 }
 0x19e   : > { %p8736_p3 = scmp.ne.s32.totalorder %s9540_s26, %s8735_s2  ;;  %s8740_s1 = scalar_lea.hbm %s9096_s20, 3072 }
 0x19f   : > { %p8741_p8 = scmp.lt.u32.totalorder %s9540_s26, %s9096_s20  ;;  %p8742_p1 = scmp.lt.u32.totalorder %s8740_s1, %s8735_s2 }
 0x1a0   : > { %p8738_p11 = pnand %p8736_p3, %p11071_p12  ;;  %p8744_p13 = scmp.lt.u32.totalorder %s8735_s2, %s9540_s26 }
 0x1a1   : > { %p8743_p6 = por %p8742_p1, %p8741_p8 }
 0x1a2   : > { %p8739_p2 = pneg %p8738_p11 }
 0x1a3   : > { %p8745_p10 = por %p8744_p13, %p8743_p6 }
 0x1a5   : > { %p8746_p7 = pnand %p8745_p10, %p8739_p2 }
 0x1a7   : > { %8749 = shalt.err (!%p8746_p7)
}
 0x1a8   : > { %s8750_s0 = scalar_lea.vmem %s9543_s22, 1024  ;;  %s9004_s10 = smov [#allocation11]  }
 0x1a9   : > { %p8751_p4 = scmp.ne.s32.totalorder %s9543_s22, %s8750_s0  ;;  %s8755_s28 = sshll.u32 %s9004_s10, 4  ;;  %s8756_s28 = int_to_ptr.vmem [resolvable:$false] %s8755_s28 }
 0x1aa   : > { %s8757_s8 = scalar_lea.vmem %s8756_s28, 2048  ;;  %p8758_p3 = scmp.lt.s32.totalorder %s9543_s22, %s8756_s28 }
 0x1ab   : > { %p8753_p5 = pnand %p8751_p4, %p11071_p12  ;;  %p8759_p11 = scmp.lt.s32.totalorder %s8757_s8, %s8750_s0 }
 0x1ad   : > { %p8754_p0 = pneg %p8753_p5  ;;  %p8760_p8 = por %p8759_p11, %p8758_p3 }
 0x1af   : > { %p8761_p1 = pnand %p8760_p8, %p8754_p0 }
 0x1b1   : > { %8764 = shalt.err (!%p8761_p1)
}
 0x1b2   : > { %s11074_s12 = scalar_lea.sflag [#allocation10], %s9280_s18  ;;  %s9569_s19 = scalar_lea.hbm %s11044_s4, %s9401_s21 }
 0x1b3   : > { %7742 = dma.hbm_to_vmem [thread:$0]  (!%p11072_p9), %s9540_s26, 1024, %s9543_s22, %s11074_s12, %s11068_s29, %s11068_s29, %s11067_s15  }
 0x1b4   : > { %s1111_s2 = scalar_lea.vmem [#allocation14], %s9378_s23  ;;  %s8765_s0 = scalar_lea.hbm %s9569_s19, 1024 }
 0x1b5   : > { %s1118_s1 = sshll.u32 %s1111_s2, 4  ;;  %p8766_p2 = scmp.ne.s32.totalorder %s9569_s19, %s8765_s0  ;;  %s9572_s1 = int_to_ptr.vmem [resolvable:$true] %s1118_s1 }
 0x1b6   : > { %s8770_s10 = scalar_lea.hbm %s11044_s4, 3072  ;;  %p8771_p10 = scmp.lt.u32.totalorder %s9569_s19, %s11044_s4 }
 0x1b7   : > { %p8768_p6 = pnand %p8766_p2, %p11071_p12  ;;  %p8772_p7 = scmp.lt.u32.totalorder %s8770_s10, %s8765_s0 }
 0x1b8   : > { %p8774_p5 = scmp.lt.u32.totalorder %s8765_s0, %s9569_s19 }
 0x1b9   : > { %p8769_p13 = pneg %p8768_p6  ;;  %p8773_p4 = por %p8772_p7, %p8771_p10 }
 0x1bb   : > { %p8775_p0 = por %p8774_p5, %p8773_p4 }
 0x1bd   : > { %p8776_p3 = pnand %p8775_p0, %p8769_p13 }
 0x1bf   : > { %8779 = shalt.err (!%p8776_p3)
}
 0x1c0   : > { %s8780_s26 = scalar_lea.vmem %s9572_s1, 1024  ;;  %s9005_s22 = smov [#allocation14]  }
 0x1c1   : > { %p8781_p11 = scmp.ne.s32.totalorder %s9572_s1, %s8780_s26  ;;  %s8785_s28 = sshll.u32 %s9005_s22, 4  ;;  %s8786_s28 = int_to_ptr.vmem [resolvable:$false] %s8785_s28 }
 0x1c2   : > { %s8787_s8 = scalar_lea.vmem %s8786_s28, 2048  ;;  %p8788_p2 = scmp.lt.s32.totalorder %s9572_s1, %s8786_s28 }
 0x1c3   : > { %p8783_p8 = pnand %p8781_p11, %p11071_p12  ;;  %p8789_p6 = scmp.lt.s32.totalorder %s8787_s8, %s8780_s26 }
 0x1c5   : > { %p8784_p1 = pneg %p8783_p8  ;;  %p8790_p10 = por %p8789_p6, %p8788_p2 }
 0x1c7   : > { %p8791_p7 = pnand %p8790_p10, %p8784_p1 }
 0x1c9   : > { %8794 = shalt.err (!%p8791_p7)
}
 0x1ca   : > { %s11075_s12 = scalar_lea.sflag [#allocation13], %s9280_s18  ;;  %s11076_s2 = sld [smem:[#allocation59_spill]] }
 0x1cb   : > { %7748 = dma.hbm_to_vmem [thread:$0]  (!%p11072_p9), %s9569_s19, 1024, %s9572_s1, %s11075_s12, %s11068_s29, %s11068_s29, %s11067_s15  }
 0x1cc   : > { %s1161_s26 = scalar_lea.vmem [#allocation17], %s9378_s23 }
 0x1cd   : > { %s1168_s22 = sshll.u32 %s1161_s26, 4  ;;  %s9601_s22 = int_to_ptr.vmem [resolvable:$true] %s1168_s22 }
 0x1d0   : > { %s11077_s10 = smov %s11076_s2  ;;  %s9598_s0 = scalar_lea.hbm %s11076_s2, %s9401_s21 }
 0x1d1   : > { %s8795_s28 = scalar_lea.hbm %s9598_s0, 1024  ;;  %s8800_s8 = scalar_lea.hbm %s11077_s10, 3072 }
 0x1d2   : > { %p8796_p13 = scmp.ne.s32.totalorder %s9598_s0, %s8795_s28  ;;  %p8801_p0 = scmp.lt.u32.totalorder %s9598_s0, %s11077_s10 }
 0x1d3   : > { %p8802_p3 = scmp.lt.u32.totalorder %s8800_s8, %s8795_s28  ;;  %p8804_p8 = scmp.lt.u32.totalorder %s8795_s28, %s9598_s0 }
 0x1d4   : > { %p8798_p4 = pnand %p8796_p13, %p11071_p12 }
 0x1d5   : > { %p8803_p11 = por %p8802_p3, %p8801_p0 }
 0x1d6   : > { %p8799_p5 = pneg %p8798_p4 }
 0x1d7   : > { %p8805_p1 = por %p8804_p8, %p8803_p11 }
 0x1d9   : > { %p8806_p2 = pnand %p8805_p1, %p8799_p5 }
 0x1db   : > { %8809 = shalt.err (!%p8806_p2)
}
 0x1dc   : > { %s8810_s23 = scalar_lea.vmem %s9601_s22, 1024  ;;  %s9006_s21 = smov [#allocation17]  }
 0x1dd   : > { %p8811_p6 = scmp.ne.s32.totalorder %s9601_s22, %s8810_s23  ;;  %s8815_s19 = sshll.u32 %s9006_s21, 4  ;;  %s8816_s19 = int_to_ptr.vmem [resolvable:$false] %s8815_s19 }
 0x1de   : > { %s8817_s1 = scalar_lea.vmem %s8816_s19, 2048  ;;  %p8818_p13 = scmp.lt.s32.totalorder %s9601_s22, %s8816_s19 }
 0x1df   : > { %p8813_p10 = pnand %p8811_p6, %p11071_p12  ;;  %p8819_p4 = scmp.lt.s32.totalorder %s8817_s1, %s8810_s23 }
 0x1e1   : > { %p8814_p7 = pneg %p8813_p10  ;;  %p8820_p0 = por %p8819_p4, %p8818_p13 }
 0x1e3   : > { %p8821_p3 = pnand %p8820_p0, %p8814_p7 }
 0x1e5   : > { %8824 = shalt.err (!%p8821_p3)
}
 0x1e6   : > { %s11078_s12 = scalar_lea.sflag [#allocation16], %s9280_s18  ;;  %s11079_s2 = sld [smem:[#allocation60_spill]] }
 0x1e7   : > { %7754 = dma.hbm_to_vmem [thread:$0]  (!%p11072_p9), %s9598_s0, 1024, %s9601_s22, %s11078_s12, %s11068_s29, %s11068_s29, %s11067_s15  }
 0x1e8   : > { %s1202_s8 = scalar_lea.vmem [#allocation20], %s9283_s14 }
 0x1e9   : > { %s1209_s23 = sshll.u32 %s1202_s8, 4  ;;  %s1210_s23 = int_to_ptr.vmem [resolvable:$true] %s1209_s23 }
 0x1ec   : > { %s11080_s26 = smov %s11079_s2  ;;  %s9627_s28 = scalar_lea.hbm %s11079_s2, %s9286_s11 }
 0x1ed   : > { %s8825_s21 = scalar_lea.hbm %s9627_s28, 16  ;;  %s8830_s19 = scalar_lea.hbm %s11080_s26, 48 }
 0x1ee   : > { %p8826_p5 = scmp.ne.s32.totalorder %s9627_s28, %s8825_s21  ;;  %p8831_p1 = scmp.lt.u32.totalorder %s9627_s28, %s11080_s26 }
 0x1ef   : > { %p8832_p2 = scmp.lt.u32.totalorder %s8830_s19, %s8825_s21  ;;  %p8834_p10 = scmp.lt.u32.totalorder %s8825_s21, %s9627_s28 }
 0x1f0   : > { %p8828_p11 = pnand %p8826_p5, %p11071_p12 }
 0x1f1   : > { %p8833_p6 = por %p8832_p2, %p8831_p1 }
 0x1f2   : > { %p8829_p8 = pneg %p8828_p11 }
 0x1f3   : > { %p8835_p7 = por %p8834_p10, %p8833_p6 }
 0x1f5   : > { %p8836_p13 = pnand %p8835_p7, %p8829_p8 }
 0x1f7   : > { %8839 = shalt.err (!%p8836_p13)
}
 0x1f8   : > { %s8840_s15 = scalar_lea.vmem %s1210_s23, 16  ;;  %s9007_s29 = smov [#allocation20]  }
 0x1f9   : > { %p8841_p4 = scmp.ne.s32.totalorder %s1210_s23, %s8840_s15  ;;  %s8845_s0 = sshll.u32 %s9007_s29, 4  ;;  %s8846_s0 = int_to_ptr.vmem [resolvable:$false] %s8845_s0 }
 0x1fa   : > { %s8847_s22 = scalar_lea.vmem %s8846_s0, 32  ;;  %p8848_p5 = scmp.lt.s32.totalorder %s1210_s23, %s8846_s0 }
 0x1fb   : > { %p8843_p0 = pnand %p8841_p4, %p11071_p12  ;;  %p8849_p11 = scmp.lt.s32.totalorder %s8847_s22, %s8840_s15 }
 0x1fd   : > { %p8844_p3 = pneg %p8843_p0  ;;  %p8850_p9 = por %p8849_p11, %p8848_p5 }
 0x1ff   : > { %p8851_p1 = pnand %p8850_p9, %p8844_p3 }
 0x201   : > { %8854 = shalt.err (!%p8851_p1)
}
 0x202   : > { %p11081_p2 = scmp.ne.s32.totalorder %s11062_s16, 0  ;;  %s11082_s1 = scalar_lea.sflag [#allocation19], %s9280_s18 }
 0x203   : > { %s11083_s12 = sld [smem:[#allocation61_spill]]  ;;  %s1240_s8 = scalar_lea.vmem [#allocation23], %s9283_s14 }
 0x204   : > { %7760 = dma.hbm_to_vmem [thread:$0]  (!%p11081_p2), %s9627_s28, 16, %s1210_s23, %s11082_s1  }
 0x205   : > { %s1247_s21 = sshll.u32 %s1240_s8, 4  ;;  %s1248_s21 = int_to_ptr.vmem [resolvable:$true] %s1247_s21 }
 0x209   : > { %s9647_s2 = scalar_lea.hbm %s11083_s12, %s9286_s11  ;;  %s8860_s15 = scalar_lea.hbm %s11083_s12, 48 }
 0x20a   : > { %s8855_s19 = scalar_lea.hbm %s9647_s2, 16  ;;  %p8861_p10 = scmp.lt.u32.totalorder %s9647_s2, %s11083_s12 }
 0x20b   : > { %p8856_p9 = scmp.ne.s32.totalorder %s9647_s2, %s8855_s19  ;;  %p8862_p7 = scmp.lt.u32.totalorder %s8860_s15, %s8855_s19 }
 0x20c   : > { %p8864_p4 = scmp.lt.u32.totalorder %s8855_s19, %s9647_s2 }
 0x20d   : > { %p8858_p8 = pnand %p8856_p9, %p11071_p12  ;;  %p8863_p13 = por %p8862_p7, %p8861_p10 }
 0x20f   : > { %p8859_p6 = pneg %p8858_p8  ;;  %p8865_p0 = por %p8864_p4, %p8863_p13 }
 0x211   : > { %p8866_p3 = pnand %p8865_p0, %p8859_p6 }
 0x213   : > { %8869 = shalt.err (!%p8866_p3)
}
 0x214   : > { %s8870_s11 = scalar_lea.vmem %s1248_s21, 16  ;;  %s9008_s14 = smov [#allocation23]  }
 0x215   : > { %p8871_p5 = scmp.ne.s32.totalorder %s1248_s21, %s8870_s11  ;;  %s8875_s28 = sshll.u32 %s9008_s14, 4  ;;  %s8876_s28 = int_to_ptr.vmem [resolvable:$false] %s8875_s28 }
 0x216   : > { %s8877_s23 = scalar_lea.vmem %s8876_s28, 32  ;;  %p8878_p9 = scmp.lt.s32.totalorder %s1248_s21, %s8876_s28 }
 0x217   : > { %p8873_p11 = pnand %p8871_p5, %p11071_p12  ;;  %p8879_p8 = scmp.lt.s32.totalorder %s8877_s23, %s8870_s11 }
 0x219   : > { %p8874_p1 = pneg %p8873_p11  ;;  %p8880_p2 = por %p8879_p8, %p8878_p9 }
 0x21b   : > { %p8881_p7 = pnand %p8880_p2, %p8874_p1 }
 0x21d   : > { %8884 = shalt.err (!%p8881_p7)
}
 0x21e   : > { %p11084_p10 = scmp.ne.s32.totalorder %s11062_s16, 0  ;;  %s11085_s29 = sld [smem:[#allocation71_spill]] }
 0x220   : > { %7766 = dma.hbm_to_vmem [thread:$0]  (!%p11084_p10), %s9647_s2, 16, %s1248_s21, %s1217_s25  }
 0x224   : > { %p11086_p6 = scmp.ne.s32.totalorder %s11085_s29, 0 }
 0x226   : > { %1256 = sbr.rel (%p11086_p6) target bundleno = 3788 (0xecc), region = 148 }
 0x22d   : > { %s11087_s7 = sld [smem:[#allocation70_spill]] }
 0x233   : > { %p11088_p12 = scmp.eq.s32.totalorder %s11087_s7, 0 }
 0x235   : > { %8902 = dma.done.wait (%p11088_p12), [#allocation5], 128   ;;  %p11089_p13 = pmov %p11088_p12 }
 0x236   : > { %s11090_s0 = sld [smem:[#allocation68_spill]]  ;;  %s11091_s22 = sld [smem:[#allocation74_spill]] }
 0x237   : > { %8904 = vsyncadd (%p11089_p13), [#allocation5], 4294967168  ;;  %s9672_s1 = sand.u32 1, %s11087_s7  }
 0x238   : > { %s1263_s18 = scalar_lea.sflag [#allocation7], %s9672_s1 }
 0x23c   : > { %s9675_s16 = sand.u32 1, %s11090_s0   ;;  %p11092_p2 = scmp.ne.s32.totalorder %s11091_s22, 0 }
 0x23e   : > { %8906 = dma.done.wait (%p11092_p2), %s1263_s18, 1040  }
 0x23f   : > { %8908 = vsyncadd (%p11092_p2), %s1263_s18, 4294966256  ;;  %s6424_s2 = sshll.u32 %s9675_s16, 6  ;;  %s1280_s21 = scalar_lea.sflag [#allocation10], %s9672_s1 }
 0x240   : > { %s9684_s8 = scalar_lea.vmem [#allocation8], %s6424_s2 }
 0x241   : > { %8910 = dma.done.wait (%p11092_p2), %s1280_s21, 1040  }
 0x242   : > { %8912 = vsyncadd (%p11092_p2), %s1280_s21, 4294966256  ;;  %s9692_s15 = scalar_lea.vmem [#allocation11], %s6424_s2  ;;  %s1297_s11 = scalar_lea.sflag [#allocation13], %s9672_s1 }
 0x243   : > { %8914 = dma.done.wait (%p11092_p2), %s1297_s11, 1040  }
 0x244   : > { %8916 = vsyncadd (%p11092_p2), %s1297_s11, 4294966256  ;;  %s9700_s28 = scalar_lea.vmem [#allocation14], %s6424_s2  ;;  %s1314_s23 = scalar_lea.sflag [#allocation16], %s9672_s1 }
 0x245   : > { %8918 = dma.done.wait (%p11092_p2), %s1314_s23, 1040  }
 0x246   : > { %8920 = vsyncadd (%p11092_p2), %s1314_s23, 4294966256  ;;  %s9708_s0 = scalar_lea.vmem [#allocation17], %s6424_s2  ;;  %s1331_s18 = scalar_lea.sflag [#allocation19], %s9672_s1 }
 0x247   : > { %s9711_s21 = scalar_lea.vmem [#allocation18], %s6424_s2 }
 0x248   : > { %8922 = dma.done.wait (%p11092_p2), %s1331_s18, 1040  }
 0x249   : > { %8924 = vsyncadd (%p11092_p2), %s1331_s18, 4294966256  ;;  %s1348_s29 = scalar_lea.sflag [#allocation22], %s9672_s1  ;;  %s9719_s14 = scalar_lea.vmem [#allocation21], %s6424_s2 }
 0x24a   : > { %8926 = dma.done.wait (%p11092_p2), %s1348_s29, 1040  }
 0x24b   : > { %8928 = vsyncadd (%p11092_p2), %s1348_s29, 4294966256  ;;  %p11093_p4 = pmov %p11088_p12 }
 0x24d   : > { %8930 = dma.done.wait (%p11093_p4), [#allocation25], 1040   ;;  %p11094_p0 = pmov %p11093_p4 }
 0x24f   : > { %8932 = vsyncadd (%p11094_p0), [#allocation25], 4294966256  ;;  %p11095_p3 = pmov %p11094_p0 }
 0x250   : > { %p11096_p5 = pmov %p11094_p0 }
 0x251   : > { %8934 = dma.done.wait (%p11095_p3), [#allocation28], 2080  }
 0x252   : > { %8936 = vsyncadd (%p11096_p5), [#allocation28], 4294965216  ;;  %p11097_p11 = pmov %p11094_p0 }
 0x253   : > { %p11098_p1 = pmov %p11094_p0 }
 0x254   : > { %8938 = dma.done.wait (%p11097_p11), [#allocation31], 16  }
 0x255   : > { %8940 = vsyncadd (%p11098_p1), [#allocation31], 4294967280  ;;  %s11099_s22 = sld [smem:[#allocation52_spill]]  ;;  %s11100_s1 = sld [smem:[#allocation50_spill]] }
 0x256   : > { %s11101_s2 = sld [smem:[#allocation51_spill]]  ;;  %s11102_s29 = sld [smem:[#allocation57_spill]] }
 0x257   : > { %s11103_s18 = sld [smem:[#allocation58_spill]]  ;;  %p1523_p9 = scmp.lt.s32.totalorder %s11087_s7, 2 }
 0x258   : > { %p11104_p8 = scmp.ne.s32.totalorder %s11087_s7, 0 }
 0x259   : > { %s9740_s23 = scalar_select %p1523_p9, %s11087_s7, 2 }
 0x25a   : > { %1546 = sbr.rel (%p11104_p8) target bundleno = 1070 (0x42e), region = 224  ;;  %v7856_v0 = vld [vmem:[#allocation4] sm:$0xff] (!%p11104_p8)   ;;  %s11105_s6 = sld [smem:[#allocation42_spill]] (!%p11104_p8)  ;;  %vm1611_vm0 = vcmask (!%p11104_p8), 130048   ;;  %vm1909_vm1 = vcmask (!%p11104_p8), 64512  }
 0x25b   : > { %s6615_s11 = sshll.u32 %s9740_s23, 6  ;;  %s1535_s19 = scalar_lea.vmem %s11099_s22, %s9740_s23  ;;  %6947 = vmatprep.subr.bf16.mxu0 (!%p11104_p8), %v7856_v0 }
 0x25c   : > { %s9746_s25 = scalar_lea.vmem %s11100_s1, %s6615_s11  ;;  %s9749_s3 = scalar_lea.vmem %s11101_s2, %s6615_s11  ;;  %6948 = vmatpush3.bf16.msra.mxu0 (!%p11104_p8), %v7856_v0 }
 0x25d   : > { %s1538_s4 = scalar_lea.vmem %s11102_s29, %s9740_s23  ;;  %s1541_s5 = scalar_lea.vmem %s11103_s18, %s9740_s23 }
 0x25e   : > { %s11106_s11 = sld [smem:[#allocation43_spill]] (!%p11104_p8)  ;;  %s11107_s7 = sld [smem:[#allocation45_spill]] (!%p11104_p8) }
 0x25f   : > { %s11108_s22 = sld [smem:[#allocation44_spill]] (!%p11104_p8) }
 0x260   : > { %v7857_v1 = vld [vmem:[%s11105_s6] sm:$0xff] (!%p11104_p8)   ;;  %v7858_v2 = vld [vmem:[%s11105_s6 + $0x8] sm:$0xff] (!%p11104_p8)   ;;  %v7859_v3 = vld [vmem:[%s11105_s6 + $0x10] sm:$0xff] (!%p11104_p8)  }
 0x261   : > { %6949 = vmatprep.mubr.msk.bf16.mxu0 %vm1611_vm0, %v7857_v1  ;;  %v7860_v4 = vld [vmem:[%s11105_s6 + $0x18] sm:$0xff]   ;;  %v7861_v5 = vld [vmem:[%s11105_s6 + $0x20] sm:$0xff]   ;;  %v7862_v6 = vld [vmem:[%s11105_s6 + $0x28] sm:$0xff]  }
 0x262   : > { %6950 = vmatmul.mubr.msk.bf16.vlgmr.msra.gmra.mrb[0].mxu0 %vm1611_vm0, %v7858_v2  ;;  %v7863_v7 = vld [vmem:[%s11105_s6 + $0x30] sm:$0xff]   ;;  %v7864_v8 = vld [vmem:[%s11105_s6 + $0x38] sm:$0xff]  }
 0x263   : > { %6953 = vmatprep.mubr.msk.bf16.mxu0 %vm1611_vm0, %v7859_v3 }
 0x264   : > { %v7865_v9 = vld [vmem:[%s11106_s11] sm:$0xff]   ;;  %v1894_v35 = vld [vmem:[%s11107_s7 + $0x8] sm:$0xff]  ;;  %v1895_v36 = vld [vmem:[%s11107_s7 + $0x10] sm:$0xff] }
 0x265   : > { %6965 = vmatprep.subr.bf16.mxu1 %v7865_v9  ;;  %v1893_v34 = vld [vmem:[%s11107_s7] sm:$0xff]  ;;  %v1896_v37 = vld [vmem:[%s11107_s7 + $0x18] sm:$0xff]  ;;  %v1898_v39 = vld [vmem:[%s11107_s7 + $0x28] sm:$0xff]  ;;  %1911 = vst.msk [vmem:[#allocation3 + $0x8] sm:$0xff] %vm1909_vm1, %v1894_v35 }
 0x266   : > { %6966 = vmatpush3.bf16.msra.mxu1 %v7865_v9  ;;  %v1897_v38 = vld [vmem:[%s11107_s7 + $0x20] sm:$0xff]  ;;  %1910 = vst.msk [vmem:[#allocation3] sm:$0xff] %vm1909_vm1, %v1893_v34  ;;  %1912 = vst.msk [vmem:[#allocation3 + $0x10] sm:$0xff] %vm1909_vm1, %v1895_v36  ;;  %v1899_v40 = vld [vmem:[%s11107_s7 + $0x30] sm:$0xff] }
 0x267   : > { %v1900_v41 = vld [vmem:[%s11107_s7 + $0x38] sm:$0xff]  ;;  %v1901_v42 = vld [vmem:[%s11107_s7 + $0x40] sm:$0xff]  ;;  %1913 = vst.msk [vmem:[#allocation3 + $0x18] sm:$0xff] %vm1909_vm1, %v1896_v37  ;;  %1914 = vst.msk [vmem:[#allocation3 + $0x20] sm:$0xff] %vm1909_vm1, %v1897_v38 }
 0x268   : > { %1915 = vst.msk [vmem:[#allocation3 + $0x28] sm:$0xff] %vm1909_vm1, %v1898_v39  ;;  %v1902_v43 = vld [vmem:[%s11107_s7 + $0x48] sm:$0xff]  ;;  %v1903_v44 = vld [vmem:[%s11107_s7 + $0x50] sm:$0xff]  ;;  %v1904_v45 = vld [vmem:[%s11107_s7 + $0x58] sm:$0xff] }
 0x269   : > { %1916 = vst.msk [vmem:[#allocation3 + $0x30] sm:$0xff] %vm1909_vm1, %v1899_v40  ;;  %1917 = vst.msk [vmem:[#allocation3 + $0x38] sm:$0xff] %vm1909_vm1, %v1900_v41  ;;  %v1905_v46 = vld [vmem:[%s11107_s7 + $0x60] sm:$0xff]  ;;  %v1906_v47 = vld [vmem:[%s11107_s7 + $0x68] sm:$0xff] }
 0x26a   : > { %6954 = vmatmul.mubr.msk.bf16.gmra.mrb[4].mxu0 %vm1611_vm0, %v7860_v4  ;;  %1918 = vst.msk [vmem:[#allocation3 + $0x40] sm:$0xff] %vm1909_vm1, %v1901_v42  ;;  %v1907_v48 = vld [vmem:[%s11107_s7 + $0x70] sm:$0xff]  ;;  %1919 = vst.msk [vmem:[#allocation3 + $0x48] sm:$0xff] %vm1909_vm1, %v1902_v43  ;;  %v1908_v49 = vld [vmem:[%s11107_s7 + $0x78] sm:$0xff] }
 0x26b   : > { %6957 = vmatprep.mubr.msk.bf16.mxu0 %vm1611_vm0, %v7861_v5  ;;  %1920 = vst.msk [vmem:[#allocation3 + $0x50] sm:$0xff] %vm1909_vm1, %v1903_v44  ;;  %1921 = vst.msk [vmem:[#allocation3 + $0x58] sm:$0xff] %vm1909_vm1, %v1904_v45  ;;  %v6457_v50 = vld [vmem:[%s11108_s22] ss:$0 sm:$0xff] }
 0x26c   : > { %1922 = vst.msk [vmem:[#allocation3 + $0x60] sm:$0xff] %vm1909_vm1, %v1905_v46  ;;  %1923 = vst.msk [vmem:[#allocation3 + $0x68] sm:$0xff] %vm1909_vm1, %v1906_v47 }
 0x26d   : > { %1924 = vst.msk [vmem:[#allocation3 + $0x70] sm:$0xff] %vm1909_vm1, %v1907_v48  ;;  %1925 = vst.msk [vmem:[#allocation3 + $0x78] sm:$0xff] %vm1909_vm1, %v1908_v49 }
 0x272   : > { %6958 = vmatmul.mubr.msk.bf16.gmra.mrb[8].mxu0 %vm1611_vm0, %v7862_v6 }
 0x273   : > { %6961 = vmatprep.mubr.msk.bf16.mxu0 %vm1611_vm0, %v7863_v7 }
 0x27a   : > { %6962 = vmatmul.mubr.msk.bf16.gmra.mrb[12].mxu0 %vm1611_vm0, %v7864_v8 }
 0x335   : > { %v6951_v10 = vpop.f32.mrb[0].mxu0 }
 0x336   : > { %v1670_v11 = vpop.f32.mrb[1].mxu0 }
 0x337   : > { %v6952_v12 = vpop.f32.mrb[2].mxu0 }
 0x338   : > { %v1734_v13 = vpack.c.bf16 %v6952_v12, %v6951_v10  ;;  %v1673_v14 = vpop.f32.mrb[3].mxu0 }
 0x339   : > { %v1733_v15 = vpack.c.bf16 %v1673_v14, %v1670_v11 }
 0x33b   : > { %6967 = vmatprep.mubr.msk.bf16.mxu1 %vm1611_vm0, %v1733_v15 }
 0x33c   : > { %6968 = vmatmul.mubr.msk.bf16.vlgmr.msra.gmra.mrb[0].mxu1 %vm1611_vm0, %v1734_v13 }
 0x33d   : > { %v6955_v16 = vpop.f32.mrb[4].mxu0 }
 0x33e   : > { %v1686_v17 = vpop.f32.mrb[5].mxu0 }
 0x33f   : > { %v6956_v18 = vpop.f32.mrb[6].mxu0 }
 0x340   : > { %v1736_v19 = vpack.c.bf16 %v6956_v18, %v6955_v16  ;;  %v1689_v20 = vpop.f32.mrb[7].mxu0 }
 0x341   : > { %v1735_v21 = vpack.c.bf16 %v1689_v20, %v1686_v17 }
 0x343   : > { %6971 = vmatprep.mubr.msk.bf16.mxu1 %vm1611_vm0, %v1735_v21 }
 0x344   : > { %6972 = vmatmul.mubr.msk.bf16.gmra.mrb[4].mxu1 %vm1611_vm0, %v1736_v19 }
 0x345   : > { %v6959_v22 = vpop.f32.mrb[8].mxu0 }
 0x346   : > { %v1702_v23 = vpop.f32.mrb[9].mxu0 }
 0x347   : > { %v6960_v24 = vpop.f32.mrb[10].mxu0 }
 0x348   : > { %v1738_v25 = vpack.c.bf16 %v6960_v24, %v6959_v22  ;;  %v1705_v26 = vpop.f32.mrb[11].mxu0 }
 0x349   : > { %v1737_v27 = vpack.c.bf16 %v1705_v26, %v1702_v23 }
 0x34b   : > { %6975 = vmatprep.mubr.msk.bf16.mxu1 %vm1611_vm0, %v1737_v27 }
 0x34c   : > { %6976 = vmatmul.mubr.msk.bf16.gmra.mrb[8].mxu1 %vm1611_vm0, %v1738_v25 }
 0x34d   : > { %v6963_v28 = vpop.f32.mrb[12].mxu0 }
 0x34e   : > { %v1718_v29 = vpop.f32.mrb[13].mxu0 }
 0x34f   : > { %v6964_v30 = vpop.f32.mrb[14].mxu0 }
 0x350   : > { %v1740_v31 = vpack.c.bf16 %v6964_v30, %v6963_v28  ;;  %v1721_v32 = vpop.f32.mrb[15].mxu0 }
 0x351   : > { %v1739_v33 = vpack.c.bf16 %v1721_v32, %v1718_v29 }
 0x353   : > { %6979 = vmatprep.mubr.msk.bf16.mxu1 %vm1611_vm0, %v1739_v33 }
 0x354   : > { %6980 = vmatmul.mubr.msk.bf16.gmra.mrb[12].mxu1 %vm1611_vm0, %v1740_v31 }
 0x40f   : > { %v6969_v51 = vpop.f32.mrb[0].mxu1 }
 0x410   : > { %v1823_v52 = vadd.f32 %v6969_v51, %v6457_v50  ;;  %v1814_v53 = vpop.f32.mrb[1].mxu1 }
 0x411   : > { %v1815_v54 = vadd.f32 %v6457_v50, %v1814_v53  ;;  %v6970_v55 = vpop.f32.mrb[2].mxu1 }
 0x412   : > { %1879 = vst [vmem:[#allocation2 + $0x10] sm:$0xff] %v1823_v52  ;;  %v1826_v56 = vadd.f32 %v6970_v55, %v6457_v50  ;;  %v1817_v57 = vpop.f32.mrb[3].mxu1 }
 0x413   : > { %1877 = vst [vmem:[#allocation2] sm:$0xff] %v1815_v54  ;;  %v1818_v58 = vadd.f32 %v6457_v50, %v1817_v57 }
 0x414   : > { %1880 = vst [vmem:[#allocation2 + $0x18] sm:$0xff] %v1826_v56 }
 0x415   : > { %1878 = vst [vmem:[#allocation2 + $0x8] sm:$0xff] %v1818_v58 }
 0x417   : > { %v6973_v59 = vpop.f32.mrb[4].mxu1 }
 0x418   : > { %v1839_v60 = vadd.f32 %v6973_v59, %v6457_v50  ;;  %v1830_v61 = vpop.f32.mrb[5].mxu1 }
 0x419   : > { %v1831_v62 = vadd.f32 %v6457_v50, %v1830_v61  ;;  %v6974_v63 = vpop.f32.mrb[6].mxu1 }
 0x41a   : > { %1883 = vst [vmem:[#allocation2 + $0x30] sm:$0xff] %v1839_v60  ;;  %v1842_v0 = vadd.f32 %v6974_v63, %v6457_v50  ;;  %v1833_v1 = vpop.f32.mrb[7].mxu1 }
 0x41b   : > { %1881 = vst [vmem:[#allocation2 + $0x20] sm:$0xff] %v1831_v62  ;;  %v1834_v2 = vadd.f32 %v6457_v50, %v1833_v1 }
 0x41c   : > { %1884 = vst [vmem:[#allocation2 + $0x38] sm:$0xff] %v1842_v0 }
 0x41d   : > { %1882 = vst [vmem:[#allocation2 + $0x28] sm:$0xff] %v1834_v2 }
 0x41f   : > { %v6977_v3 = vpop.f32.mrb[8].mxu1 }
 0x420   : > { %v1855_v4 = vadd.f32 %v6977_v3, %v6457_v50  ;;  %v1846_v5 = vpop.f32.mrb[9].mxu1 }
 0x421   : > { %v1847_v6 = vadd.f32 %v6457_v50, %v1846_v5  ;;  %v6978_v7 = vpop.f32.mrb[10].mxu1 }
 0x422   : > { %1887 = vst [vmem:[#allocation2 + $0x50] sm:$0xff] %v1855_v4  ;;  %v1858_v8 = vadd.f32 %v6978_v7, %v6457_v50  ;;  %v1849_v9 = vpop.f32.mrb[11].mxu1 }
 0x423   : > { %1885 = vst [vmem:[#allocation2 + $0x40] sm:$0xff] %v1847_v6  ;;  %v1850_v10 = vadd.f32 %v6457_v50, %v1849_v9 }
 0x424   : > { %1888 = vst [vmem:[#allocation2 + $0x58] sm:$0xff] %v1858_v8 }
 0x425   : > { %1886 = vst [vmem:[#allocation2 + $0x48] sm:$0xff] %v1850_v10 }
 0x427   : > { %v6981_v11 = vpop.f32.mrb[12].mxu1 }
 0x428   : > { %v1871_v12 = vadd.f32 %v6981_v11, %v6457_v50  ;;  %v1862_v13 = vpop.f32.mrb[13].mxu1 }
 0x429   : > { %v1863_v14 = vadd.f32 %v6457_v50, %v1862_v13  ;;  %v6982_v15 = vpop.f32.mrb[14].mxu1 }
 0x42a   : > { %1891 = vst [vmem:[#allocation2 + $0x70] sm:$0xff] %v1871_v12  ;;  %v1874_v16 = vadd.f32 %v6982_v15, %v6457_v50  ;;  %v1865_v17 = vpop.f32.mrb[15].mxu1 }
 0x42b   : > { %1889 = vst [vmem:[#allocation2 + $0x60] sm:$0xff] %v1863_v14  ;;  %v1866_v18 = vadd.f32 %v6457_v50, %v1865_v17 }
 0x42c   : > { %1892 = vst [vmem:[#allocation2 + $0x78] sm:$0xff] %v1874_v16 }
 0x42d   : > { %1890 = vst [vmem:[#allocation2 + $0x68] sm:$0xff] %v1866_v18 }
 0x42e PF: > { %v1974_v19 = vld [vmem:[#allocation2] sm:$0xff]  ;;  %v1975_v20 = vld [vmem:[#allocation2 + $0x8] sm:$0xff]  ;;  %s11109_s1 = sld [smem:[#allocation46_spill]]  ;;  %v1976_v21 = vld [vmem:[#allocation2 + $0x10] sm:$0xff]  ;;  %s11111_s2 = sld [smem:[#allocation47_spill]]  ;;  %vm2772_vm2 = vcmask 64512  }
 0x42f   : > { %v9815_v22 = vpack.c.bf16 %v1975_v20, %v1974_v19  ;;  %v1977_v23 = vld [vmem:[#allocation2 + $0x18] sm:$0xff]  ;;  %v1978_v25 = vld [vmem:[#allocation2 + $0x20] sm:$0xff]  ;;  %v1979_v26 = vld [vmem:[#allocation2 + $0x28] sm:$0xff] }
 0x430   : > { %v9817_v24 = vpack.c.bf16 %v1977_v23, %v1976_v21  ;;  %v1980_v27 = vld [vmem:[#allocation2 + $0x30] sm:$0xff]  ;;  %v9825_v28 = vpack.c.bf16 %v1979_v26, %v1978_v25  ;;  %v1981_v29 = vld [vmem:[#allocation2 + $0x38] sm:$0xff]  ;;  %v1982_v33 = vld [vmem:[#allocation2 + $0x40] sm:$0xff] }
 0x431   : > { %11113 = vst [vmem:[#allocation75_spill] sm:$0xff] %v9815_v22  ;;  %6983 = vmatprep.subr.bf16.mxu0 %v9815_v22  ;;  %7015 = vmatprep.subr.bf16.mxu1 %v9815_v22  ;;  %v9837_v32 = vpack.c.bf16 %v1981_v29, %v1980_v27  ;;  %v1983_v34 = vld [vmem:[#allocation2 + $0x48] sm:$0xff]  ;;  %v1984_v35 = vld [vmem:[#allocation2 + $0x50] sm:$0xff]  ;;  %v1985_v37 = vld [vmem:[#allocation2 + $0x58] sm:$0xff] }
 0x432   : > { %11114 = vst [vmem:[#allocation76_spill] sm:$0xff] %v9817_v24  ;;  %6984 = vmatpush3.bf16.msra.mxu0 %v9815_v22  ;;  %7016 = vmatpush3.bf16.msra.mxu1 %v9815_v22  ;;  %11115 = vst [vmem:[#allocation77_spill] sm:$0xff] %v9825_v28  ;;  %v9845_v36 = vpack.c.bf16 %v1983_v34, %v1982_v33  ;;  %v1990_v38 = vld [vmem:[#allocation3] sm:$0xff]  ;;  %v1991_v39 = vld [vmem:[#allocation3 + $0x8] sm:$0xff]  ;;  %v9851_v42 = vpack.c.bf16 %v1985_v37, %v1984_v35 }
 0x433   : > { %6985 = vmatprep.subr.bf16.mxu0 %v9817_v24  ;;  %7017 = vmatprep.subr.bf16.mxu1 %v9817_v24  ;;  %11116 = vst [vmem:[#allocation78_spill] sm:$0xff] %v9837_v32  ;;  %v1986_v40 = vld [vmem:[#allocation2 + $0x60] sm:$0xff]  ;;  %v1992_v41 = vld [vmem:[#allocation3 + $0x10] sm:$0xff]  ;;  %v9853_v43 = vpack.c.bf16 %v1991_v39, %v1990_v38  ;;  %v1993_v44 = vld [vmem:[#allocation3 + $0x18] sm:$0xff] }
 0x434   : > { %s11110_s29 = smov %s11109_s1  ;;  %s11112_s18 = smov %s11111_s2  ;;  %v9828_v30 = vld [vmem:[%s11109_s1] sm:$0xff]   ;;  %11117 = vst [vmem:[#allocation79_spill] sm:$0xff] %v9845_v36  ;;  %11118 = vst [vmem:[#allocation80_spill] sm:$0xff] %v9851_v42  ;;  %v1987_v45 = vld [vmem:[#allocation2 + $0x68] sm:$0xff]  ;;  %v9857_v48 = vpack.c.bf16 %v1993_v44, %v1992_v41 }
 0x435   : > { %v9831_v31 = vld [vmem:[%s11111_s2] sm:$0xff]   ;;  %6999 = vmatprep.mubr.bf16.mxu0 %v9828_v30  ;;  %v1988_v46 = vld [vmem:[#allocation2 + $0x70] sm:$0xff]  ;;  %v1989_v47 = vld [vmem:[#allocation2 + $0x78] sm:$0xff]  ;;  %v9861_v49 = vpack.c.bf16 %v1987_v45, %v1986_v40  ;;  %v2312_v50 = vunpack.c.l.bf16 %v9853_v43  ;;  %v2313_v51 = vunpack.c.h.bf16 %v9853_v43 }
 0x436   : > { %6986 = vmatpush3.bf16.msra.mxu0 %v9817_v24  ;;  %7018 = vmatpush3.bf16.msra.mxu1 %v9817_v24  ;;  %v1994_v52 = vld [vmem:[#allocation3 + $0x20] sm:$0xff]  ;;  %v1995_v53 = vld [vmem:[#allocation3 + $0x28] sm:$0xff]  ;;  %v9867_v54 = vpack.c.bf16 %v1989_v47, %v1988_v46  ;;  %v2314_v55 = vunpack.c.l.bf16 %v9857_v48  ;;  %v2315_v56 = vunpack.c.h.bf16 %v9857_v48  ;;  %v1996_v60 = vld [vmem:[#allocation3 + $0x30] sm:$0xff] }
 0x437   : > { %6987 = vmatprep.subr.bf16.mxu0 %v9825_v28  ;;  %7019 = vmatprep.subr.bf16.mxu1 %v9825_v28  ;;  %11119 = vst [vmem:[#allocation81_spill] sm:$0xff] %v9861_v49  ;;  %v2328_v57 = vsub.f32 %v1990_v38, %v2312_v50  ;;  %v2329_v58 = vsub.f32 %v1991_v39, %v2313_v51  ;;  %v1997_v61 = vld [vmem:[#allocation3 + $0x38] sm:$0xff]  ;;  %v9882_v1 = vld [vmem:[%s11110_s29 + $0x8] sm:$0xff]   ;;  %v1998_v5 = vld [vmem:[#allocation3 + $0x40] sm:$0xff] }
 0x438   : > { %7031 = vmatprep.mubr.bf16.mxu1 %v9831_v31  ;;  %11120 = vst [vmem:[#allocation82_spill] sm:$0xff] %v9867_v54  ;;  %v9873_v59 = vpack.c.bf16 %v1995_v53, %v1994_v52  ;;  %v2330_v62 = vsub.f32 %v1992_v41, %v2314_v55  ;;  %v2331_v63 = vsub.f32 %v1993_v44, %v2315_v56  ;;  %v1999_v6 = vld [vmem:[#allocation3 + $0x48] sm:$0xff]  ;;  %v9892_v9 = vld [vmem:[%s11110_s29 + $0x10] sm:$0xff]   ;;  %v2001_v17 = vld [vmem:[#allocation3 + $0x58] sm:$0xff] }
 0x439   : > { %v9877_v0 = vpack.c.bf16 %v1997_v61, %v1996_v60  ;;  %v2344_v2 = vpack.c.bf16 %v2329_v58, %v2328_v57  ;;  %v9887_v7 = vld [vmem:[%s11112_s18 + $0x8] sm:$0xff]   ;;  %v9895_v10 = vld [vmem:[%s11112_s18 + $0x10] sm:$0xff]   ;;  %v9899_v16 = vpack.c.bf16 %v1999_v6, %v1998_v5  ;;  %v2002_v21 = vld [vmem:[#allocation3 + $0x60] sm:$0xff] }
 0x43a   : > { %6988 = vmatpush3.bf16.msra.mxu0 %v9825_v28  ;;  %7020 = vmatpush3.bf16.msra.mxu1 %v9825_v28  ;;  %v2316_v3 = vunpack.c.l.bf16 %v9873_v59  ;;  %v2317_v4 = vunpack.c.h.bf16 %v9873_v59  ;;  %v2345_v8 = vpack.c.bf16 %v2331_v63, %v2330_v62  ;;  %v2000_v13 = vld [vmem:[#allocation3 + $0x50] sm:$0xff]  ;;  %v2003_v23 = vld [vmem:[#allocation3 + $0x68] sm:$0xff]  ;;  %v9906_v25 = vld [vmem:[%s11110_s29 + $0x18] sm:$0xff]  }
 0x43b   : > { %6989 = vmatprep.subr.bf16.mxu0 %v9837_v32  ;;  %7021 = vmatprep.subr.bf16.mxu1 %v9837_v32  ;;  %v2318_v11 = vunpack.c.l.bf16 %v9877_v0  ;;  %v2319_v12 = vunpack.c.h.bf16 %v9877_v0  ;;  %v9903_v20 = vpack.c.bf16 %v2001_v17, %v2000_v13  ;;  %v9909_v26 = vld [vmem:[%s11112_s18 + $0x18] sm:$0xff]   ;;  %v2320_v29 = vunpack.c.l.bf16 %v9899_v16  ;;  %v9916_v35 = vld [vmem:[%s11110_s29 + $0x20] sm:$0xff]   ;;  %v2004_v40 = vld [vmem:[#allocation3 + $0x70] sm:$0xff] }
 0x43c   : > { %v2332_v14 = vsub.f32 %v1994_v52, %v2316_v3  ;;  %v2333_v15 = vsub.f32 %v1995_v53, %v2317_v4  ;;  %v2321_v33 = vunpack.c.h.bf16 %v9899_v16  ;;  %v9919_v37 = vld [vmem:[%s11112_s18 + $0x20] sm:$0xff]   ;;  %v2005_v41 = vld [vmem:[#allocation3 + $0x78] sm:$0xff]  ;;  %v9923_v46 = vpack.c.bf16 %v2003_v23, %v2002_v21  ;;  %v9928_v51 = vld [vmem:[%s11110_s29 + $0x28] sm:$0xff]  }
 0x43d   : > { %v2334_v18 = vsub.f32 %v1996_v60, %v2318_v11  ;;  %v2335_v19 = vsub.f32 %v1997_v61, %v2319_v12  ;;  %v2322_v38 = vunpack.c.l.bf16 %v9903_v20  ;;  %v2323_v39 = vunpack.c.h.bf16 %v9903_v20  ;;  %v9931_v52 = vld [vmem:[%s11112_s18 + $0x28] sm:$0xff]   ;;  %v9940_v60 = vld [vmem:[%s11110_s29 + $0x30] sm:$0xff]   ;;  %v9950_v4 = vld [vmem:[%s11110_s29 + $0x38] sm:$0xff]  }
 0x43e   : > { %6990 = vmatpush3.bf16.msra.mxu0 %v9837_v32  ;;  %7022 = vmatpush3.bf16.msra.mxu1 %v9837_v32  ;;  %v2346_v27 = vpack.c.bf16 %v2333_v15, %v2332_v14  ;;  %v2336_v44 = vsub.f32 %v1998_v5, %v2320_v29  ;;  %v2337_v45 = vsub.f32 %v1999_v6, %v2321_v33  ;;  %v2324_v55 = vunpack.c.l.bf16 %v9923_v46  ;;  %v9943_v61 = vld [vmem:[%s11112_s18 + $0x30] sm:$0xff]   ;;  %v9953_v5 = vld [vmem:[%s11112_s18 + $0x38] sm:$0xff]  }
 0x43f   : > { %6991 = vmatprep.subr.bf16.mxu0 %v9845_v36  ;;  %7023 = vmatprep.subr.bf16.mxu1 %v9845_v36  ;;  %v2347_v34 = vpack.c.bf16 %v2335_v19, %v2334_v18  ;;  %v2338_v47 = vsub.f32 %v2000_v13, %v2322_v38  ;;  %v2339_v50 = vsub.f32 %v2001_v17, %v2323_v39  ;;  %v2325_v56 = vunpack.c.h.bf16 %v9923_v46 }
 0x440   : > { %v2348_v53 = vpack.c.bf16 %v2337_v45, %v2336_v44  ;;  %v9935_v57 = vpack.c.bf16 %v2005_v41, %v2004_v40  ;;  %v2340_v62 = vsub.f32 %v2002_v21, %v2324_v55 }
 0x441   : > { %v2349_v58 = vpack.c.bf16 %v2339_v50, %v2338_v47  ;;  %v2341_v63 = vsub.f32 %v2003_v23, %v2325_v56  ;;  %v7895_v47 = vld [vmem:[%s9746_s25 + $0x18] sm:$0xff]  }
 0x442   : > { %6992 = vmatpush3.bf16.msra.mxu0 %v9845_v36  ;;  %7024 = vmatpush3.bf16.msra.mxu1 %v9845_v36  ;;  %v2327_v3 = vunpack.c.h.bf16 %v9935_v57 }
 0x443   : > { %6993 = vmatprep.subr.bf16.mxu0 %v9851_v42  ;;  %7025 = vmatprep.subr.bf16.mxu1 %v9851_v42  ;;  %v2350_v6 = vpack.c.bf16 %v2341_v63, %v2340_v62 }
 0x444   : > { %v2343_v11 = vsub.f32 %v2005_v41, %v2327_v3  ;;  %v7897_v3 = vld [vmem:[%s9746_s25 + $0x28] sm:$0xff]  }
 0x446   : > { %6994 = vmatpush3.bf16.msra.mxu0 %v9851_v42  ;;  %7026 = vmatpush3.bf16.msra.mxu1 %v9851_v42 }
 0x447   : > { %6995 = vmatprep.subr.bf16.mxu0 %v9861_v49  ;;  %7027 = vmatprep.subr.bf16.mxu1 %v9861_v49 }
 0x44a   : > { %6996 = vmatpush3.bf16.msra.mxu0 %v9861_v49  ;;  %7028 = vmatpush3.bf16.msra.mxu1 %v9861_v49 }
 0x44b   : > { %6997 = vmatprep.subr.bf16.mxu0 %v9867_v54  ;;  %7029 = vmatprep.subr.bf16.mxu1 %v9867_v54 }
 0x44e   : > { %6998 = vmatpush3.bf16.msra.mxu0 %v9867_v54  ;;  %7030 = vmatpush3.bf16.msra.mxu1 %v9867_v54 }
 0x44f   : > { %7047 = vmatprep.subr.bf16.mxu0 %v2344_v2  ;;  %7111 = vmatprep.subr.bf16.mxu1 %v2344_v2 }
 0x451   : > { %7000 = vmatmul.mubr.bf16.vlgmr.msra.gmra.mrb[0].mxu0 %v9882_v1  ;;  %7032 = vmatmul.mubr.bf16.vlgmr.msra.gmra.mrb[0].mxu1 %v9887_v7 }
 0x452   : > { %7048 = vmatpush3.bf16.msra.mxu0 %v2344_v2  ;;  %7112 = vmatpush3.bf16.msra.mxu1 %v2344_v2  ;;  %v2326_v2 = vunpack.c.l.bf16 %v9935_v57 }
 0x453   : > { %7049 = vmatprep.subr.bf16.mxu0 %v2345_v8  ;;  %7113 = vmatprep.subr.bf16.mxu1 %v2345_v8 }
 0x454   : > { %7003 = vmatprep.mubr.bf16.mxu0 %v9892_v9  ;;  %7035 = vmatprep.mubr.bf16.mxu1 %v9895_v10 }
 0x456   : > { %7050 = vmatpush3.bf16.msra.mxu0 %v2345_v8  ;;  %7114 = vmatpush3.bf16.msra.mxu1 %v2345_v8  ;;  %v2342_v8 = vsub.f32 %v2004_v40, %v2326_v2 }
 0x457   : > { %7051 = vmatprep.subr.bf16.mxu0 %v2346_v27  ;;  %7115 = vmatprep.subr.bf16.mxu1 %v2346_v27 }
 0x458   : > { %v2351_v12 = vpack.c.bf16 %v2343_v11, %v2342_v8  ;;  %v7898_v8 = vld [vmem:[%s9746_s25 + $0x30] sm:$0xff]  }
 0x459   : > { %7004 = vmatmul.mubr.bf16.gmra.mrb[4].mxu0 %v9906_v25  ;;  %7036 = vmatmul.mubr.bf16.gmra.mrb[4].mxu1 %v9909_v26 }
 0x45a   : > { %7052 = vmatpush3.bf16.msra.mxu0 %v2346_v27  ;;  %7116 = vmatpush3.bf16.msra.mxu1 %v2346_v27 }
 0x45b   : > { %7053 = vmatprep.subr.bf16.mxu0 %v2347_v34  ;;  %7117 = vmatprep.subr.bf16.mxu1 %v2347_v34 }
 0x45c   : > { %7007 = vmatprep.mubr.bf16.mxu0 %v9916_v35  ;;  %7039 = vmatprep.mubr.bf16.mxu1 %v9919_v37 }
 0x45e   : > { %7054 = vmatpush3.bf16.msra.mxu0 %v2347_v34  ;;  %7118 = vmatpush3.bf16.msra.mxu1 %v2347_v34  ;;  %v7894_v34 = vld [vmem:[%s9746_s25 + $0x10] sm:$0xff]  }
 0x45f   : > { %7055 = vmatprep.subr.bf16.mxu0 %v2348_v53  ;;  %7119 = vmatprep.subr.bf16.mxu1 %v2348_v53 }
 0x461   : > { %7008 = vmatmul.mubr.bf16.gmra.mrb[8].mxu0 %v9928_v51  ;;  %7040 = vmatmul.mubr.bf16.gmra.mrb[8].mxu1 %v9931_v52 }
 0x462   : > { %7056 = vmatpush3.bf16.msra.mxu0 %v2348_v53  ;;  %7120 = vmatpush3.bf16.msra.mxu1 %v2348_v53  ;;  %v7896_v53 = vld [vmem:[%s9746_s25 + $0x20] sm:$0xff]  }
 0x463   : > { %7057 = vmatprep.subr.bf16.mxu0 %v2349_v58  ;;  %7121 = vmatprep.subr.bf16.mxu1 %v2349_v58 }
 0x464   : > { %7011 = vmatprep.mubr.bf16.mxu0 %v9940_v60  ;;  %7043 = vmatprep.mubr.bf16.mxu1 %v9943_v61 }
 0x466   : > { %7058 = vmatpush3.bf16.msra.mxu0 %v2349_v58  ;;  %7122 = vmatpush3.bf16.msra.mxu1 %v2349_v58 }
 0x467   : > { %7059 = vmatprep.subr.bf16.mxu0 %v2350_v6  ;;  %7123 = vmatprep.subr.bf16.mxu1 %v2350_v6 }
 0x469   : > { %7012 = vmatmul.mubr.bf16.gmra.mrb[12].mxu0 %v9950_v4  ;;  %7044 = vmatmul.mubr.bf16.gmra.mrb[12].mxu1 %v9953_v5 }
 0x46a   : > { %7060 = vmatpush3.bf16.msra.mxu0 %v2350_v6  ;;  %7124 = vmatpush3.bf16.msra.mxu1 %v2350_v6 }
 0x46b   : > { %7061 = vmatprep.subr.bf16.mxu0 %v2351_v12  ;;  %7125 = vmatprep.subr.bf16.mxu1 %v2351_v12 }
 0x46c   : > { %7063 = vmatprep.mubr.bf16.mxu0 %v9828_v30  ;;  %7127 = vmatprep.mubr.bf16.mxu1 %v9831_v31 }
 0x46e   : > { %7062 = vmatpush3.bf16.msra.mxu0 %v2351_v12  ;;  %7126 = vmatpush3.bf16.msra.mxu1 %v2351_v12 }
 0x46f   : > { %7079 = vmatprep.subr.bf16.mxu0 %v9853_v43  ;;  %7143 = vmatprep.subr.bf16.mxu1 %v9853_v43 }
 0x471   : > { %7064 = vmatmul.mubr.bf16.vlgmr.msra.gmra.mrb[16].mxu0 %v9882_v1  ;;  %7128 = vmatmul.mubr.bf16.vlgmr.msra.gmra.mrb[16].mxu1 %v9887_v7 }
 0x472   : > { %7080 = vmatpush3.bf16.msra.mxu0 %v9853_v43  ;;  %7144 = vmatpush3.bf16.msra.mxu1 %v9853_v43  ;;  %v7884_v43 = vld [vmem:[%s9749_s3] sm:$0xff]  }
 0x473   : > { %7081 = vmatprep.subr.bf16.mxu0 %v9857_v48  ;;  %7145 = vmatprep.subr.bf16.mxu1 %v9857_v48 }
 0x474   : > { %7067 = vmatprep.mubr.bf16.mxu0 %v9892_v9  ;;  %7131 = vmatprep.mubr.bf16.mxu1 %v9895_v10 }
 0x476   : > { %7082 = vmatpush3.bf16.msra.mxu0 %v9857_v48  ;;  %7146 = vmatpush3.bf16.msra.mxu1 %v9857_v48  ;;  %v7885_v48 = vld [vmem:[%s9749_s3 + $0x8] sm:$0xff]  }
 0x477   : > { %7083 = vmatprep.subr.bf16.mxu0 %v9873_v59  ;;  %7147 = vmatprep.subr.bf16.mxu1 %v9873_v59 }
 0x479   : > { %7068 = vmatmul.mubr.bf16.gmra.mrb[20].mxu0 %v9906_v25  ;;  %7132 = vmatmul.mubr.bf16.gmra.mrb[20].mxu1 %v9909_v26 }
 0x47a   : > { %7084 = vmatpush3.bf16.msra.mxu0 %v9873_v59  ;;  %7148 = vmatpush3.bf16.msra.mxu1 %v9873_v59  ;;  %v7888_v59 = vld [vmem:[%s9749_s3 + $0x20] sm:$0xff]  }
 0x47b   : > { %7085 = vmatprep.subr.bf16.mxu0 %v9877_v0  ;;  %7149 = vmatprep.subr.bf16.mxu1 %v9877_v0 }
 0x47c   : > { %7071 = vmatprep.mubr.bf16.mxu0 %v9916_v35  ;;  %7135 = vmatprep.mubr.bf16.mxu1 %v9919_v37 }
 0x47e   : > { %7086 = vmatpush3.bf16.msra.mxu0 %v9877_v0  ;;  %7150 = vmatpush3.bf16.msra.mxu1 %v9877_v0  ;;  %v7889_v0 = vld [vmem:[%s9749_s3 + $0x28] sm:$0xff]  }
 0x47f   : > { %7087 = vmatprep.subr.bf16.mxu0 %v9899_v16  ;;  %7151 = vmatprep.subr.bf16.mxu1 %v9899_v16 }
 0x481   : > { %7072 = vmatmul.mubr.bf16.gmra.mrb[24].mxu0 %v9928_v51  ;;  %7136 = vmatmul.mubr.bf16.gmra.mrb[24].mxu1 %v9931_v52 }
 0x482   : > { %7088 = vmatpush3.bf16.msra.mxu0 %v9899_v16  ;;  %7152 = vmatpush3.bf16.msra.mxu1 %v9899_v16 }
 0x483   : > { %7089 = vmatprep.subr.bf16.mxu0 %v9903_v20  ;;  %7153 = vmatprep.subr.bf16.mxu1 %v9903_v20 }
 0x484   : > { %7075 = vmatprep.mubr.bf16.mxu0 %v9940_v60  ;;  %7139 = vmatprep.mubr.bf16.mxu1 %v9943_v61 }
 0x486   : > { %7090 = vmatpush3.bf16.msra.mxu0 %v9903_v20  ;;  %7154 = vmatpush3.bf16.msra.mxu1 %v9903_v20 }
 0x487   : > { %7091 = vmatprep.subr.bf16.mxu0 %v9923_v46  ;;  %7155 = vmatprep.subr.bf16.mxu1 %v9923_v46 }
 0x489   : > { %7076 = vmatmul.mubr.bf16.gmra.mrb[28].mxu0 %v9950_v4  ;;  %7140 = vmatmul.mubr.bf16.gmra.mrb[28].mxu1 %v9953_v5 }
 0x48a   : > { %7092 = vmatpush3.bf16.msra.mxu0 %v9923_v46  ;;  %7156 = vmatpush3.bf16.msra.mxu1 %v9923_v46 }
 0x48b   : > { %7093 = vmatprep.subr.bf16.mxu0 %v9935_v57  ;;  %7157 = vmatprep.subr.bf16.mxu1 %v9935_v57 }
 0x48c   : > { %7095 = vmatprep.mubr.bf16.mxu0 %v9828_v30  ;;  %7159 = vmatprep.mubr.bf16.mxu1 %v9831_v31  ;;  %v7886_v30 = vld [vmem:[%s9749_s3 + $0x10] sm:$0xff]   ;;  %v7887_v31 = vld [vmem:[%s9749_s3 + $0x18] sm:$0xff]  }
 0x48e   : > { %7094 = vmatpush3.bf16.msra.mxu0 %v9935_v57  ;;  %7158 = vmatpush3.bf16.msra.mxu1 %v9935_v57 }
 0x48f   : > { %7175 = vmatprep.subr.bf16.mxu0 %v7884_v43 }
 0x491   : > { %7096 = vmatmul.mubr.bf16.vlgmr.msra.gmra.mrb[16].mxu0 %v9882_v1  ;;  %7160 = vmatmul.mubr.bf16.vlgmr.msra.gmra.mrb[16].mxu1 %v9887_v7  ;;  %v7890_v1 = vld [vmem:[%s9749_s3 + $0x30] sm:$0xff]   ;;  %v7891_v7 = vld [vmem:[%s9749_s3 + $0x38] sm:$0xff]  }
 0x492   : > { %7099 = vmatprep.mubr.bf16.mxu0 %v9892_v9  ;;  %7163 = vmatprep.mubr.bf16.mxu1 %v9895_v10  ;;  %v7892_v9 = vld [vmem:[%s9746_s25] sm:$0xff]  }
 0x493   : > { %7176 = vmatpush3.bf16.msra.mxu0 %v7884_v43 }
 0x494   : > { %7177 = vmatprep.subr.bf16.mxu0 %v7885_v48 }
 0x497   : > { %7178 = vmatpush3.bf16.msra.mxu0 %v7885_v48 }
 0x498   : > { %7179 = vmatprep.subr.bf16.mxu0 %v7886_v30 }
 0x499   : > { %7100 = vmatmul.mubr.bf16.gmra.mrb[20].mxu0 %v9906_v25  ;;  %7164 = vmatmul.mubr.bf16.gmra.mrb[20].mxu1 %v9909_v26  ;;  %v7893_v26 = vld [vmem:[%s9746_s25 + $0x8] sm:$0xff]  }
 0x49a   : > { %7103 = vmatprep.mubr.bf16.mxu0 %v9916_v35  ;;  %7167 = vmatprep.mubr.bf16.mxu1 %v9919_v37 }
 0x49b   : > { %7180 = vmatpush3.bf16.msra.mxu0 %v7886_v30 }
 0x49c   : > { %7181 = vmatprep.subr.bf16.mxu0 %v7887_v31 }
 0x49f   : > { %7182 = vmatpush3.bf16.msra.mxu0 %v7887_v31 }
 0x4a0   : > { %7183 = vmatprep.subr.bf16.mxu0 %v7888_v59 }
 0x4a1   : > { %7104 = vmatmul.mubr.bf16.gmra.mrb[24].mxu0 %v9928_v51  ;;  %7168 = vmatmul.mubr.bf16.gmra.mrb[24].mxu1 %v9931_v52 }
 0x4a2   : > { %7107 = vmatprep.mubr.bf16.mxu0 %v9940_v60  ;;  %7171 = vmatprep.mubr.bf16.mxu1 %v9943_v61 }
 0x4a3   : > { %7184 = vmatpush3.bf16.msra.mxu0 %v7888_v59 }
 0x4a4   : > { %7185 = vmatprep.subr.bf16.mxu0 %v7889_v0 }
 0x4a7   : > { %7186 = vmatpush3.bf16.msra.mxu0 %v7889_v0 }
 0x4a8   : > { %7187 = vmatprep.subr.bf16.mxu0 %v7890_v1 }
 0x4a9   : > { %7108 = vmatmul.mubr.bf16.gmra.mrb[28].mxu0 %v9950_v4  ;;  %7172 = vmatmul.mubr.bf16.gmra.mrb[28].mxu1 %v9953_v5 }
 0x4ab   : > { %7188 = vmatpush3.bf16.msra.mxu0 %v7890_v1 }
 0x4ac   : > { %7189 = vmatprep.subr.bf16.mxu0 %v7891_v7 }
 0x4af   : > { %7190 = vmatpush3.bf16.msra.mxu0 %v7891_v7  ;;  %v7899_v7 = vld [vmem:[%s9746_s25 + $0x38] sm:$0xff]   ;;  %s11138_s25 = scalar_lea.vmem [#allocation6], %s9675_s16 }
 0x4b0   : > { %7207 = vmatprep.subr.bf16.mxu0 %v7892_v9 }
 0x524   : > { %v7033_v10 = vpop.f32.mrb[0].mxu1  ;;  %v10032_v13 = vpop.f32.mrb[0].mxu0 }
 0x525   : > { %v2241_v14 = vpop.f32.mrb[1].mxu1  ;;  %v10034_v15 = vpop.f32.mrb[1].mxu0 }
 0x526   : > { %v7034_v16 = vpop.f32.mrb[2].mxu1  ;;  %v10036_v17 = vpop.f32.mrb[2].mxu0 }
 0x527   : > { %v2846_v18 = vpack.c.bf16 %v7034_v16, %v7033_v10  ;;  %v2244_v19 = vpop.f32.mrb[3].mxu1  ;;  %v2822_v20 = vpack.c.bf16 %v10036_v17, %v10032_v13  ;;  %v10040_v21 = vpop.f32.mrb[3].mxu0 }
 0x528   : > { %v2845_v23 = vpack.c.bf16 %v2244_v19, %v2241_v14  ;;  %v2821_v25 = vpack.c.bf16 %v10040_v21, %v10034_v15 }
 0x52a   : > { %7191 = vmatprep.mubr.bf16.mxu0 %v2845_v23 }
 0x52b   : > { %7192 = vmatmul.mubr.bf16.vlgmr.msra.gmra.mrb[32].mxu0 %v2846_v18 }
 0x52c   : > { %v7037_v27 = vpop.f32.mrb[4].mxu1  ;;  %7208 = vmatpush3.bf16.msra.mxu0 %v7892_v9  ;;  %v10045_v29 = vpop.f32.mrb[4].mxu0 }
 0x52d   : > { %v2257_v33 = vpop.f32.mrb[5].mxu1  ;;  %7209 = vmatprep.subr.bf16.mxu0 %v7893_v26  ;;  %v2112_v35 = vpop.f32.mrb[5].mxu0 }
 0x52e   : > { %v7038_v37 = vpop.f32.mrb[6].mxu1  ;;  %v7006_v38 = vpop.f32.mrb[6].mxu0 }
 0x52f   : > { %v2848_v39 = vpack.c.bf16 %v7038_v37, %v7037_v27  ;;  %v2260_v40 = vpop.f32.mrb[7].mxu1  ;;  %v2824_v41 = vpack.c.bf16 %v7006_v38, %v10045_v29  ;;  %v2115_v44 = vpop.f32.mrb[7].mxu0 }
 0x530   : > { %v2847_v45 = vpack.c.bf16 %v2260_v40, %v2257_v33  ;;  %7210 = vmatpush3.bf16.msra.mxu0 %v7893_v26  ;;  %v2823_v46 = vpack.c.bf16 %v2115_v44, %v2112_v35 }
 0x531   : > { %7211 = vmatprep.subr.bf16.mxu0 %v7894_v34 }
 0x532   : > { %7195 = vmatprep.mubr.bf16.mxu0 %v2847_v45 }
 0x533   : > { %7196 = vmatmul.mubr.bf16.gmra.mrb[36].mxu0 %v2848_v39 }
 0x534   : > { %v7041_v50 = vpop.f32.mrb[8].mxu1  ;;  %7212 = vmatpush3.bf16.msra.mxu0 %v7894_v34  ;;  %v7009_v51 = vpop.f32.mrb[8].mxu0 }
 0x535   : > { %v2273_v52 = vpop.f32.mrb[9].mxu1  ;;  %7213 = vmatprep.subr.bf16.mxu0 %v7895_v47  ;;  %v2128_v55 = vpop.f32.mrb[9].mxu0 }
 0x536   : > { %v7042_v56 = vpop.f32.mrb[10].mxu1  ;;  %v7010_v57 = vpop.f32.mrb[10].mxu0 }
 0x537   : > { %v2850_v58 = vpack.c.bf16 %v7042_v56, %v7041_v50  ;;  %v2276_v60 = vpop.f32.mrb[11].mxu1  ;;  %v2826_v61 = vpack.c.bf16 %v7010_v57, %v7009_v51  ;;  %v2131_v62 = vpop.f32.mrb[11].mxu0 }
 0x538   : > { %v2849_v63 = vpack.c.bf16 %v2276_v60, %v2273_v52  ;;  %7214 = vmatpush3.bf16.msra.mxu0 %v7895_v47  ;;  %v2825_v2 = vpack.c.bf16 %v2131_v62, %v2128_v55 }
 0x539   : > { %7215 = vmatprep.subr.bf16.mxu0 %v7896_v53 }
 0x53a   : > { %7199 = vmatprep.mubr.bf16.mxu0 %v2849_v63 }
 0x53b   : > { %7200 = vmatmul.mubr.bf16.gmra.mrb[40].mxu0 %v2850_v58 }
 0x53c   : > { %v7045_v4 = vpop.f32.mrb[12].mxu1  ;;  %7216 = vmatpush3.bf16.msra.mxu0 %v7896_v53  ;;  %v7013_v5 = vpop.f32.mrb[12].mxu0 }
 0x53d   : > { %v2289_v6 = vpop.f32.mrb[13].mxu1  ;;  %7217 = vmatprep.subr.bf16.mxu0 %v7897_v3  ;;  %v2144_v11 = vpop.f32.mrb[13].mxu0 }
 0x53e   : > { %v7046_v12 = vpop.f32.mrb[14].mxu1  ;;  %v7014_v43 = vpop.f32.mrb[14].mxu0 }
 0x53f   : > { %v2852_v48 = vpack.c.bf16 %v7046_v12, %v7045_v4  ;;  %v2292_v30 = vpop.f32.mrb[15].mxu1  ;;  %v2828_v31 = vpack.c.bf16 %v7014_v43, %v7013_v5  ;;  %v2147_v59 = vpop.f32.mrb[15].mxu0 }
 0x540   : > { %v2851_v0 = vpack.c.bf16 %v2292_v30, %v2289_v6  ;;  %7218 = vmatpush3.bf16.msra.mxu0 %v7897_v3  ;;  %v2827_v1 = vpack.c.bf16 %v2147_v59, %v2144_v11 }
 0x541   : > { %7219 = vmatprep.subr.bf16.mxu0 %v7898_v8 }
 0x542   : > { %7203 = vmatprep.mubr.bf16.mxu0 %v2851_v0 }
 0x543   : > { %7204 = vmatmul.mubr.bf16.gmra.mrb[44].mxu0 %v2852_v48 }
 0x544   : > { %7220 = vmatpush3.bf16.msra.mxu0 %v7898_v8  ;;  %7223 = vmatprep.mubr.bf16.mxu0 %v2821_v25 }
 0x545   : > { %7221 = vmatprep.subr.bf16.mxu0 %v7899_v7 }
 0x548   : > { %7222 = vmatpush3.bf16.msra.mxu0 %v7899_v7 }
 0x54b   : > { %7224 = vmatmul.mubr.bf16.vlgmr.msra.gmra.mrb[32].mxu0 %v2822_v20 }
 0x54c   : > { %7227 = vmatprep.mubr.bf16.mxu0 %v2823_v46 }
 0x553   : > { %7228 = vmatmul.mubr.bf16.gmra.mrb[36].mxu0 %v2824_v41 }
 0x554   : > { %7231 = vmatprep.mubr.bf16.mxu0 %v2825_v2 }
 0x55b   : > { %7232 = vmatmul.mubr.bf16.gmra.mrb[40].mxu0 %v2826_v61 }
 0x55c   : > { %7235 = vmatprep.mubr.bf16.mxu0 %v2827_v1 }
 0x563   : > { %7236 = vmatmul.mubr.bf16.gmra.mrb[44].mxu0 %v2828_v31 }
 0x564   : > { %v7097_v9 = vpop.f32.mrb[16].mxu0  ;;  %v7161_v10 = vpop.f32.mrb[16].mxu1 }
 0x565   : > { %v10060_v14 = vsub.f32 %v7097_v9, %v7161_v10  ;;  %v2483_v16 = vpop.f32.mrb[17].mxu0  ;;  %v2677_v18 = vpop.f32.mrb[17].mxu1 }
 0x566   : > { %v10062_v15 = vsub.f32 %v2483_v16, %v2677_v18  ;;  %v7098_v19 = vpop.f32.mrb[18].mxu0  ;;  %v7162_v21 = vpop.f32.mrb[18].mxu1 }
 0x567   : > { %11121 = vst [vmem:[#allocation83_spill] sm:$0xff] %v10060_v14  ;;  %v10064_v23 = vsub.f32 %v7098_v19, %v7162_v21  ;;  %v2486_v13 = vpop.f32.mrb[19].mxu0  ;;  %v2680_v17 = vpop.f32.mrb[19].mxu1  ;;  %v2758_v20 = vmul.f32 %v10060_v14, %v10060_v14 }
 0x568   : > { %11122 = vst [vmem:[#allocation84_spill] sm:$0xff] %v10062_v15  ;;  %v10068_v25 = vsub.f32 %v2486_v13, %v2680_v17  ;;  %v2756_v26 = vmul.f32 %v10062_v15, %v10062_v15 }
 0x569   : > { %11123 = vst [vmem:[#allocation85_spill] sm:$0xff] %v10064_v23  ;;  %v2779_v27 = vsel %vm2772_vm2, %v2758_v20, 0.0  ;;  %v2759_v29 = vmul.f32 %v10064_v23, %v10064_v23  ;;  %v10493_v23 = vld [vmem:[%s1538_s4] ss:$0 sm:$0xff] }
 0x56a   : > { %11124 = vst [vmem:[#allocation86_spill] sm:$0xff] %v10068_v25  ;;  %2780 = vadd.xlane.f32.xlu1 %v2779_v27  ;;  %v2773_v33 = vsel %vm2772_vm2, %v2756_v26, 0.0  ;;  %v2757_v34 = vmul.f32 %v10068_v25, %v10068_v25 }
 0x56b   : > { %2774 = vadd.xlane.f32.xlu0 %v2773_v33  ;;  %v2782_v41 = vsel %vm2772_vm2, %v2759_v29, 0.0 }
 0x56c   : > { %v7101_v35 = vpop.f32.mrb[20].mxu0  ;;  %v7165_v37 = vpop.f32.mrb[20].mxu1  ;;  %v2776_v47 = vsel %vm2772_vm2, %v2757_v34, 0.0 }
 0x56d   : > { %v10078_v38 = vsub.f32 %v7101_v35, %v7165_v37  ;;  %v2499_v39 = vpop.f32.mrb[21].mxu0  ;;  %v2693_v40 = vpop.f32.mrb[21].mxu1 }
 0x56e   : > { %v10081_v44 = vsub.f32 %v2499_v39, %v2693_v40  ;;  %v7166_v45 = vpop.f32.mrb[22].mxu1  ;;  %2783 = vadd.xlane.f32.xlu1 %v2782_v41  ;;  %v7102_v46 = vpop.f32.mrb[22].mxu0 }
 0x56f   : > { %11125 = vst [vmem:[#allocation87_spill] sm:$0xff] %v10078_v38  ;;  %v10084_v50 = vsub.f32 %v7102_v46, %v7166_v45  ;;  %v2696_v51 = vpop.f32.mrb[23].mxu1  ;;  %2777 = vadd.xlane.f32.xlu0 %v2776_v47  ;;  %v2502_v52 = vpop.f32.mrb[23].mxu0  ;;  %v2762_v58 = vmul.f32 %v10078_v38, %v10078_v38 }
 0x570   : > { %11126 = vst [vmem:[#allocation88_spill] sm:$0xff] %v10081_v44  ;;  %v10086_v53 = vsub.f32 %v2502_v52, %v2696_v51  ;;  %v2760_v55 = vmul.f32 %v10081_v44, %v10081_v44 }
 0x571   : > { %11127 = vst [vmem:[#allocation89_spill] sm:$0xff] %v10084_v50  ;;  %v2763_v63 = vmul.f32 %v10084_v50, %v10084_v50  ;;  %v2791_v11 = vsel %vm2772_vm2, %v2762_v58, 0.0  ;;  %v7903_v58 = vld [vmem:[%s9684_s8 + $0x18] sm:$0xff]  }
 0x572   : > { %11128 = vst [vmem:[#allocation90_spill] sm:$0xff] %v10086_v53  ;;  %v2785_v56 = vsel %vm2772_vm2, %v2760_v55, 0.0  ;;  %v2761_v57 = vmul.f32 %v10086_v53, %v10086_v53  ;;  %v7900_v55 = vld [vmem:[%s9684_s8] sm:$0xff]  }
 0x573   : > { %2786 = vadd.xlane.f32.xlu0 %v2785_v56  ;;  %v2794_v31 = vsel %vm2772_vm2, %v2763_v63, 0.0  ;;  %7239 = vmatprep.subr.bf16.mxu1 %v7900_v55  ;;  %v7901_v56 = vld [vmem:[%s9684_s8 + $0x8] sm:$0xff]   ;;  %v7907_v63 = vld [vmem:[%s9684_s8 + $0x38] sm:$0xff]  }
 0x574   : > { %v7105_v60 = vpop.f32.mrb[24].mxu0  ;;  %v7169_v61 = vpop.f32.mrb[24].mxu1  ;;  %v2788_v62 = vsel %vm2772_vm2, %v2761_v57, 0.0  ;;  %7240 = vmatpush3.bf16.msra.mxu1 %v7900_v55  ;;  %v7902_v57 = vld [vmem:[%s9684_s8 + $0x10] sm:$0xff]  }
 0x575   : > { %v10098_v2 = vsub.f32 %v7105_v60, %v7169_v61  ;;  %v2709_v3 = vpop.f32.mrb[25].mxu1  ;;  %2789 = vadd.xlane.f32.xlu1 %v2788_v62  ;;  %v2515_v4 = vpop.f32.mrb[25].mxu0  ;;  %7241 = vmatprep.subr.bf16.mxu1 %v7901_v56  ;;  %v7904_v60 = vld [vmem:[%s9684_s8 + $0x20] sm:$0xff]   ;;  %v7905_v61 = vld [vmem:[%s9684_s8 + $0x28] sm:$0xff]   ;;  %v7906_v62 = vld [vmem:[%s9684_s8 + $0x30] sm:$0xff]   ;;  %s11139_s8 = scalar_lea.vmem [#allocation9], %s9675_s16 }
 0x576   : > { %v10100_v5 = vsub.f32 %v2515_v4, %v2709_v3  ;;  %v7106_v6 = vpop.f32.mrb[26].mxu0  ;;  %v7170_v8 = vpop.f32.mrb[26].mxu1 }
 0x577   : > { %11129 = vst [vmem:[#allocation91_spill] sm:$0xff] %v10098_v2  ;;  %v10103_v12 = vsub.f32 %v7106_v6, %v7170_v8  ;;  %v2712_v43 = vpop.f32.mrb[27].mxu1  ;;  %2792 = vadd.xlane.f32.xlu0 %v2791_v11  ;;  %v2518_v48 = vpop.f32.mrb[27].mxu0  ;;  %v2766_v7 = vmul.f32 %v10098_v2, %v10098_v2 }
 0x578   : > { %11130 = vst [vmem:[#allocation92_spill] sm:$0xff] %v10100_v5  ;;  %v10105_v30 = vsub.f32 %v2518_v48, %v2712_v43  ;;  %v2764_v59 = vmul.f32 %v10100_v5, %v10100_v5  ;;  %7242 = vmatpush3.bf16.msra.mxu1 %v7901_v56 }
 0x579   : > { %11131 = vst [vmem:[#allocation93_spill] sm:$0xff] %v10103_v12  ;;  %2795 = vadd.xlane.f32.xlu1 %v2794_v31  ;;  %v2767_v18 = vmul.f32 %v10103_v12, %v10103_v12  ;;  %v2803_v27 = vsel %vm2772_vm2, %v2766_v7, 0.0  ;;  %7243 = vmatprep.subr.bf16.mxu1 %v7902_v57  ;;  %v10151_v31 = vld [vmem:[%s1535_s19] ss:$0 sm:$0xff]  ;;  %s11140_s19 = sld [smem:[#allocation48_spill]] }
 0x57a   : > { %11132 = vst [vmem:[#allocation94_spill] sm:$0xff] %v10105_v30  ;;  %v2797_v0 = vsel %vm2772_vm2, %v2764_v59, 0.0  ;;  %v2765_v1 = vmul.f32 %v10105_v30, %v10105_v30 }
 0x57b   : > { %2798 = vadd.xlane.f32.xlu0 %v2797_v0  ;;  %v2806_v37 = vsel %vm2772_vm2, %v2767_v18, 0.0 }
 0x57c   : > { %v7109_v9 = vpop.f32.mrb[28].mxu0  ;;  %v7173_v10 = vpop.f32.mrb[28].mxu1  ;;  %v2800_v16 = vsel %vm2772_vm2, %v2765_v1, 0.0  ;;  %7244 = vmatpush3.bf16.msra.mxu1 %v7902_v57 }
 0x57d   : > { %v10118_v19 = vsub.f32 %v7109_v9, %v7173_v10  ;;  %v2725_v21 = vpop.f32.mrb[29].mxu1  ;;  %2801 = vadd.xlane.f32.xlu1 %v2800_v16  ;;  %v2531_v13 = vpop.f32.mrb[29].mxu0  ;;  %7245 = vmatprep.subr.bf16.mxu1 %v7903_v58  ;;  %v10157_v10 = vld [vmem:[%s11138_s25] ss:$0 sm:$0xff] }
 0x57e   : > { %v10120_v17 = vsub.f32 %v2531_v13, %v2725_v21  ;;  %v7110_v20 = vpop.f32.mrb[30].mxu0  ;;  %v7174_v26 = vpop.f32.mrb[30].mxu1 }
 0x57f   : > { %11133 = vst [vmem:[#allocation95_spill] sm:$0xff] %v10118_v19  ;;  %v10123_v29 = vsub.f32 %v7110_v20, %v7174_v26  ;;  %v2728_v33 = vpop.f32.mrb[31].mxu1  ;;  %2804 = vadd.xlane.f32.xlu0 %v2803_v27  ;;  %v2534_v34 = vpop.f32.mrb[31].mxu0  ;;  %v2770_v45 = vmul.f32 %v10118_v19, %v10118_v19 }
 0x580   : > { %11134 = vst [vmem:[#allocation96_spill] sm:$0xff] %v10120_v17  ;;  %v10125_v35 = vsub.f32 %v2534_v34, %v2728_v33  ;;  %v2768_v39 = vmul.f32 %v10120_v17, %v10120_v17  ;;  %7246 = vmatpush3.bf16.msra.mxu1 %v7903_v58 }
 0x581   : > { %11135 = vst [vmem:[#allocation97_spill] sm:$0xff] %v10123_v29  ;;  %2807 = vadd.xlane.f32.xlu1 %v2806_v37  ;;  %v2771_v47 = vmul.f32 %v10123_v29, %v10123_v29  ;;  %v2815_v51 = vsel %vm2772_vm2, %v2770_v45, 0.0  ;;  %7247 = vmatprep.subr.bf16.mxu1 %v7904_v60 }
 0x582   : > { %11136 = vst [vmem:[#allocation98_spill] sm:$0xff] %v10125_v35  ;;  %v2809_v40 = vsel %vm2772_vm2, %v2768_v39, 0.0  ;;  %v2769_v41 = vmul.f32 %v10125_v35, %v10125_v35 }
 0x583   : > { %2810 = vadd.xlane.f32.xlu0 %v2809_v40  ;;  %v2818_v52 = vsel %vm2772_vm2, %v2771_v47, 0.0 }
 0x584   : > { %v2812_v46 = vsel %vm2772_vm2, %v2769_v41, 0.0  ;;  %7248 = vmatpush3.bf16.msra.mxu1 %v7904_v60 }
 0x585   : > { %2813 = vadd.xlane.f32.xlu1 %v2812_v46  ;;  %7249 = vmatprep.subr.bf16.mxu1 %v7905_v61 }
 0x587   : > { %2816 = vadd.xlane.f32.xlu0 %v2815_v51 }
 0x588   : > { %7250 = vmatpush3.bf16.msra.mxu1 %v7905_v61 }
 0x589   : > { %2819 = vadd.xlane.f32.xlu1 %v2818_v52  ;;  %7251 = vmatprep.subr.bf16.mxu1 %v7906_v62 }
 0x58c   : > { %7252 = vmatpush3.bf16.msra.mxu1 %v7906_v62 }
 0x58d   : > { %7253 = vmatprep.subr.bf16.mxu1 %v7907_v63 }
 0x590   : > { %7254 = vmatpush3.bf16.msra.mxu1 %v7907_v63 }
 0x5f7   : > { %v2781_v4 = vpop.xlane.xlu1 %2780 }
 0x5f8   : > { %v2775_v3 = vpop.xlane.xlu0 %2774  ;;  %v3168_v0 = vmul.f32 %v10151_v31, %v2781_v4 }
 0x5f9   : > { %v3166_v1 = vmul.f32 %v10151_v31, %v2775_v3 }
 0x5fb   : > { %v2784_v8 = vpop.xlane.xlu1 %2783 }
 0x5fc   : > { %v2778_v6 = vpop.xlane.xlu0 %2777  ;;  %v3169_v16 = vmul.f32 %v10151_v31, %v2784_v8 }
 0x5fd   : > { %v3167_v13 = vmul.f32 %v10151_v31, %v2778_v6 }
 0x600   : > { %v2787_v11 = vpop.xlane.xlu0 %2786 }
 0x601   : > { %v3170_v57 = vmul.f32 %v10151_v31, %v2787_v11 }
 0x602   : > { %v2790_v43 = vpop.xlane.xlu1 %2789 }
 0x603   : > { %v3171_v6 = vmul.f32 %v10151_v31, %v2790_v43 }
 0x604   : > { %v2793_v48 = vpop.xlane.xlu0 %2792 }
 0x605   : > { %v3172_v52 = vmul.f32 %v10151_v31, %v2793_v48 }
 0x606   : > { %v2796_v59 = vpop.xlane.xlu1 %2795 }
 0x607   : > { %v3173_v62 = vmul.f32 %v10151_v31, %v2796_v59 }
 0x608   : > { %v2799_v7 = vpop.xlane.xlu0 %2798 }
 0x60a   : > { %v2802_v37 = vpop.xlane.xlu1 %2801 }
 0x60c   : > { %v2805_v46 = vpop.xlane.xlu0 %2804 }
 0x60e   : > { %v2808_v8 = vpop.xlane.xlu1 %2807 }
 0x61e   : > { %v7225_v9 = vpop.f32.mrb[32].mxu0 }
 0x61f   : > { %v3184_v18 = vadd.f32 %v7225_v9, %v3168_v0  ;;  %v3096_v21 = vpop.f32.mrb[33].mxu0 }
 0x620   : > { %v3182_v20 = vadd.f32 %v3166_v1, %v3096_v21  ;;  %v7226_v26 = vpop.f32.mrb[34].mxu0 }
 0x621   : > { %v10162_v27 = vadd.f32 %v10157_v10, %v3184_v18  ;;  %v3185_v33 = vadd.f32 %v7226_v26, %v3169_v16  ;;  %v3099_v34 = vpop.f32.mrb[35].mxu0  ;;  %v2811_v18 = vpop.xlane.xlu0 %2810 }
 0x622   : > { %v10165_v39 = vadd.f32 %v10157_v10, %v3182_v20  ;;  %v3183_v40 = vadd.f32 %v3167_v13, %v3099_v34 }
 0x623   : > { %v3223_v41 = vsub.f32 0.0, %v10162_v27  ;;  %v10169_v45 = vadd.f32 %v10157_v10, %v3185_v33  ;;  %v3176_v33 = vmul.f32 %v10151_v31, %v2805_v46 }
 0x624   : > { %v3221_v47 = vsub.f32 0.0, %v10165_v39  ;;  %v10173_v51 = vadd.f32 %v10157_v10, %v3183_v40 }
 0x625   : > { %v3241_v55 = vmul.f32 1.442695, %v3223_v41  ;;  %v3224_v56 = vsub.f32 0.0, %v10169_v45  ;;  %v3174_v41 = vmul.f32 %v10151_v31, %v2799_v7 }
 0x626   : > { %v3237_v58 = vmul.f32 1.442695, %v3221_v47  ;;  %v3222_v60 = vsub.f32 0.0, %v10173_v51  ;;  %v7229_v61 = vpop.f32.mrb[36].mxu0  ;;  %v2814_v47 = vpop.xlane.xlu1 %2813 }
 0x627   : > { %7956 = vpow2.f32 %v3241_v55  ;;  %v3243_v63 = vmul.f32 1.442695, %v3224_v56  ;;  %v3188_v3 = vadd.f32 %v7229_v61, %v3172_v52  ;;  %v3112_v4 = vpop.f32.mrb[37].mxu0 }
 0x628   : > { %7958 = vpow2.f32 %v3237_v58  ;;  %v3239_v48 = vmul.f32 1.442695, %v3222_v60  ;;  %v3186_v0 = vadd.f32 %v3170_v57, %v3112_v4  ;;  %v7230_v1 = vpop.f32.mrb[38].mxu0  ;;  %v3177_v57 = vmul.f32 %v10151_v31, %v2808_v8 }
 0x629   : > { %7960 = vpow2.f32 %v3243_v63  ;;  %v10182_v11 = vadd.f32 %v10157_v10, %v3188_v3  ;;  %v3189_v9 = vadd.f32 %v7230_v1, %v3173_v62  ;;  %v3115_v16 = vpop.f32.mrb[39].mxu0  ;;  %v3175_v62 = vmul.f32 %v10151_v31, %v2802_v37  ;;  %v2817_v63 = vpop.xlane.xlu0 %2816 }
 0x62a   : > { %7962 = vpow2.f32 %v3239_v48  ;;  %v10185_v59 = vadd.f32 %v10157_v10, %v3186_v0  ;;  %v3187_v21 = vadd.f32 %v3171_v6, %v3115_v16 }
 0x62b   : > { %v3227_v13 = vsub.f32 0.0, %v10182_v11  ;;  %v10189_v43 = vadd.f32 %v10157_v10, %v3189_v9 }
 0x62c   : > { %v3225_v20 = vsub.f32 0.0, %v10185_v59  ;;  %v10193_v26 = vadd.f32 %v10157_v10, %v3187_v21  ;;  %v3180_v21 = vmul.f32 %v10151_v31, %v2817_v63 }
 0x62d   : > { %v3249_v34 = vmul.f32 1.442695, %v3227_v13  ;;  %v3228_v40 = vsub.f32 0.0, %v10189_v43 }
 0x62e   : > { %v3245_v52 = vmul.f32 1.442695, %v3225_v20  ;;  %v3226_v55 = vsub.f32 0.0, %v10193_v26  ;;  %v7233_v56 = vpop.f32.mrb[40].mxu0 }
 0x62f   : > { %7964 = vpow2.f32 %v3249_v34  ;;  %v3251_v58 = vmul.f32 1.442695, %v3228_v40  ;;  %v3192_v60 = vadd.f32 %v7233_v56, %v3176_v33  ;;  %v3128_v61 = vpop.f32.mrb[41].mxu0  ;;  %v2820_v40 = vpop.xlane.xlu1 %2819 }
 0x630   : > { %7966 = vpow2.f32 %v3245_v52  ;;  %v3247_v46 = vmul.f32 1.442695, %v3226_v55  ;;  %v3190_v3 = vadd.f32 %v3174_v41, %v3128_v61  ;;  %v7234_v4 = vpop.f32.mrb[42].mxu0 }
 0x631   : > { %v7957_v6 = vpop.eup %7956  ;;  %7968 = vpow2.f32 %v3251_v58  ;;  %v10202_v7 = vadd.f32 %v10157_v10, %v3192_v60  ;;  %v3193_v48 = vadd.f32 %v7234_v4, %v3177_v57  ;;  %v3131_v0 = vpop.f32.mrb[43].mxu0  ;;  %v3178_v60 = vmul.f32 %v10151_v31, %v2811_v18 }
 0x632   : > { %v7959_v1 = vpop.eup %7958  ;;  %v3271_v8 = vadd.f32 1.0, %v7957_v6  ;;  %7970 = vpow2.f32 %v3247_v46  ;;  %v10205_v9 = vadd.f32 %v10157_v10, %v3190_v3  ;;  %v3191_v16 = vadd.f32 %v3175_v62, %v3131_v0 }
 0x633   : > { %v7961_v37 = vpop.eup %7960  ;;  %v3269_v13 = vadd.f32 1.0, %v7959_v1  ;;  %v3231_v20 = vsub.f32 0.0, %v10202_v7  ;;  %v10210_v33 = vadd.f32 %v10157_v10, %v3193_v48  ;;  %v3181_v46 = vmul.f32 %v10151_v31, %v2820_v40 }
 0x634   : > { %v7963_v34 = vpop.eup %7962  ;;  %7972 = vrcp.f32 %v3271_v8  ;;  %v3272_v41 = vadd.f32 1.0, %v7961_v37  ;;  %v3229_v52 = vsub.f32 0.0, %v10205_v9  ;;  %v10214_v55 = vadd.f32 %v10157_v10, %v3191_v16 }
 0x635   : > { %7974 = vrcp.f32 %v3269_v13  ;;  %v3270_v56 = vadd.f32 1.0, %v7963_v34  ;;  %v3257_v57 = vmul.f32 1.442695, %v3231_v20  ;;  %v3232_v58 = vsub.f32 0.0, %v10210_v33 }
 0x636   : > { %7976 = vrcp.f32 %v3272_v41  ;;  %v3253_v61 = vmul.f32 1.442695, %v3229_v52  ;;  %v3230_v62 = vsub.f32 0.0, %v10214_v55  ;;  %v7237_v63 = vpop.f32.mrb[44].mxu0  ;;  %v3179_v48 = vmul.f32 %v10151_v31, %v2814_v47 }
 0x637   : > { %7978 = vrcp.f32 %v3270_v56  ;;  %v3259_v3 = vmul.f32 1.442695, %v3232_v58  ;;  %v3196_v4 = vadd.f32 %v7237_v63, %v3180_v21  ;;  %v3144_v6 = vpop.f32.mrb[45].mxu0 }
 0x638   : > { %7980 = vpow2.f32 %v3257_v57  ;;  %v3255_v0 = vmul.f32 1.442695, %v3230_v62  ;;  %v3194_v1 = vadd.f32 %v3178_v60, %v3144_v6  ;;  %v7238_v8 = vpop.f32.mrb[46].mxu0 }
 0x639   : > { %v7965_v16 = vpop.eup %7964  ;;  %7982 = vpow2.f32 %v3253_v61  ;;  %v10222_v18 = vadd.f32 %v10157_v10, %v3196_v4  ;;  %v3197_v37 = vadd.f32 %v7238_v8, %v3181_v46  ;;  %v3147_v13 = vpop.f32.mrb[47].mxu0 }
 0x63a   : > { %v7967_v20 = vpop.eup %7966  ;;  %v3275_v34 = vadd.f32 1.0, %v7965_v16  ;;  %7984 = vpow2.f32 %v3259_v3  ;;  %v10225_v40 = vadd.f32 %v10157_v10, %v3194_v1  ;;  %v3195_v21 = vadd.f32 %v3179_v48, %v3147_v13 }
 0x63b   : > { %v7969_v41 = vpop.eup %7968  ;;  %v3273_v31 = vadd.f32 1.0, %v7967_v20  ;;  %7986 = vpow2.f32 %v3255_v0  ;;  %v3235_v47 = vsub.f32 0.0, %v10222_v18  ;;  %v10229_v52 = vadd.f32 %v10157_v10, %v3197_v37 }
 0x63c   : > { %v7971_v56 = vpop.eup %7970  ;;  %7988 = vrcp.f32 %v3275_v34  ;;  %v3276_v57 = vadd.f32 1.0, %v7969_v41  ;;  %v3233_v58 = vsub.f32 0.0, %v10225_v40  ;;  %v10233_v60 = vadd.f32 %v10157_v10, %v3195_v21 }
 0x63d   : > { %7990 = vrcp.f32 %v3273_v31  ;;  %v3274_v61 = vadd.f32 1.0, %v7971_v56  ;;  %v3265_v62 = vmul.f32 1.442695, %v3235_v47  ;;  %v3236_v63 = vsub.f32 0.0, %v10229_v52 }
 0x63e   : > { %v7973_v46 = vpop.eup %7972  ;;  %7992 = vrcp.f32 %v3276_v57  ;;  %v3261_v3 = vmul.f32 1.442695, %v3233_v58  ;;  %v3234_v4 = vsub.f32 0.0, %v10233_v60 }
 0x63f   : > { %v7975_v6 = vpop.eup %7974  ;;  %7994 = vrcp.f32 %v3274_v61  ;;  %v3267_v48 = vmul.f32 1.442695, %v3236_v63  ;;  %v3319_v10 = vmul.f32 %v7973_v46, %v10162_v27 }
 0x640   : > { %v7977_v0 = vpop.eup %7976  ;;  %7996 = vpow2.f32 %v3265_v62  ;;  %v3263_v1 = vmul.f32 1.442695, %v3234_v4  ;;  %v3317_v13 = vmul.f32 %v7975_v6, %v10165_v39 }
 0x641   : > { %v7979_v8 = vpop.eup %7978  ;;  %v3320_v16 = vmul.f32 %v7977_v0, %v10169_v45  ;;  %7998 = vpow2.f32 %v3261_v3 }
 0x642   : > { %v7981_v37 = vpop.eup %7980  ;;  %v3318_v20 = vmul.f32 %v7979_v8, %v10173_v51  ;;  %8000 = vpow2.f32 %v3267_v48 }
 0x643   : > { %v7983_v34 = vpop.eup %7982  ;;  %v3334_v21 = vpack.c.bf16 %v3320_v16, %v3319_v10  ;;  %v3279_v41 = vadd.f32 1.0, %v7981_v37  ;;  %8002 = vpow2.f32 %v3263_v1 }
 0x644   : > { %v7985_v31 = vpop.eup %7984  ;;  %v3277_v47 = vadd.f32 1.0, %v7983_v34  ;;  %v3333_v56 = vpack.c.bf16 %v3318_v20, %v3317_v13 }
 0x645   : > { %v7987_v57 = vpop.eup %7986  ;;  %8004 = vrcp.f32 %v3279_v41  ;;  %v3280_v58 = vadd.f32 1.0, %v7985_v31 }
 0x646   : > { %v7989_v27 = vpop.eup %7988  ;;  %8006 = vrcp.f32 %v3277_v47  ;;  %v3278_v45 = vadd.f32 1.0, %v7987_v57  ;;  %7255 = vmatprep.mubr.bf16.mxu1 %v3333_v56 }
 0x647   : > { %v7991_v61 = vpop.eup %7990  ;;  %8008 = vrcp.f32 %v3280_v58  ;;  %7256 = vmatmul.mubr.bf16.vlgmr.msra.gmra.mrb[32].mxu1 %v3334_v21  ;;  %v3323_v62 = vmul.f32 %v7989_v27, %v10182_v11 }
 0x648   : > { %v7993_v39 = vpop.eup %7992  ;;  %8010 = vrcp.f32 %v3278_v45  ;;  %v3321_v3 = vmul.f32 %v7991_v61, %v10185_v59 }
 0x649   : > { %v7995_v51 = vpop.eup %7994  ;;  %v3324_v63 = vmul.f32 %v7993_v39, %v10189_v43  ;;  %v7908_v39 = vld [vmem:[%s9692_s15] sm:$0xff]  }
 0x64a   : > { %v7997_v46 = vpop.eup %7996  ;;  %v3322_v4 = vmul.f32 %v7995_v51, %v10193_v26  ;;  %v7909_v51 = vld [vmem:[%s9700_s28] sm:$0xff]   ;;  %7271 = vmatprep.subr.bf16.mxu1 %v7908_v39 }
 0x64b   : > { %v7999_v6 = vpop.eup %7998  ;;  %v3283_v48 = vadd.f32 1.0, %v7997_v46  ;;  %v3336_v0 = vpack.c.bf16 %v3324_v63, %v3323_v62  ;;  %7303 = vmatprep.subr.bf16.mxu0 %v7909_v51  ;;  %7272 = vmatpush3.bf16.msra.mxu1 %v7908_v39  ;;  %v7914_v62 = vld [vmem:[%s9692_s15 + $0x18] sm:$0xff]   ;;  %v7916_v46 = vld [vmem:[%s9692_s15 + $0x20] sm:$0xff]  }
 0x64c   : > { %v8001_v1 = vpop.eup %8000  ;;  %v3281_v8 = vadd.f32 1.0, %v7999_v6  ;;  %v3335_v10 = vpack.c.bf16 %v3322_v4, %v3321_v3  ;;  %7304 = vmatpush3.bf16.msra.mxu0 %v7909_v51  ;;  %v7915_v63 = vld [vmem:[%s9700_s28 + $0x18] sm:$0xff]   ;;  %v7917_v3 = vld [vmem:[%s9700_s28 + $0x20] sm:$0xff]   ;;  %v7919_v6 = vld [vmem:[%s9700_s28 + $0x28] sm:$0xff]  }
 0x64d   : > { %v8003_v16 = vpop.eup %8002  ;;  %8012 = vrcp.f32 %v3283_v48  ;;  %v3284_v37 = vadd.f32 1.0, %v8001_v1  ;;  %v7918_v4 = vld [vmem:[%s9692_s15 + $0x28] sm:$0xff]   ;;  %v7920_v48 = vld [vmem:[%s9692_s15 + $0x30] sm:$0xff]   ;;  %v7922_v1 = vld [vmem:[%s9692_s15 + $0x38] sm:$0xff]  }
 0x64e   : > { %8014 = vrcp.f32 %v3281_v8  ;;  %v3282_v13 = vadd.f32 1.0, %v8003_v16  ;;  %7259 = vmatprep.mubr.bf16.mxu1 %v3335_v10  ;;  %v7923_v8 = vld [vmem:[%s9700_s28 + $0x38] sm:$0xff]   ;;  %v10271_v10 = vld [vmem:[%s11139_s8] ss:$0 sm:$0xff] }
 0x64f   : > { %v8005_v11 = vpop.eup %8004  ;;  %8016 = vrcp.f32 %v3284_v37  ;;  %7260 = vmatmul.mubr.bf16.gmra.mrb[36].mxu1 %v3336_v0  ;;  %v7921_v0 = vld [vmem:[%s9700_s28 + $0x30] sm:$0xff]  }
 0x650   : > { %v8007_v43 = vpop.eup %8006  ;;  %8018 = vrcp.f32 %v3282_v13  ;;  %v3327_v26 = vmul.f32 %v8005_v11, %v10202_v7 }
 0x651   : > { %v8009_v59 = vpop.eup %8008  ;;  %v3325_v21 = vmul.f32 %v8007_v43, %v10205_v9 }
 0x652   : > { %v8011_v20 = vpop.eup %8010  ;;  %v3328_v34 = vmul.f32 %v8009_v59, %v10210_v33 }
 0x653   : > { %v3326_v41 = vmul.f32 %v8011_v20, %v10214_v55 }
 0x654   : > { %v3338_v31 = vpack.c.bf16 %v3328_v34, %v3327_v26 }
 0x655   : > { %v3337_v47 = vpack.c.bf16 %v3326_v41, %v3325_v21 }
 0x657   : > { %v8013_v56 = vpop.eup %8012  ;;  %7263 = vmatprep.mubr.bf16.mxu1 %v3337_v47 }
 0x658   : > { %v8015_v57 = vpop.eup %8014  ;;  %7264 = vmatmul.mubr.bf16.gmra.mrb[40].mxu1 %v3338_v31  ;;  %v3331_v7 = vmul.f32 %v8013_v56, %v10222_v18  ;;  %v7910_v18 = vld [vmem:[%s9692_s15 + $0x8] sm:$0xff]  }
 0x659   : > { %v8017_v58 = vpop.eup %8016  ;;  %v3329_v9 = vmul.f32 %v8015_v57, %v10225_v40  ;;  %7273 = vmatprep.subr.bf16.mxu1 %v7910_v18  ;;  %v7912_v40 = vld [vmem:[%s9692_s15 + $0x10] sm:$0xff]   ;;  %s11142_s15 = scalar_lea.vmem [#allocation12], %s9675_s16 }
 0x65a   : > { %v8019_v27 = vpop.eup %8018  ;;  %v3332_v33 = vmul.f32 %v8017_v58, %v10229_v52  ;;  %v7911_v52 = vld [vmem:[%s9700_s28 + $0x8] sm:$0xff]   ;;  %7274 = vmatpush3.bf16.msra.mxu1 %v7910_v18 }
 0x65b   : > { %v3330_v55 = vmul.f32 %v8019_v27, %v10233_v60  ;;  %7305 = vmatprep.subr.bf16.mxu0 %v7911_v52  ;;  %v7913_v60 = vld [vmem:[%s9700_s28 + $0x10] sm:$0xff]   ;;  %7275 = vmatprep.subr.bf16.mxu1 %v7912_v40  ;;  %s11143_s28 = scalar_lea.vmem [#allocation15], %s9675_s16 }
 0x65c   : > { %v3340_v45 = vpack.c.bf16 %v3332_v33, %v3331_v7  ;;  %7306 = vmatpush3.bf16.msra.mxu0 %v7911_v52 }
 0x65d   : > { %v3339_v61 = vpack.c.bf16 %v3330_v55, %v3329_v9  ;;  %7307 = vmatprep.subr.bf16.mxu0 %v7913_v60 }
 0x65e   : > { %7276 = vmatpush3.bf16.msra.mxu1 %v7912_v40 }
 0x65f   : > { %7267 = vmatprep.mubr.bf16.mxu1 %v3339_v61  ;;  %7277 = vmatprep.subr.bf16.mxu1 %v7914_v62 }
 0x660   : > { %7268 = vmatmul.mubr.bf16.gmra.mrb[44].mxu1 %v3340_v45  ;;  %7308 = vmatpush3.bf16.msra.mxu0 %v7913_v60 }
 0x661   : > { %7309 = vmatprep.subr.bf16.mxu0 %v7915_v63 }
 0x662   : > { %7278 = vmatpush3.bf16.msra.mxu1 %v7914_v62 }
 0x663   : > { %7279 = vmatprep.subr.bf16.mxu1 %v7916_v46 }
 0x664   : > { %7310 = vmatpush3.bf16.msra.mxu0 %v7915_v63 }
 0x665   : > { %7311 = vmatprep.subr.bf16.mxu0 %v7917_v3 }
 0x666   : > { %7280 = vmatpush3.bf16.msra.mxu1 %v7916_v46 }
 0x667   : > { %7281 = vmatprep.subr.bf16.mxu1 %v7918_v4 }
 0x668   : > { %7312 = vmatpush3.bf16.msra.mxu0 %v7917_v3 }
 0x669   : > { %7313 = vmatprep.subr.bf16.mxu0 %v7919_v6 }
 0x66a   : > { %7282 = vmatpush3.bf16.msra.mxu1 %v7918_v4 }
 0x66b   : > { %7283 = vmatprep.subr.bf16.mxu1 %v7920_v48 }
 0x66c   : > { %7314 = vmatpush3.bf16.msra.mxu0 %v7919_v6 }
 0x66d   : > { %7315 = vmatprep.subr.bf16.mxu0 %v7921_v0 }
 0x66e   : > { %7284 = vmatpush3.bf16.msra.mxu1 %v7920_v48 }
 0x66f   : > { %7285 = vmatprep.subr.bf16.mxu1 %v7922_v1 }
 0x670   : > { %7316 = vmatpush3.bf16.msra.mxu0 %v7921_v0 }
 0x671   : > { %7317 = vmatprep.subr.bf16.mxu0 %v7923_v8 }
 0x672   : > { %7286 = vmatpush3.bf16.msra.mxu1 %v7922_v1 }
 0x674   : > { %7318 = vmatpush3.bf16.msra.mxu0 %v7923_v8 }
 0x71a   : > { %v7257_v16 = vpop.f32.mrb[32].mxu1 }
 0x71b   : > { %v10274_v37 = vadd.f32 %v7257_v16, %v10271_v10  ;;  %v3446_v13 = vpop.f32.mrb[33].mxu1 }
 0x71c   : > { %v10277_v11 = vadd.f32 %v10271_v10, %v3446_v13  ;;  %v7258_v43 = vpop.f32.mrb[34].mxu1 }
 0x71d   : > { %v3511_v59 = vsub.f32 0.0, %v10274_v37  ;;  %v10281_v20 = vadd.f32 %v7258_v43, %v10271_v10  ;;  %v3449_v26 = vpop.f32.mrb[35].mxu1 }
 0x71e   : > { %v3509_v34 = vsub.f32 0.0, %v10277_v11  ;;  %v10285_v21 = vadd.f32 %v10271_v10, %v3449_v26 }
 0x71f   : > { %v3529_v41 = vmul.f32 1.442695, %v3511_v59  ;;  %v3512_v31 = vsub.f32 0.0, %v10281_v20 }
 0x720   : > { %v3525_v47 = vmul.f32 1.442695, %v3509_v34  ;;  %v3510_v56 = vsub.f32 0.0, %v10285_v21 }
 0x721   : > { %8020 = vpow2.f32 %v3529_v41  ;;  %v3531_v57 = vmul.f32 1.442695, %v3512_v31 }
 0x722   : > { %8022 = vpow2.f32 %v3525_v47  ;;  %v3527_v58 = vmul.f32 1.442695, %v3510_v56  ;;  %v7261_v27 = vpop.f32.mrb[36].mxu1 }
 0x723   : > { %8024 = vpow2.f32 %v3531_v57  ;;  %v10290_v7 = vadd.f32 %v7261_v27, %v10271_v10  ;;  %v3462_v33 = vpop.f32.mrb[37].mxu1 }
 0x724   : > { %8026 = vpow2.f32 %v3527_v58  ;;  %v10293_v9 = vadd.f32 %v10271_v10, %v3462_v33  ;;  %v7262_v55 = vpop.f32.mrb[38].mxu1 }
 0x725   : > { %v3515_v45 = vsub.f32 0.0, %v10290_v7  ;;  %v10297_v61 = vadd.f32 %v7262_v55, %v10271_v10  ;;  %v3465_v39 = vpop.f32.mrb[39].mxu1 }
 0x726   : > { %v3513_v51 = vsub.f32 0.0, %v10293_v9  ;;  %v10301_v18 = vadd.f32 %v10271_v10, %v3465_v39 }
 0x727   : > { %v3537_v52 = vmul.f32 1.442695, %v3515_v45  ;;  %v3516_v40 = vsub.f32 0.0, %v10297_v61 }
 0x728   : > { %v3533_v60 = vmul.f32 1.442695, %v3513_v51  ;;  %v3514_v62 = vsub.f32 0.0, %v10301_v18 }
 0x729   : > { %8028 = vpow2.f32 %v3537_v52  ;;  %v3539_v63 = vmul.f32 1.442695, %v3516_v40 }
 0x72a   : > { %8030 = vpow2.f32 %v3533_v60  ;;  %v3535_v46 = vmul.f32 1.442695, %v3514_v62 }
 0x72b   : > { %v8021_v3 = vpop.eup %8020  ;;  %8032 = vpow2.f32 %v3539_v63  ;;  %v7265_v4 = vpop.f32.mrb[40].mxu1 }
 0x72c   : > { %v8023_v6 = vpop.eup %8022  ;;  %v3559_v48 = vadd.f32 1.0, %v8021_v3  ;;  %8034 = vpow2.f32 %v3535_v46  ;;  %v10306_v0 = vadd.f32 %v7265_v4, %v10271_v10  ;;  %v3478_v1 = vpop.f32.mrb[41].mxu1 }
 0x72d   : > { %v8025_v8 = vpop.eup %8024  ;;  %v3557_v16 = vadd.f32 1.0, %v8023_v6  ;;  %v10309_v13 = vadd.f32 %v10271_v10, %v3478_v1  ;;  %v7266_v43 = vpop.f32.mrb[42].mxu1 }
 0x72e   : > { %v8027_v59 = vpop.eup %8026  ;;  %8036 = vrcp.f32 %v3559_v48  ;;  %v3560_v26 = vadd.f32 1.0, %v8025_v8  ;;  %v3519_v34 = vsub.f32 0.0, %v10306_v0  ;;  %v10313_v41 = vadd.f32 %v7266_v43, %v10271_v10  ;;  %v3481_v31 = vpop.f32.mrb[43].mxu1 }
 0x72f   : > { %8038 = vrcp.f32 %v3557_v16  ;;  %v3558_v47 = vadd.f32 1.0, %v8027_v59  ;;  %v3517_v56 = vsub.f32 0.0, %v10309_v13  ;;  %v10317_v57 = vadd.f32 %v10271_v10, %v3481_v31 }
 0x730   : > { %8040 = vrcp.f32 %v3560_v26  ;;  %v3545_v58 = vmul.f32 1.442695, %v3519_v34  ;;  %v3520_v27 = vsub.f32 0.0, %v10313_v41 }
 0x731   : > { %8042 = vrcp.f32 %v3558_v47  ;;  %v3541_v33 = vmul.f32 1.442695, %v3517_v56  ;;  %v3518_v55 = vsub.f32 0.0, %v10317_v57 }
 0x732   : > { %8044 = vpow2.f32 %v3545_v58  ;;  %v3547_v45 = vmul.f32 1.442695, %v3520_v27 }
 0x733   : > { %v8029_v39 = vpop.eup %8028  ;;  %8046 = vpow2.f32 %v3541_v33  ;;  %v3543_v51 = vmul.f32 1.442695, %v3518_v55  ;;  %v7269_v52 = vpop.f32.mrb[44].mxu1 }
 0x734   : > { %v8031_v40 = vpop.eup %8030  ;;  %v3563_v60 = vadd.f32 1.0, %v8029_v39  ;;  %8048 = vpow2.f32 %v3547_v45  ;;  %v10322_v62 = vadd.f32 %v7269_v52, %v10271_v10  ;;  %v3494_v63 = vpop.f32.mrb[45].mxu1 }
 0x735   : > { %v8033_v46 = vpop.eup %8032  ;;  %v3561_v3 = vadd.f32 1.0, %v8031_v40  ;;  %8050 = vpow2.f32 %v3543_v51  ;;  %v10325_v4 = vadd.f32 %v10271_v10, %v3494_v63  ;;  %v7270_v6 = vpop.f32.mrb[46].mxu1 }
 0x736   : > { %v8035_v48 = vpop.eup %8034  ;;  %8052 = vrcp.f32 %v3563_v60  ;;  %v3564_v1 = vadd.f32 1.0, %v8033_v46  ;;  %v3523_v8 = vsub.f32 0.0, %v10322_v62  ;;  %v10329_v16 = vadd.f32 %v7270_v6, %v10271_v10  ;;  %v3497_v43 = vpop.f32.mrb[47].mxu1 }
 0x737   : > { %8054 = vrcp.f32 %v3561_v3  ;;  %v3562_v59 = vadd.f32 1.0, %v8035_v48  ;;  %v3521_v26 = vsub.f32 0.0, %v10325_v4  ;;  %v10333_v34 = vadd.f32 %v10271_v10, %v3497_v43 }
 0x738   : > { %v8037_v31 = vpop.eup %8036  ;;  %8056 = vrcp.f32 %v3564_v1  ;;  %v3553_v47 = vmul.f32 1.442695, %v3523_v8  ;;  %v3524_v56 = vsub.f32 0.0, %v10329_v16 }
 0x739   : > { %v8039_v58 = vpop.eup %8038  ;;  %8058 = vrcp.f32 %v3562_v59  ;;  %v3549_v27 = vmul.f32 1.442695, %v3521_v26  ;;  %v3522_v33 = vsub.f32 0.0, %v10333_v34  ;;  %v10347_v46 = vmul.f32 %v8037_v31, %v10274_v37 }
 0x73a   : > { %v8041_v55 = vpop.eup %8040  ;;  %8060 = vpow2.f32 %v3553_v47  ;;  %v3555_v45 = vmul.f32 1.442695, %v3524_v56  ;;  %v10341_v40 = vmul.f32 %v8039_v58, %v10277_v11 }
 0x73b   : > { %v8043_v39 = vpop.eup %8042  ;;  %v10338_v51 = vmul.f32 %v8041_v55, %v10281_v20  ;;  %8062 = vpow2.f32 %v3549_v27  ;;  %v3551_v10 = vmul.f32 1.442695, %v3522_v33 }
 0x73c   : > { %v8045_v52 = vpop.eup %8044  ;;  %v10344_v60 = vmul.f32 %v8043_v39, %v10285_v21  ;;  %8064 = vpow2.f32 %v3555_v45 }
 0x73d   : > { %v8047_v63 = vpop.eup %8046  ;;  %v3567_v3 = vadd.f32 1.0, %v8045_v52  ;;  %8066 = vpow2.f32 %v3551_v10  ;;  %v3622_v11 = vpack.c.bf16 %v10338_v51, %v10347_v46 }
 0x73e   : > { %v8049_v6 = vpop.eup %8048  ;;  %v3565_v48 = vadd.f32 1.0, %v8047_v63  ;;  %v3621_v20 = vpack.c.bf16 %v10344_v60, %v10341_v40 }
 0x73f   : > { %v8051_v1 = vpop.eup %8050  ;;  %8068 = vrcp.f32 %v3567_v3  ;;  %v3568_v8 = vadd.f32 1.0, %v8049_v6 }
 0x740   : > { %v8053_v21 = vpop.eup %8052  ;;  %8070 = vrcp.f32 %v3565_v48  ;;  %v3566_v43 = vadd.f32 1.0, %v8051_v1  ;;  %7287 = vmatprep.mubr.bf16.mxu1 %v3621_v20  ;;  %7319 = vmatprep.mubr.bf16.mxu0 %v3621_v20 }
 0x741   : > { %v8055_v37 = vpop.eup %8054  ;;  %8072 = vrcp.f32 %v3568_v8  ;;  %7288 = vmatmul.mubr.bf16.vlgmr.msra.gmra.mrb[48].mxu1 %v3622_v11  ;;  %7320 = vmatmul.mubr.bf16.vlgmr.msra.gmra.mrb[48].mxu0 %v3622_v11  ;;  %v10363_v33 = vmul.f32 %v8053_v21, %v10290_v7 }
 0x742   : > { %v8057_v59 = vpop.eup %8056  ;;  %8074 = vrcp.f32 %v3566_v43  ;;  %v10357_v56 = vmul.f32 %v8055_v37, %v10293_v9 }
 0x743   : > { %v8059_v26 = vpop.eup %8058  ;;  %v10354_v31 = vmul.f32 %v8057_v59, %v10297_v61 }
 0x744   : > { %v8061_v47 = vpop.eup %8060  ;;  %v10360_v58 = vmul.f32 %v8059_v26, %v10301_v18 }
 0x745   : > { %v8063_v27 = vpop.eup %8062  ;;  %v3571_v55 = vadd.f32 1.0, %v8061_v47  ;;  %v3624_v9 = vpack.c.bf16 %v10354_v31, %v10363_v33 }
 0x746   : > { %v8065_v45 = vpop.eup %8064  ;;  %v3569_v39 = vadd.f32 1.0, %v8063_v27  ;;  %v3623_v10 = vpack.c.bf16 %v10360_v58, %v10357_v56 }
 0x747   : > { %v8067_v52 = vpop.eup %8066  ;;  %8076 = vrcp.f32 %v3571_v55  ;;  %v3572_v61 = vadd.f32 1.0, %v8065_v45 }
 0x748   : > { %8078 = vrcp.f32 %v3569_v39  ;;  %v3570_v63 = vadd.f32 1.0, %v8067_v52  ;;  %7291 = vmatprep.mubr.bf16.mxu1 %v3623_v10  ;;  %7323 = vmatprep.mubr.bf16.mxu0 %v3623_v10 }
 0x749   : > { %v8069_v18 = vpop.eup %8068  ;;  %8080 = vrcp.f32 %v3572_v61  ;;  %7292 = vmatmul.mubr.bf16.gmra.mrb[52].mxu1 %v3624_v9  ;;  %7324 = vmatmul.mubr.bf16.gmra.mrb[52].mxu0 %v3624_v9 }
 0x74a   : > { %v8071_v7 = vpop.eup %8070  ;;  %8082 = vrcp.f32 %v3570_v63  ;;  %v10379_v11 = vmul.f32 %v8069_v18, %v10306_v0 }
 0x74b   : > { %v8073_v3 = vpop.eup %8072  ;;  %v10373_v20 = vmul.f32 %v8071_v7, %v10309_v13 }
 0x74c   : > { %v8075_v6 = vpop.eup %8074  ;;  %v10370_v48 = vmul.f32 %v8073_v3, %v10313_v41 }
 0x74d   : > { %v10376_v1 = vmul.f32 %v8075_v6, %v10317_v57 }
 0x74e   : > { %v3626_v21 = vpack.c.bf16 %v10370_v48, %v10379_v11 }
 0x74f   : > { %v3625_v8 = vpack.c.bf16 %v10376_v1, %v10373_v20 }
 0x751   : > { %v8077_v43 = vpop.eup %8076  ;;  %7295 = vmatprep.mubr.bf16.mxu1 %v3625_v8  ;;  %7327 = vmatprep.mubr.bf16.mxu0 %v3625_v8 }
 0x752   : > { %v8079_v41 = vpop.eup %8078  ;;  %7296 = vmatmul.mubr.bf16.gmra.mrb[56].mxu1 %v3626_v21  ;;  %7328 = vmatmul.mubr.bf16.gmra.mrb[56].mxu0 %v3626_v21  ;;  %v10395_v26 = vmul.f32 %v8077_v43, %v10322_v62 }
 0x753   : > { %v8081_v13 = vpop.eup %8080  ;;  %v10389_v37 = vmul.f32 %v8079_v41, %v10325_v4  ;;  %v10404_v4 = vld [vmem:[%s11142_s15] ss:$0 sm:$0xff] }
 0x754   : > { %v8083_v57 = vpop.eup %8082  ;;  %v10386_v0 = vmul.f32 %v8081_v13, %v10329_v16  ;;  %v7924_v16 = vld [vmem:[%s11140_s19] sm:$0xff]  }
 0x755   : > { %v10392_v59 = vmul.f32 %v8083_v57, %v10333_v34  ;;  %v10408_v34 = vld [vmem:[%s11143_s28] ss:$0 sm:$0xff] }
 0x756   : > { %v3628_v27 = vpack.c.bf16 %v10386_v0, %v10395_v26 }
 0x757   : > { %11141 = vst [vmem:[#allocation99_spill] sm:$0xff] %v10392_v59  ;;  %v3627_v47 = vpack.c.bf16 %v10392_v59, %v10389_v37 }
 0x759   : > { %7299 = vmatprep.mubr.bf16.mxu1 %v3627_v47  ;;  %7331 = vmatprep.mubr.bf16.mxu0 %v3627_v47 }
 0x75a   : > { %7300 = vmatmul.mubr.bf16.gmra.mrb[60].mxu1 %v3628_v27  ;;  %7332 = vmatmul.mubr.bf16.gmra.mrb[60].mxu0 %v3628_v27 }
 0x75b   : > { %7415 = vmatprep.mubr.bf16.mxu0 %v7924_v16  ;;  %7351 = vmatprep.mubr.bf16.mxu1 %v7924_v16 }
 0x814   : > { %v7289_v62 = vpop.f32.mrb[48].mxu1  ;;  %v7321_v55 = vpop.f32.mrb[48].mxu0 }
 0x815   : > { %v3743_v45 = vadd.f32 %v7289_v62, %v10404_v4  ;;  %v10412_v39 = vadd.f32 %v7321_v55, %v10408_v34  ;;  %v3734_v10 = vpop.f32.mrb[49].mxu1  ;;  %v4022_v52 = vpop.f32.mrb[49].mxu0 }
 0x816   : > { %v3735_v61 = vadd.f32 %v10404_v4, %v3734_v10  ;;  %v10416_v9 = vadd.f32 %v10408_v34, %v4022_v52  ;;  %v7290_v63 = vpop.f32.mrb[50].mxu1  ;;  %v7322_v18 = vpop.f32.mrb[50].mxu0 }
 0x817   : > { %v3799_v7 = vsub.f32 0.0, %v3743_v45  ;;  %v4087_v3 = vsub.f32 0.0, %v10412_v39  ;;  %v3746_v6 = vadd.f32 %v7290_v63, %v10404_v4  ;;  %v10421_v8 = vadd.f32 %v7322_v18, %v10408_v34  ;;  %v3737_v21 = vpop.f32.mrb[51].mxu1  ;;  %v4025_v43 = vpop.f32.mrb[51].mxu0 }
 0x818   : > { %v3797_v41 = vsub.f32 0.0, %v3735_v61  ;;  %v4085_v13 = vsub.f32 0.0, %v10416_v9  ;;  %v3738_v57 = vadd.f32 %v10404_v4, %v3737_v21  ;;  %v10426_v47 = vadd.f32 %v10408_v34, %v4025_v43 }
 0x819   : > { %v3817_v27 = vmul.f32 1.442695, %v3799_v7  ;;  %v4105_v16 = vmul.f32 1.442695, %v4087_v3  ;;  %v3800_v62 = vsub.f32 0.0, %v3746_v6  ;;  %v4088_v55 = vsub.f32 0.0, %v10421_v8 }
 0x81a   : > { %v3813_v45 = vmul.f32 1.442695, %v3797_v41  ;;  %v4101_v10 = vmul.f32 1.442695, %v4085_v13  ;;  %v3798_v52 = vsub.f32 0.0, %v3738_v57  ;;  %v4086_v63 = vsub.f32 0.0, %v10426_v47 }
 0x81b   : > { %8084 = vpow2.f32 %v3817_v27  ;;  %v3819_v18 = vmul.f32 1.442695, %v3800_v62  ;;  %v4107_v61 = vmul.f32 1.442695, %v4088_v55 }
 0x81c   : > { %8086 = vpow2.f32 %v4105_v16  ;;  %v7293_v54 = vpop.f32.mrb[52].mxu1  ;;  %v7325_v29 = vpop.f32.mrb[52].mxu0  ;;  %v3815_v21 = vmul.f32 1.442695, %v3798_v52  ;;  %v4103_v41 = vmul.f32 1.442695, %v4086_v63 }
 0x81d   : > { %8088 = vpow2.f32 %v3813_v45  ;;  %v3759_v43 = vadd.f32 %v7293_v54, %v10404_v4  ;;  %v10432_v7 = vadd.f32 %v7325_v29, %v10408_v34  ;;  %v3750_v3 = vpop.f32.mrb[53].mxu1  ;;  %v4038_v6 = vpop.f32.mrb[53].mxu0 }
 0x81e   : > { %8090 = vpow2.f32 %v4101_v10  ;;  %v3751_v13 = vadd.f32 %v10404_v4, %v3750_v3  ;;  %v10436_v57 = vadd.f32 %v10408_v34, %v4038_v6  ;;  %v7294_v27 = vpop.f32.mrb[54].mxu1  ;;  %v7326_v16 = vpop.f32.mrb[54].mxu0 }
 0x81f   : > { %8092 = vpow2.f32 %v3819_v18  ;;  %v3803_v62 = vsub.f32 0.0, %v3759_v43  ;;  %v4091_v55 = vsub.f32 0.0, %v10432_v7  ;;  %v3762_v54 = vadd.f32 %v7294_v27, %v10404_v4  ;;  %v3753_v45 = vpop.f32.mrb[55].mxu1  ;;  %v4041_v29 = vpop.f32.mrb[55].mxu0 }
 0x820   : > { %8094 = vpow2.f32 %v4107_v61  ;;  %v3801_v52 = vsub.f32 0.0, %v3751_v13  ;;  %v4089_v10 = vsub.f32 0.0, %v10436_v57  ;;  %v10442_v27 = vadd.f32 %v7326_v16, %v10408_v34 }
 0x821   : > { %8096 = vpow2.f32 %v3815_v21  ;;  %v3825_v63 = vmul.f32 1.442695, %v3803_v62  ;;  %v4113_v3 = vmul.f32 1.442695, %v4091_v55  ;;  %v3804_v19 = vsub.f32 0.0, %v3762_v54 }
 0x822   : > { %8098 = vpow2.f32 %v4103_v41  ;;  %v3821_v6 = vmul.f32 1.442695, %v3801_v52  ;;  %v4109_v49 = vmul.f32 1.442695, %v4089_v10  ;;  %v3754_v21 = vadd.f32 %v10404_v4, %v3753_v45 }
 0x823   : > { %8100 = vpow2.f32 %v3825_v63  ;;  %v3827_v18 = vmul.f32 1.442695, %v3804_v19  ;;  %v10446_v63 = vadd.f32 %v10408_v34, %v4041_v29 }
 0x824   : > { %8102 = vpow2.f32 %v4113_v3 }
 0x825   : > { %v8085_v43 = vpop.eup %8084  ;;  %8104 = vpow2.f32 %v3821_v6  ;;  %v7297_v42 = vpop.f32.mrb[56].mxu1  ;;  %v4090_v28 = vsub.f32 0.0, %v10446_v63 }
 0x826   : > { %v7329_v61 = vpop.f32.mrb[56].mxu0  ;;  %v8087_v13 = vpop.eup %8086  ;;  %v3847_v35 = vadd.f32 1.0, %v8085_v43  ;;  %8106 = vpow2.f32 %v4109_v49  ;;  %v4092_v49 = vsub.f32 0.0, %v10442_v27 }
 0x827   : > { %v3766_v62 = vpop.f32.mrb[57].mxu1  ;;  %v4054_v55 = vpop.f32.mrb[57].mxu0  ;;  %v4135_v54 = vadd.f32 1.0, %v8087_v13  ;;  %8108 = vpow2.f32 %v3827_v18  ;;  %v3802_v13 = vsub.f32 0.0, %v3754_v21  ;;  %v10452_v12 = vadd.f32 %v7329_v61, %v10408_v34 }
 0x828   : > { %v8089_v41 = vpop.eup %8088  ;;  %v7298_v52 = vpop.f32.mrb[58].mxu1  ;;  %8110 = vrcp.f32 %v3847_v35  ;;  %v3775_v35 = vadd.f32 %v7297_v42, %v10404_v4 }
 0x829   : > { %v8091_v19 = vpop.eup %8090  ;;  %v3845_v10 = vadd.f32 1.0, %v8089_v41  ;;  %v7330_v16 = vpop.f32.mrb[58].mxu0  ;;  %8112 = vrcp.f32 %v4135_v54 }
 0x82a   : > { %v3769_v3 = vpop.f32.mrb[59].mxu1  ;;  %v8093_v6 = vpop.eup %8092  ;;  %v4133_v43 = vadd.f32 1.0, %v8091_v19  ;;  %v4115_v19 = vmul.f32 1.442695, %v4092_v49  ;;  %v3807_v5 = vsub.f32 0.0, %v3775_v35  ;;  %v4095_v35 = vsub.f32 0.0, %v10452_v12 }
 0x82b   : > { %v4057_v45 = vpop.f32.mrb[59].mxu0  ;;  %v8095_v17 = vpop.eup %8094  ;;  %8114 = vrcp.f32 %v3845_v10  ;;  %v3848_v36 = vadd.f32 1.0, %v8093_v6 }
 0x82c   : > { %v8097_v18 = vpop.eup %8096  ;;  %8116 = vrcp.f32 %v4133_v43  ;;  %v4136_v32 = vadd.f32 1.0, %v8095_v17  ;;  %v3823_v43 = vmul.f32 1.442695, %v3802_v13  ;;  %v3767_v17 = vadd.f32 %v10404_v4, %v3766_v62 }
 0x82d   : > { %v8099_v41 = vpop.eup %8098  ;;  %8118 = vrcp.f32 %v3848_v36  ;;  %v3846_v29 = vadd.f32 1.0, %v8097_v18  ;;  %v7301_v10 = vpop.f32.mrb[60].mxu1  ;;  %v4111_v13 = vmul.f32 1.442695, %v4090_v28  ;;  %v3778_v62 = vadd.f32 %v7298_v52, %v10404_v4 }
 0x82e   : > { %v8101_v2 = vpop.eup %8100  ;;  %8120 = vrcp.f32 %v4136_v32  ;;  %v4134_v54 = vadd.f32 1.0, %v8099_v41  ;;  %v7333_v42 = vpop.f32.mrb[60].mxu0  ;;  %v10458_v32 = vadd.f32 %v10408_v34, %v4054_v55  ;;  %v10469_v55 = vadd.f32 %v7330_v16, %v10408_v34 }
 0x82f   : > { %v8103_v6 = vpop.eup %8102  ;;  %8122 = vrcp.f32 %v3846_v29  ;;  %v3851_v21 = vadd.f32 1.0, %v8101_v2  ;;  %v10455_v24 = vpop.f32.mrb[61].mxu1  ;;  %v3770_v52 = vadd.f32 %v10404_v4, %v3769_v3  ;;  %v10480_v38 = vadd.f32 %v10408_v34, %v4057_v45 }
 0x830   : > { %v8105_v36 = vpop.eup %8104  ;;  %8124 = vrcp.f32 %v4134_v54  ;;  %v4139_v18 = vadd.f32 1.0, %v8103_v6  ;;  %v10460_v49 = vpop.f32.mrb[61].mxu0  ;;  %v3808_v53 = vsub.f32 0.0, %v3778_v62  ;;  %v3791_v44 = vadd.f32 %v7301_v10, %v10404_v4 }
 0x831   : > { %v10462_v61 = vpop.f32.mrb[62].mxu1  ;;  %v8107_v41 = vpop.eup %8106  ;;  %8126 = vrcp.f32 %v3851_v21  ;;  %v3849_v2 = vadd.f32 1.0, %v8105_v36  ;;  %v3805_v21 = vsub.f32 0.0, %v3767_v17  ;;  %v10484_v14 = vadd.f32 %v7333_v42, %v10408_v34 }
 0x832   : > { %v10465_v29 = vpop.f32.mrb[62].mxu0  ;;  %v8109_v30 = vpop.eup %8108  ;;  %8128 = vrcp.f32 %v4139_v18  ;;  %v4137_v54 = vadd.f32 1.0, %v8107_v41  ;;  %v3833_v18 = vmul.f32 1.442695, %v3807_v5  ;;  %v4093_v41 = vsub.f32 0.0, %v10458_v32 }
 0x833   : > { %v10471_v6 = vpop.f32.mrb[63].mxu1  ;;  %v10473_v22 = vpop.f32.mrb[63].mxu0  ;;  %8130 = vrcp.f32 %v3849_v2  ;;  %v3852_v28 = vadd.f32 1.0, %v8109_v30  ;;  %v4121_v17 = vmul.f32 1.442695, %v4095_v35  ;;  %v4096_v5 = vsub.f32 0.0, %v10469_v55 }
 0x834   : > { %v10475_v50 = vpop.eup %8110  ;;  %8132 = vrcp.f32 %v4137_v54  ;;  %v3829_v2 = vmul.f32 1.442695, %v3805_v21  ;;  %v3806_v45 = vsub.f32 0.0, %v3770_v52  ;;  %v4117_v62 = vmul.f32 1.442695, %v4093_v41 }
 0x835   : > { %v8113_v36 = vpop.eup %8112  ;;  %8134 = vrcp.f32 %v3852_v28  ;;  %v4094_v10 = vsub.f32 0.0, %v10480_v38  ;;  %v3835_v25 = vmul.f32 1.442695, %v3808_v53  ;;  %v4099_v35 = vsub.f32 0.0, %v10484_v14 }
 0x836   : > { %v8115_v16 = vpop.eup %8114  ;;  %8136 = vpow2.f32 %v4115_v19  ;;  %v3811_v19 = vsub.f32 0.0, %v3791_v44  ;;  %v4183_v52 = vmul.f32 %v8113_v36, %v10412_v39 }
 0x837   : > { %v8117_v30 = vpop.eup %8116  ;;  %8138 = vpow2.f32 %v3823_v43  ;;  %v4123_v43 = vmul.f32 1.442695, %v4096_v5 }
 0x838   : > { %v8119_v3 = vpop.eup %8118  ;;  %v4181_v28 = vmul.f32 %v8117_v30, %v10416_v9  ;;  %8140 = vpow2.f32 %v4111_v13  ;;  %v3831_v13 = vmul.f32 1.442695, %v3806_v45  ;;  %v3841_v59 = vmul.f32 1.442695, %v3811_v19 }
 0x839   : > { %v8121_v54 = vpop.eup %8120  ;;  %8142 = vpow2.f32 %v3833_v18  ;;  %v4119_v18 = vmul.f32 1.442695, %v4094_v10  ;;  %v4206_v45 = vmul.f32 %v10493_v23, %v4183_v52 }
 0x83a   : > { %v8123_v42 = vpop.eup %8122  ;;  %8144 = vpow2.f32 %v4121_v17  ;;  %v4204_v44 = vmul.f32 %v10493_v23, %v4181_v28  ;;  %v4184_v30 = vmul.f32 %v8121_v54, %v10421_v8  ;;  %v4129_v17 = vmul.f32 1.442695, %v4099_v35 }
 0x83b   : > { %v8125_v15 = vpop.eup %8124  ;;  %8146 = vpow2.f32 %v3829_v2  ;;  %v3895_v8 = vmul.f32 %v10475_v50, %v10347_v46  ;;  %v3896_v54 = vmul.f32 %v8119_v3, %v10338_v51 }
 0x83c   : > { %v8127_v21 = vpop.eup %8126  ;;  %v4182_v9 = vmul.f32 %v8125_v15, %v10426_v47  ;;  %8148 = vpow2.f32 %v4117_v62  ;;  %4220 = vadd.xlane.f32.xlu0 %v4204_v44  ;;  %v3893_v15 = vmul.f32 %v8115_v16, %v10341_v40  ;;  %v3894_v47 = vmul.f32 %v8123_v42, %v10344_v60 }
 0x83d   : > { %v8129_v41 = vpop.eup %8128  ;;  %8150 = vpow2.f32 %v3835_v25  ;;  %v3783_v40 = vadd.f32 %v10404_v4, %v10455_v24  ;;  %v4207_v60 = vmul.f32 %v10493_v23, %v4184_v30  ;;  %v3910_v42 = vpack.c.bf16 %v3896_v54, %v3895_v8 }
 0x83e   : > { %v10498_v53 = vpop.eup %8130  ;;  %8152 = vpow2.f32 %v4123_v43  ;;  %v4205_v39 = vmul.f32 %v10493_v23, %v4182_v9  ;;  %v3909_v25 = vpack.c.bf16 %v3894_v47, %v3893_v15  ;;  %v3899_v51 = vmul.f32 %v8127_v21, %v10363_v33 }
 0x83f   : > { %v8133_v5 = vpop.eup %8132  ;;  %8154 = vpow2.f32 %v3831_v13  ;;  %v4187_v24 = vmul.f32 %v8129_v41, %v10432_v7  ;;  %v10518_v9 = vadd.f32 %v10408_v34, %v10460_v49  ;;  %v3809_v41 = vsub.f32 0.0, %v3783_v40 }
 0x840   : > { %v8135_v36 = vpop.eup %8134  ;;  %v4185_v2 = vmul.f32 %v8133_v5, %v10436_v57  ;;  %8156 = vpow2.f32 %v4119_v18  ;;  %4222 = vadd.xlane.f32.xlu1 %v4205_v39  ;;  %7399 = vmatprep.subr.bf16.mxu0 %v3909_v25  ;;  %v10526_v44 = vadd.f32 %v10465_v29, %v10408_v34  ;;  %v10534_v47 = vadd.f32 %v10408_v34, %v10473_v22 }
 0x841   : > { %v8137_v28 = vpop.eup %8136  ;;  %8158 = vpow2.f32 %v3841_v59  ;;  %4224 = vadd.xlane.f32.xlu0 %v4206_v45  ;;  %7400 = vmatpush3.bf16.msra.mxu0 %v3909_v25  ;;  %v3900_v46 = vmul.f32 %v8135_v36, %v10354_v31  ;;  %v3794_v31 = vadd.f32 %v10462_v61, %v10404_v4  ;;  %v4210_v5 = vmul.f32 %v10493_v23, %v4187_v24 }
 0x842   : > { %v8139_v62 = vpop.eup %8138  ;;  %v4140_v10 = vadd.f32 1.0, %v8137_v28  ;;  %8160 = vpow2.f32 %v4129_v17  ;;  %v4208_v19 = vmul.f32 %v10493_v23, %v4185_v2  ;;  %7401 = vmatprep.subr.bf16.mxu0 %v3910_v42  ;;  %v3786_v17 = vadd.f32 %v10404_v4, %v10471_v6 }
 0x843   : > { %v8141_v57 = vpop.eup %8140  ;;  %v3850_v16 = vadd.f32 1.0, %v8139_v62  ;;  %v10520_v13 = vpack.c.bf16 %v3900_v46, %v3899_v51  ;;  %v4097_v15 = vsub.f32 0.0, %v10518_v9  ;;  %v3812_v2 = vsub.f32 0.0, %v3794_v31 }
 0x844   : > { %v8143_v35 = vpop.eup %8142  ;;  %8162 = vrcp.f32 %v4140_v10  ;;  %v4138_v50 = vadd.f32 1.0, %v8141_v57  ;;  %4226 = vadd.xlane.f32.xlu1 %v4207_v60  ;;  %v4100_v4 = vsub.f32 0.0, %v10526_v44  ;;  %v3837_v25 = vmul.f32 1.442695, %v3809_v41 }
 0x845   : > { %v8145_v59 = vpop.eup %8144  ;;  %8164 = vrcp.f32 %v3850_v16  ;;  %v3855_v3 = vadd.f32 1.0, %v8143_v35  ;;  %4228 = vadd.xlane.f32.xlu0 %v4208_v19  ;;  %7402 = vmatpush3.bf16.msra.mxu0 %v3910_v42  ;;  %v3810_v8 = vsub.f32 0.0, %v3786_v17  ;;  %v4125_v62 = vmul.f32 1.442695, %v4097_v15 }
 0x846   : > { %v8147_v43 = vpop.eup %8146  ;;  %8166 = vrcp.f32 %v4138_v50  ;;  %v4143_v52 = vadd.f32 1.0, %v8145_v59  ;;  %v4098_v22 = vsub.f32 0.0, %v10534_v47  ;;  %v9009_v34 = vmov 0  }
 0x847   : > { %v8149_v18 = vpop.eup %8148  ;;  %8168 = vrcp.f32 %v3855_v3  ;;  %v3853_v33 = vadd.f32 1.0, %v8147_v43  ;;  %7866 = vset.pattern.permute.xlu0 %v9009_v34  ;;  %7867 = vset.pattern.permute.xlu1 %v9009_v34  ;;  %v3843_v40 = vmul.f32 1.442695, %v3812_v2  ;;  %v4131_v57 = vmul.f32 1.442695, %v4100_v4 }
 0x848   : > { %v8151_v7 = vpop.eup %8150  ;;  %8170 = vrcp.f32 %v4143_v52  ;;  %v4141_v21 = vadd.f32 1.0, %v8149_v18  ;;  %v3897_v16 = vmul.f32 %v10498_v53, %v10357_v56  ;;  %v3839_v50 = vmul.f32 1.442695, %v3810_v8 }
 0x849   : > { %v8153_v49 = vpop.eup %8152  ;;  %8172 = vrcp.f32 %v3853_v33  ;;  %v3856_v30 = vadd.f32 1.0, %v8151_v7  ;;  %4232 = vadd.xlane.f32.xlu0 %v4210_v5  ;;  %v4127_v46 = vmul.f32 1.442695, %v4098_v22 }
 0x84a   : > { %v8155_v39 = vpop.eup %8154  ;;  %8174 = vrcp.f32 %v4141_v21  ;;  %v4144_v61 = vadd.f32 1.0, %v8153_v49 }
 0x84b   : > { %v8157_v29 = vpop.eup %8156  ;;  %8176 = vrcp.f32 %v3856_v30  ;;  %v3854_v36 = vadd.f32 1.0, %v8155_v39 }
 0x84c   : > { %v8159_v45 = vpop.eup %8158  ;;  %8178 = vrcp.f32 %v4144_v61  ;;  %v4142_v28 = vadd.f32 1.0, %v8157_v29 }
 0x84d   : > { %v8161_v6 = vpop.eup %8160  ;;  %8180 = vrcp.f32 %v3854_v36  ;;  %v3859_v33 = vadd.f32 1.0, %v8159_v45 }
 0x84e   : > { %v8163_v54 = vpop.eup %8162  ;;  %8182 = vrcp.f32 %v4142_v28  ;;  %v4147_v5 = vadd.f32 1.0, %v8161_v6 }
 0x84f   : > { %v8165_v10 = vpop.eup %8164  ;;  %8184 = vpow2.f32 %v3837_v25  ;;  %v4188_v3 = vmul.f32 %v8163_v54, %v10442_v27 }
 0x850   : > { %v8167_v60 = vpop.eup %8166  ;;  %v3898_v42 = vmul.f32 %v8165_v10, %v10360_v58  ;;  %8186 = vpow2.f32 %v4125_v62 }
 0x851   : > { %v8169_v19 = vpop.eup %8168  ;;  %v4186_v35 = vmul.f32 %v8167_v60, %v10446_v63  ;;  %8188 = vpow2.f32 %v3843_v40  ;;  %v4211_v31 = vmul.f32 %v10493_v23, %v4188_v3  ;;  %v10591_v3 = vld [vmem:[%s11140_s19 + $0x30] sm:$0xff]  }
 0x852   : > { %v8171_v51 = vpop.eup %8170  ;;  %v3911_v59 = vpack.c.bf16 %v3898_v42, %v3897_v16  ;;  %8190 = vpow2.f32 %v4131_v57  ;;  %v3903_v53 = vmul.f32 %v8169_v19, %v10379_v11 }
 0x853   : > { %v8173_v24 = vpop.eup %8172  ;;  %v4209_v43 = vmul.f32 %v10493_v23, %v4186_v35  ;;  %8192 = vpow2.f32 %v3839_v50  ;;  %v11145_v35 = vld [vmem:[#allocation99_spill] sm:$0xff] }
 0x854   : > { %v8175_v52 = vpop.eup %8174  ;;  %7403 = vmatprep.subr.bf16.mxu0 %v3911_v59  ;;  %8194 = vpow2.f32 %v4127_v46  ;;  %v3901_v41 = vmul.f32 %v8173_v24, %v10373_v20  ;;  %v10583_v24 = vld [vmem:[%s11140_s19 + $0x20] sm:$0xff]  }
 0x855   : > { %v8177_v56 = vpop.eup %8176  ;;  %v4189_v58 = vmul.f32 %v8175_v52, %v10458_v32  ;;  %4230 = vadd.xlane.f32.xlu1 %v4209_v43  ;;  %7404 = vmatpush3.bf16.msra.mxu0 %v3911_v59  ;;  %v4191_v32 = vmul.f32 %v8171_v51, %v10452_v12  ;;  %8196 = vrcp.f32 %v3859_v33  ;;  %v10580_v59 = vld [vmem:[%s11140_s19 + $0x18] sm:$0xff]   ;;  %v7932_v43 = vld [vmem:[%s9711_s21] sm:$0xff]   ;;  %v6529_v33 = vld [vmem:[%s1541_s5] ss:$0 sm:$0xff]  ;;  %s11171_s5 = scalar_lea.vmem [#allocation20], %s9675_s16 }
 0x856   : > { %v8179_v63 = vpop.eup %8178  ;;  %7405 = vmatprep.subr.bf16.mxu0 %v10520_v13  ;;  %v3904_v27 = vmul.f32 %v8177_v56, %v10370_v48  ;;  %8198 = vrcp.f32 %v4147_v5  ;;  %v7933_v52 = vld [vmem:[%s9711_s21 + $0x8] sm:$0xff]   ;;  %v7934_v56 = vld [vmem:[%s9711_s21 + $0x10] sm:$0xff]  }
 0x857   : > { %v8181_v18 = vpop.eup %8180  ;;  %v4212_v7 = vmul.f32 %v10493_v23, %v4189_v58  ;;  %v4192_v39 = vmul.f32 %v8179_v63, %v10469_v55  ;;  %v4214_v20 = vmul.f32 %v10493_v23, %v4191_v32  ;;  %v10599_v58 = vld [vmem:[%s11140_s19 + $0x38] sm:$0xff]   ;;  %v7935_v63 = vld [vmem:[%s9711_s21 + $0x18] sm:$0xff]  }
 0x858   : > { %v8183_v21 = vpop.eup %8182  ;;  %v3902_v49 = vmul.f32 %v8181_v18, %v10376_v1  ;;  %v3914_v30 = vpack.c.bf16 %v3904_v27, %v3903_v53  ;;  %v7936_v53 = vld [vmem:[%s9711_s21 + $0x20] sm:$0xff]   ;;  %v7937_v27 = vld [vmem:[%s9711_s21 + $0x28] sm:$0xff]   ;;  %v7938_v18 = vld [vmem:[%s9711_s21 + $0x30] sm:$0xff]  }
 0x859   : > { %v4190_v17 = vmul.f32 %v8183_v21, %v10480_v38  ;;  %4234 = vadd.xlane.f32.xlu1 %v4211_v31  ;;  %7406 = vmatpush3.bf16.msra.mxu0 %v10520_v13  ;;  %v8185_v11 = vpop.eup %8184  ;;  %v4215_v2 = vmul.f32 %v10493_v23, %v4192_v39  ;;  %v7939_v32 = vld [vmem:[%s9711_s21 + $0x38] sm:$0xff]  }
 0x85a   : > { %4236 = vadd.xlane.f32.xlu0 %v4212_v7  ;;  %v3913_v48 = vpack.c.bf16 %v3902_v49, %v3901_v41  ;;  %v8187_v15 = vpop.eup %8186  ;;  %v3857_v12 = vadd.f32 1.0, %v8185_v11 }
 0x85b   : > { %v4213_v61 = vmul.f32 %v10493_v23, %v4190_v17  ;;  %v8189_v1 = vpop.eup %8188  ;;  %v4145_v38 = vadd.f32 1.0, %v8187_v15  ;;  %v7940_v17 = vld [vmem:[%s9708_s0] sm:$0xff]  }
 0x85c   : > { %7407 = vmatprep.subr.bf16.mxu0 %v3913_v48  ;;  %v8191_v29 = vpop.eup %8190  ;;  %8200 = vrcp.f32 %v3857_v12  ;;  %v3860_v13 = vadd.f32 1.0, %v8189_v1 }
 0x85d   : > { %4238 = vadd.xlane.f32.xlu1 %v4213_v61  ;;  %7408 = vmatpush3.bf16.msra.mxu0 %v3913_v48  ;;  %v8193_v36 = vpop.eup %8192  ;;  %8202 = vrcp.f32 %v4145_v38  ;;  %v4148_v55 = vadd.f32 1.0, %v8191_v29 }
 0x85e   : > { %4240 = vadd.xlane.f32.xlu0 %v4214_v20  ;;  %7409 = vmatprep.subr.bf16.mxu0 %v3914_v30  ;;  %v8195_v45 = vpop.eup %8194  ;;  %8204 = vrcp.f32 %v3860_v13  ;;  %v3858_v28 = vadd.f32 1.0, %v8193_v36 }
 0x85f   : > { %8206 = vrcp.f32 %v4148_v55  ;;  %v4146_v4 = vadd.f32 1.0, %v8195_v45  ;;  %v8197_v6 = vpop.eup %8196 }
 0x860   : > { %8208 = vrcp.f32 %v3858_v28  ;;  %v8199_v25 = vpop.eup %8198  ;;  %v3907_v10 = vmul.f32 %v8197_v6, %v10395_v26 }
 0x861   : > { %4242 = vadd.xlane.f32.xlu1 %v4215_v2  ;;  %7410 = vmatpush3.bf16.msra.mxu0 %v3914_v30  ;;  %8210 = vrcp.f32 %v4146_v4  ;;  %v4195_v42 = vmul.f32 %v8199_v25, %v10484_v14 }
 0x863   : > { %v4218_v14 = vmul.f32 %v10493_v23, %v4195_v42 }
 0x866   : > { %v8201_v8 = vpop.eup %8200 }
 0x867   : > { %v8203_v54 = vpop.eup %8202  ;;  %v3905_v19 = vmul.f32 %v8201_v8, %v10389_v37 }
 0x868   : > { %v8205_v62 = vpop.eup %8204  ;;  %v4193_v22 = vmul.f32 %v8203_v54, %v10518_v9 }
 0x869   : > { %v8207_v34 = vpop.eup %8206  ;;  %v3908_v40 = vmul.f32 %v8205_v62, %v10386_v0 }
 0x86a   : > { %v8209_v60 = vpop.eup %8208  ;;  %v4216_v57 = vmul.f32 %v10493_v23, %v4193_v22  ;;  %v4196_v0 = vmul.f32 %v8207_v34, %v10526_v44  ;;  %v10575_v44 = vld [vmem:[%s11140_s19 + $0x10] sm:$0xff]  }
 0x86b   : > { %v8211_v16 = vpop.eup %8210  ;;  %v3906_v50 = vmul.f32 %v8209_v60, %v11145_v35  ;;  %v3916_v51 = vpack.c.bf16 %v3908_v40, %v3907_v10  ;;  %v7941_v35 = vld [vmem:[%s9708_s0 + $0x8] sm:$0xff]  }
 0x86c   : > { %v4194_v9 = vmul.f32 %v8211_v16, %v10534_v47  ;;  %4244 = vadd.xlane.f32.xlu0 %v4216_v57  ;;  %v4219_v37 = vmul.f32 %v10493_v23, %v4196_v0  ;;  %v10572_v47 = vld [vmem:[%s11140_s19 + $0x8] sm:$0xff]  }
 0x86d   : > { %v3915_v46 = vpack.c.bf16 %v3906_v50, %v3905_v19 }
 0x86e   : > { %v4217_v26 = vmul.f32 %v10493_v23, %v4194_v9  ;;  %v10588_v23 = vld [vmem:[%s11140_s19 + $0x28] sm:$0xff]  }
 0x86f   : > { %7411 = vmatprep.subr.bf16.mxu0 %v3915_v46 }
 0x870   : > { %4246 = vadd.xlane.f32.xlu1 %v4217_v26  ;;  %7412 = vmatpush3.bf16.msra.mxu0 %v3915_v46  ;;  %v7942_v46 = vld [vmem:[%s9708_s0 + $0x10] sm:$0xff]  }
 0x871   : > { %4248 = vadd.xlane.f32.xlu0 %v4218_v14  ;;  %7413 = vmatprep.subr.bf16.mxu0 %v3916_v51 }
 0x874   : > { %4250 = vadd.xlane.f32.xlu1 %v4219_v37  ;;  %7414 = vmatpush3.bf16.msra.mxu0 %v3916_v51 }
 0x875   : > { %7431 = vmatprep.subr.bf16.mxu0 %v7932_v43 }
 0x877   : > { %7416 = vmatmul.mubr.bf16.vlgmr.msra.gmra.mrb[64].mxu0 %v10572_v47 }
 0x878   : > { %7419 = vmatprep.mubr.bf16.mxu0 %v10575_v44  ;;  %7432 = vmatpush3.bf16.msra.mxu0 %v7932_v43 }
 0x879   : > { %7433 = vmatprep.subr.bf16.mxu0 %v7933_v52 }
 0x87c   : > { %7434 = vmatpush3.bf16.msra.mxu0 %v7933_v52 }
 0x87d   : > { %7435 = vmatprep.subr.bf16.mxu0 %v7934_v56 }
 0x87f   : > { %7420 = vmatmul.mubr.bf16.gmra.mrb[68].mxu0 %v10580_v59 }
 0x880   : > { %7423 = vmatprep.mubr.bf16.mxu0 %v10583_v24  ;;  %7436 = vmatpush3.bf16.msra.mxu0 %v7934_v56  ;;  %v7943_v56 = vld [vmem:[%s9708_s0 + $0x18] sm:$0xff]  }
 0x881   : > { %7437 = vmatprep.subr.bf16.mxu0 %v7935_v63 }
 0x884   : > { %7438 = vmatpush3.bf16.msra.mxu0 %v7935_v63 }
 0x885   : > { %7439 = vmatprep.subr.bf16.mxu0 %v7936_v53 }
 0x887   : > { %7424 = vmatmul.mubr.bf16.gmra.mrb[72].mxu0 %v10588_v23 }
 0x888   : > { %7427 = vmatprep.mubr.bf16.mxu0 %v10591_v3  ;;  %7440 = vmatpush3.bf16.msra.mxu0 %v7936_v53  ;;  %v11147_v53 = vld [vmem:[#allocation84_spill] sm:$0xff] }
 0x889   : > { %7441 = vmatprep.subr.bf16.mxu0 %v7937_v27 }
 0x88c   : > { %7442 = vmatpush3.bf16.msra.mxu0 %v7937_v27 }
 0x88d   : > { %7443 = vmatprep.subr.bf16.mxu0 %v7938_v18 }
 0x88f   : > { %7428 = vmatmul.mubr.bf16.gmra.mrb[76].mxu0 %v10599_v58 }
 0x890   : > { %7444 = vmatpush3.bf16.msra.mxu0 %v7938_v18  ;;  %v11148_v18 = vld [vmem:[#allocation85_spill] sm:$0xff] }
 0x891   : > { %7445 = vmatprep.subr.bf16.mxu0 %v7939_v32 }
 0x894   : > { %7446 = vmatpush3.bf16.msra.mxu0 %v7939_v32 }
 0x895   : > { %7463 = vmatprep.subr.bf16.mxu0 %v7940_v17 }
 0x8c9   : > { %v4221_v31 = vpop.xlane.xlu0 %4220 }
 0x8ca   : > { %v4259_v7 = vadd.f32 %v6529_v33, %v4221_v31  ;;  %v11149_v31 = vld [vmem:[#allocation86_spill] sm:$0xff] }
 0x8cc   : > { %4277 = vperm.xlu0 %7866, %v4259_v7  }
 0x8cd   : > { %v4223_v21 = vpop.xlane.xlu1 %4222 }
 0x8ce   : > { %v4225_v41 = vpop.xlane.xlu0 %4224  ;;  %v4260_v11 = vadd.f32 %v6529_v33, %v4223_v21 }
 0x8cf   : > { %v4261_v49 = vadd.f32 %v6529_v33, %v4225_v41  ;;  %v7944_v41 = vld [vmem:[%s9708_s0 + $0x20] sm:$0xff]  }
 0x8d1   : > { %v4227_v30 = vpop.xlane.xlu1 %4226  ;;  %4287 = vperm.xlu1 %7867, %v4261_v49   ;;  %v11150_v49 = vld [vmem:[#allocation83_spill] sm:$0xff] }
 0x8d2   : > { %v4229_v5 = vpop.xlane.xlu0 %4228  ;;  %v4262_v48 = vadd.f32 %v6529_v33, %v4227_v30 }
 0x8d3   : > { %v4263_v15 = vadd.f32 %v6529_v33, %v4229_v5 }
 0x8d5   : > { %4292 = vperm.xlu1 %7867, %v4262_v48  }
 0x8d6   : > { %v4233_v39 = vpop.xlane.xlu0 %4232 }
 0x8d7   : > { %v4265_v61 = vadd.f32 %v6529_v33, %v4233_v39 }
 0x8d9   : > { %4282 = vperm.xlu1 %7867, %v4260_v11  }
 0x8dd   : > { %4307 = vperm.xlu1 %7867, %v4265_v61  }
 0x8e1   : > { %4297 = vperm.xlu1 %7867, %v4263_v15  }
 0x8e2   : > { %v4231_v12 = vpop.xlane.xlu1 %4230 }
 0x8e3   : > { %v4264_v20 = vadd.f32 %v6529_v33, %v4231_v12  ;;  %v7945_v12 = vld [vmem:[%s9708_s0 + $0x28] sm:$0xff]  }
 0x8e5   : > { %4302 = vperm.xlu1 %7867, %v4264_v20  }
 0x8e6   : > { %v4235_v1 = vpop.xlane.xlu1 %4234 }
 0x8e7   : > { %v4237_v38 = vpop.xlane.xlu0 %4236  ;;  %v4266_v29 = vadd.f32 %v6529_v33, %v4235_v1 }
 0x8e8   : > { %v4267_v55 = vadd.f32 %v6529_v33, %v4237_v38 }
 0x8e9   : > { %4312 = vperm.xlu1 %7867, %v4266_v29   ;;  %v7946_v29 = vld [vmem:[%s9708_s0 + $0x30] sm:$0xff]  }
 0x8ea   : > { %v4239_v13 = vpop.xlane.xlu1 %4238 }
 0x8eb   : > { %v4268_v36 = vadd.f32 %v6529_v33, %v4239_v13  ;;  %v4241_v2 = vpop.xlane.xlu0 %4240 }
 0x8ec   : > { %v4269_v4 = vadd.f32 %v6529_v33, %v4241_v2 }
 0x8ed   : > { %4322 = vperm.xlu0 %7866, %v4268_v36   ;;  %4317 = vperm.xlu1 %7867, %v4267_v55  }
 0x8ee   : > { %v4243_v45 = vpop.xlane.xlu1 %4242 }
 0x8ef   : > { %v4270_v28 = vadd.f32 %v6529_v33, %v4243_v45  ;;  %v11151_v45 = vld [vmem:[#allocation88_spill] sm:$0xff] }
 0x8f1   : > { %4332 = vperm.xlu0 %7866, %v4270_v28   ;;  %4327 = vperm.xlu1 %7867, %v4269_v4   ;;  %v11152_v4 = vld [vmem:[#allocation90_spill] sm:$0xff] }
 0x8f9   : > { %v4245_v6 = vpop.xlane.xlu0 %4244 }
 0x8fa   : > { %v4271_v25 = vadd.f32 %v6529_v33, %v4245_v6 }
 0x8fc   : > { %4337 = vperm.xlu1 %7867, %v4271_v25  }
 0x8fd   : > { %v4247_v8 = vpop.xlane.xlu1 %4246 }
 0x8fe   : > { %v4272_v54 = vadd.f32 %v6529_v33, %v4247_v8  ;;  %v4249_v62 = vpop.xlane.xlu0 %4248  ;;  %v7947_v8 = vld [vmem:[%s9708_s0 + $0x38] sm:$0xff]  }
 0x8ff   : > { %v4273_v22 = vadd.f32 %v6529_v33, %v4249_v62 }
 0x900   : > { %4342 = vperm.xlu0 %7866, %v4272_v54  }
 0x901   : > { %v4251_v34 = vpop.xlane.xlu1 %4250  ;;  %4347 = vperm.xlu1 %7867, %v4273_v22   ;;  %v11153_v22 = vld [vmem:[#allocation87_spill] sm:$0xff] }
 0x902   : > { %v4274_v10 = vadd.f32 %v6529_v33, %v4251_v34 }
 0x904   : > { %4352 = vperm.xlu0 %7866, %v4274_v10   ;;  %v11154_v10 = vld [vmem:[#allocation89_spill] sm:$0xff] }
 0x94a   : > { %v7417_v40 = vpop.f32.mrb[64].mxu0 }
 0x94b   : > { %v4743_v60 = vpop.f32.mrb[65].mxu0  ;;  %v4278_v52 = vpop.permute.xlu0 %4277 }
 0x94c   : > { %v7418_v57 = vpop.f32.mrb[66].mxu0  ;;  %v10615_v27 = vmul.f32 %v4278_v52, %v11147_v53  ;;  %v11162_v53 = vld [vmem:[#allocation78_spill] sm:$0xff] }
 0x94d   : > { %v4823_v16 = vpack.c.bf16 %v7418_v57, %v7417_v40  ;;  %v4746_v42 = vpop.f32.mrb[67].mxu0 }
 0x94e   : > { %v4822_v19 = vpack.c.bf16 %v4746_v42, %v4743_v60  ;;  %v11155_v60 = vld [vmem:[#allocation75_spill] sm:$0xff] }
 0x950   : > { %7447 = vmatprep.mubr.bf16.mxu0 %v4822_v19  ;;  %v4288_v50 = vpop.permute.xlu1 %4287  ;;  %v11156_v19 = vld [vmem:[#allocation94_spill] sm:$0xff] }
 0x951   : > { %7448 = vmatmul.mubr.bf16.vlgmr.msra.gmra.mrb[80].mxu0 %v4823_v16  ;;  %v10625_v30 = vmul.f32 %v4288_v50, %v11150_v49  ;;  %v11157_v50 = vld [vmem:[#allocation92_spill] sm:$0xff] }
 0x952   : > { %v7421_v51 = vpop.f32.mrb[68].mxu0  ;;  %7464 = vmatpush3.bf16.msra.mxu0 %v7940_v17 }
 0x953   : > { %v4759_v9 = vpop.f32.mrb[69].mxu0  ;;  %7465 = vmatprep.subr.bf16.mxu0 %v7941_v35 }
 0x954   : > { %v7422_v0 = vpop.f32.mrb[70].mxu0  ;;  %v4293_v26 = vpop.permute.xlu1 %4292 }
 0x955   : > { %v4825_v14 = vpack.c.bf16 %v7422_v0, %v7421_v51  ;;  %v4762_v37 = vpop.f32.mrb[71].mxu0  ;;  %v10618_v33 = vmul.f32 %v4293_v26, %v11148_v18  ;;  %v11158_v26 = vld [vmem:[#allocation76_spill] sm:$0xff]  ;;  %v11163_v18 = vld [vmem:[#allocation79_spill] sm:$0xff] }
 0x956   : > { %v4824_v43 = vpack.c.bf16 %v4762_v37, %v4759_v9  ;;  %7466 = vmatpush3.bf16.msra.mxu0 %v7941_v35 }
 0x957   : > { %7467 = vmatprep.subr.bf16.mxu0 %v7942_v46  ;;  %v10633_v61 = vpack.c.bf16 %v10618_v33, %v10625_v30 }
 0x958   : > { %7451 = vmatprep.mubr.bf16.mxu0 %v4824_v43  ;;  %v4283_v63 = vpop.permute.xlu1 %4282  ;;  %v11160_v43 = vld [vmem:[#allocation91_spill] sm:$0xff] }
 0x959   : > { %7452 = vmatmul.mubr.bf16.gmra.mrb[84].mxu0 %v4825_v14  ;;  %v10621_v7 = vmul.f32 %v4283_v63, %v11149_v31  ;;  %v11159_v14 = vld [vmem:[#allocation93_spill] sm:$0xff] }
 0x95a   : > { %v7425_v21 = vpop.f32.mrb[72].mxu0  ;;  %7468 = vmatpush3.bf16.msra.mxu0 %v7942_v46 }
 0x95b   : > { %v4775_v32 = vpop.f32.mrb[73].mxu0  ;;  %7469 = vmatprep.subr.bf16.mxu0 %v7943_v56  ;;  %v10629_v17 = vpack.c.bf16 %v10621_v7, %v10615_v27 }
 0x95c   : > { %v7426_v5 = vpop.f32.mrb[74].mxu0  ;;  %v4308_v48 = vpop.permute.xlu1 %4307 }
 0x95d   : > { %v4827_v11 = vpack.c.bf16 %v7426_v5, %v7425_v21  ;;  %v4778_v39 = vpop.f32.mrb[75].mxu0  ;;  %7335 = vmatprep.subr.bf16.mxu1 %v10629_v17  ;;  %v10653_v34 = vmul.f32 %v4308_v48, %v11153_v22  ;;  %v11164_v21 = vld [vmem:[#allocation96_spill] sm:$0xff]  ;;  %v4380_v49 = vunpack.c.h.bf16 %v10629_v17  ;;  %v11165_v5 = vld [vmem:[#allocation98_spill] sm:$0xff] }
 0x95e   : > { %v4826_v15 = vpack.c.bf16 %v4778_v39, %v4775_v32  ;;  %7470 = vmatpush3.bf16.msra.mxu0 %v7943_v56  ;;  %7336 = vmatpush3.bf16.msra.mxu1 %v10629_v17  ;;  %v11161_v56 = vld [vmem:[#allocation77_spill] sm:$0xff]  ;;  %v4379_v39 = vunpack.c.l.bf16 %v10629_v17 }
 0x95f   : > { %7471 = vmatprep.subr.bf16.mxu0 %v7944_v41  ;;  %7337 = vmatprep.subr.bf16.mxu1 %v10633_v61 }
 0x960   : > { %7455 = vmatprep.mubr.bf16.mxu0 %v4826_v15  ;;  %v4298_v20 = vpop.permute.xlu1 %4297  ;;  %v11166_v15 = vld [vmem:[#allocation80_spill] sm:$0xff] }
 0x961   : > { %7456 = vmatmul.mubr.bf16.gmra.mrb[88].mxu0 %v4827_v11  ;;  %v10642_v28 = vmul.f32 %v4298_v20, %v11151_v45  ;;  %v4395_v45 = vsub.f32 %v10615_v27, %v4379_v39 }
 0x962   : > { %v7429_v1 = vpop.f32.mrb[76].mxu0  ;;  %7472 = vmatpush3.bf16.msra.mxu0 %v7944_v41  ;;  %7338 = vmatpush3.bf16.msra.mxu1 %v10633_v61 }
 0x963   : > { %v4791_v38 = vpop.f32.mrb[77].mxu0  ;;  %7473 = vmatprep.subr.bf16.mxu0 %v7945_v12 }
 0x964   : > { %v7430_v13 = vpop.f32.mrb[78].mxu0  ;;  %v4303_v36 = vpop.permute.xlu1 %4302 }
 0x965   : > { %v4829_v55 = vpack.c.bf16 %v7430_v13, %v7429_v1  ;;  %v4794_v2 = vpop.f32.mrb[79].mxu0  ;;  %v10645_v6 = vmul.f32 %v4303_v36, %v11152_v4  ;;  %v11168_v1 = vld [vmem:[#allocation95_spill] sm:$0xff]  ;;  %v4396_v36 = vsub.f32 %v10621_v7, %v4380_v49  ;;  %v4381_v4 = vunpack.c.l.bf16 %v10633_v61  ;;  %v11170_v7 = vld [vmem:[#allocation82_spill] sm:$0xff] }
 0x966   : > { %v4828_v25 = vpack.c.bf16 %v4794_v2, %v4791_v38  ;;  %7474 = vmatpush3.bf16.msra.mxu0 %v7945_v12  ;;  %v11167_v12 = vld [vmem:[#allocation81_spill] sm:$0xff] }
 0x967   : > { %7475 = vmatprep.subr.bf16.mxu0 %v7946_v29  ;;  %v10650_v54 = vpack.c.bf16 %v10645_v6, %v10642_v28  ;;  %v4411_v22 = vpack.c.bf16 %v4396_v36, %v4395_v45 }
 0x968   : > { %7459 = vmatprep.mubr.bf16.mxu0 %v4828_v25  ;;  %v4313_v62 = vpop.permute.xlu1 %4312 }
 0x969   : > { %7460 = vmatmul.mubr.bf16.gmra.mrb[92].mxu0 %v4829_v55  ;;  %v10656_v40 = vmul.f32 %v4313_v62, %v11154_v10  ;;  %7339 = vmatprep.subr.bf16.mxu1 %v10650_v54  ;;  %v11169_v55 = vld [vmem:[#allocation97_spill] sm:$0xff]  ;;  %v4384_v25 = vunpack.c.h.bf16 %v10650_v54  ;;  %v4397_v10 = vsub.f32 %v10625_v30, %v4381_v4 }
 0x96a   : > { %7476 = vmatpush3.bf16.msra.mxu0 %v7946_v29  ;;  %7479 = vmatprep.mubr.bf16.mxu0 %v11155_v60  ;;  %v4382_v29 = vunpack.c.h.bf16 %v10633_v61 }
 0x96b   : > { %7477 = vmatprep.subr.bf16.mxu0 %v7947_v8  ;;  %v10662_v16 = vpack.c.bf16 %v10656_v40, %v10653_v34  ;;  %7340 = vmatpush3.bf16.msra.mxu1 %v10650_v54  ;;  %v4400_v27 = vsub.f32 %v10645_v6, %v4384_v25 }
 0x96c   : > { %v4323_v57 = vpop.permute.xlu0 %4322  ;;  %v4318_v42 = vpop.permute.xlu1 %4317  ;;  %v4398_v62 = vsub.f32 %v10618_v33, %v4382_v29 }
 0x96d   : > { %v10666_v35 = vmul.f32 %v4323_v57, %v11156_v19  ;;  %v10669_v51 = vmul.f32 %v4318_v42, %v11157_v50  ;;  %7341 = vmatprep.subr.bf16.mxu1 %v10662_v16  ;;  %v4386_v60 = vunpack.c.h.bf16 %v10662_v16 }
 0x96e   : > { %7478 = vmatpush3.bf16.msra.mxu0 %v7947_v8  ;;  %v4383_v8 = vunpack.c.l.bf16 %v10650_v54  ;;  %v4412_v57 = vpack.c.bf16 %v4398_v62, %v4397_v10  ;;  %v4385_v54 = vunpack.c.l.bf16 %v10662_v16 }
 0x96f   : > { %v10674_v46 = vpack.c.bf16 %v10666_v35, %v10669_v51  ;;  %7342 = vmatpush3.bf16.msra.mxu1 %v10662_v16  ;;  %v4402_v30 = vsub.f32 %v10656_v40, %v4386_v60 }
 0x970   : > { %v4333_v9 = vpop.permute.xlu0 %4332  ;;  %v4328_v0 = vpop.permute.xlu1 %4327  ;;  %v4399_v61 = vsub.f32 %v10642_v28, %v4383_v8  ;;  %v4401_v6 = vsub.f32 %v10653_v34, %v4385_v54 }
 0x971   : > { %7480 = vmatmul.mubr.bf16.vlgmr.msra.gmra.mrb[80].mxu0 %v11158_v26  ;;  %v10679_v37 = vmul.f32 %v4333_v9, %v11159_v14  ;;  %v10682_v52 = vmul.f32 %v4328_v0, %v11160_v43  ;;  %7343 = vmatprep.subr.bf16.mxu1 %v10674_v46  ;;  %v4387_v42 = vunpack.c.l.bf16 %v10674_v46  ;;  %v4388_v28 = vunpack.c.h.bf16 %v10674_v46 }
 0x972   : > { %7483 = vmatprep.mubr.bf16.mxu0 %v11161_v56  ;;  %v4413_v33 = vpack.c.bf16 %v4400_v27, %v4399_v61  ;;  %v4414_v16 = vpack.c.bf16 %v4402_v30, %v4401_v6 }
 0x973   : > { %v4376_v63 = vpack.c.bf16 %v10679_v37, %v10682_v52  ;;  %7344 = vmatpush3.bf16.msra.mxu1 %v10674_v46  ;;  %v4403_v9 = vsub.f32 %v10669_v51, %v4387_v42  ;;  %v4404_v0 = vsub.f32 %v10666_v35, %v4388_v28 }
 0x975   : > { %7345 = vmatprep.subr.bf16.mxu1 %v4376_v63  ;;  %v4389_v19 = vunpack.c.l.bf16 %v4376_v63  ;;  %v4390_v50 = vunpack.c.h.bf16 %v4376_v63  ;;  %v4415_v26 = vpack.c.bf16 %v4404_v0, %v4403_v9 }
 0x977   : > { %7346 = vmatpush3.bf16.msra.mxu1 %v4376_v63  ;;  %v4405_v40 = vsub.f32 %v10682_v52, %v4389_v19  ;;  %v4406_v34 = vsub.f32 %v10679_v37, %v4390_v50 }
 0x979   : > { %7484 = vmatmul.mubr.bf16.gmra.mrb[84].mxu0 %v11162_v53  ;;  %v4416_v43 = vpack.c.bf16 %v4406_v34, %v4405_v40 }
 0x97a   : > { %7487 = vmatprep.mubr.bf16.mxu0 %v11163_v18 }
 0x97b   : > { %v4338_v31 = vpop.permute.xlu1 %4337 }
 0x97c   : > { %v4367_v32 = vmul.f32 %v4338_v31, %v11164_v21  ;;  %v8276_v31 = vld [vmem:[%s11140_s19] sm:$0xff]   ;;  %v7948_v21 = vld [vmem:[%s9719_s14] sm:$0xff]  }
 0x97f   : > { %v4343_v41 = vpop.permute.xlu0 %4342 }
 0x980   : > { %v4368_v48 = vmul.f32 %v4343_v41, %v11165_v5  ;;  %v4348_v11 = vpop.permute.xlu1 %4347 }
 0x981   : > { %7488 = vmatmul.mubr.bf16.gmra.mrb[88].mxu0 %v11166_v15  ;;  %v4369_v38 = vmul.f32 %v4348_v11, %v11168_v1 }
 0x982   : > { %7491 = vmatprep.mubr.bf16.mxu0 %v11167_v12  ;;  %v4377_v20 = vpack.c.bf16 %v4368_v48, %v4367_v32 }
 0x983   : > { %v4353_v13 = vpop.permute.xlu0 %4352 }
 0x984   : > { %v4370_v2 = vmul.f32 %v4353_v13, %v11169_v55  ;;  %7347 = vmatprep.subr.bf16.mxu1 %v4377_v20  ;;  %v4391_v46 = vunpack.c.l.bf16 %v4377_v20  ;;  %v4392_v14 = vunpack.c.h.bf16 %v4377_v20 }
 0x985   : > { %7348 = vmatpush3.bf16.msra.mxu1 %v4377_v20 }
 0x986   : > { %v4378_v17 = vpack.c.bf16 %v4370_v2, %v4369_v38  ;;  %v4407_v51 = vsub.f32 %v4367_v32, %v4391_v46  ;;  %v4408_v35 = vsub.f32 %v4368_v48, %v4392_v14  ;;  %v10745_v32 = vld [vmem:[%s11171_s5] ss:$0 sm:$0xff] }
 0x988   : > { %7349 = vmatprep.subr.bf16.mxu1 %v4378_v17  ;;  %v4393_v56 = vunpack.c.l.bf16 %v4378_v17  ;;  %v4394_v63 = vunpack.c.h.bf16 %v4378_v17  ;;  %v4417_v53 = vpack.c.bf16 %v4408_v35, %v4407_v51 }
 0x989   : > { %7492 = vmatmul.mubr.bf16.gmra.mrb[92].mxu0 %v11170_v7  ;;  %7350 = vmatpush3.bf16.msra.mxu1 %v4378_v17 }
 0x98a   : > { %7367 = vmatprep.subr.bf16.mxu1 %v4411_v22  ;;  %v4409_v52 = vsub.f32 %v4369_v38, %v4393_v56  ;;  %v4410_v37 = vsub.f32 %v4370_v2, %v4394_v63 }
 0x98c   : > { %7352 = vmatmul.mubr.bf16.vlgmr.msra.gmra.mrb[64].mxu1 %v10572_v47  ;;  %v4418_v18 = vpack.c.bf16 %v4410_v37, %v4409_v52 }
 0x98d   : > { %7368 = vmatpush3.bf16.msra.mxu1 %v4411_v22  ;;  %7355 = vmatprep.mubr.bf16.mxu1 %v10575_v44 }
 0x98e   : > { %7369 = vmatprep.subr.bf16.mxu1 %v4412_v57 }
 0x991   : > { %7370 = vmatpush3.bf16.msra.mxu1 %v4412_v57 }
 0x992   : > { %7371 = vmatprep.subr.bf16.mxu1 %v4413_v33 }
 0x994   : > { %7356 = vmatmul.mubr.bf16.gmra.mrb[68].mxu1 %v10580_v59 }
 0x995   : > { %7372 = vmatpush3.bf16.msra.mxu1 %v4413_v33  ;;  %7359 = vmatprep.mubr.bf16.mxu1 %v10583_v24 }
 0x996   : > { %7373 = vmatprep.subr.bf16.mxu1 %v4414_v16 }
 0x999   : > { %7374 = vmatpush3.bf16.msra.mxu1 %v4414_v16 }
 0x99a   : > { %7375 = vmatprep.subr.bf16.mxu1 %v4415_v26 }
 0x99c   : > { %7360 = vmatmul.mubr.bf16.gmra.mrb[72].mxu1 %v10588_v23 }
 0x99d   : > { %7376 = vmatpush3.bf16.msra.mxu1 %v4415_v26  ;;  %7363 = vmatprep.mubr.bf16.mxu1 %v10591_v3 }
 0x99e   : > { %7377 = vmatprep.subr.bf16.mxu1 %v4416_v43 }
 0x9a1   : > { %7378 = vmatpush3.bf16.msra.mxu1 %v4416_v43 }
 0x9a2   : > { %7379 = vmatprep.subr.bf16.mxu1 %v4417_v53 }
 0x9a4   : > { %7364 = vmatmul.mubr.bf16.gmra.mrb[76].mxu1 %v10599_v58 }
 0x9a5   : > { %7380 = vmatpush3.bf16.msra.mxu1 %v4417_v53  ;;  %7383 = vmatprep.mubr.bf16.mxu1 %v8276_v31 }
 0x9a6   : > { %7381 = vmatprep.subr.bf16.mxu1 %v4418_v18 }
 0x9a9   : > { %7382 = vmatpush3.bf16.msra.mxu1 %v4418_v18 }
 0x9aa   : > { %7495 = vmatprep.subr.bf16.mxu1 %v7948_v21 }
 0x9ac   : > { %7384 = vmatmul.mubr.bf16.vlgmr.msra.gmra.mrb[64].mxu1 %v10572_v47  ;;  %v7949_v47 = vld [vmem:[%s9719_s14 + $0x8] sm:$0xff]  }
 0x9ad   : > { %7387 = vmatprep.mubr.bf16.mxu1 %v10575_v44  ;;  %7496 = vmatpush3.bf16.msra.mxu1 %v7948_v21  ;;  %v7950_v44 = vld [vmem:[%s9719_s14 + $0x10] sm:$0xff]  }
 0x9ae   : > { %7497 = vmatprep.subr.bf16.mxu1 %v7949_v47 }
 0x9b1   : > { %7498 = vmatpush3.bf16.msra.mxu1 %v7949_v47 }
 0x9b2   : > { %7499 = vmatprep.subr.bf16.mxu1 %v7950_v44 }
 0x9b4   : > { %7388 = vmatmul.mubr.bf16.gmra.mrb[68].mxu1 %v10580_v59  ;;  %v7951_v59 = vld [vmem:[%s9719_s14 + $0x18] sm:$0xff]  }
 0x9b5   : > { %7391 = vmatprep.mubr.bf16.mxu1 %v10583_v24  ;;  %7500 = vmatpush3.bf16.msra.mxu1 %v7950_v44  ;;  %v7952_v24 = vld [vmem:[%s9719_s14 + $0x20] sm:$0xff]  }
 0x9b6   : > { %7501 = vmatprep.subr.bf16.mxu1 %v7951_v59 }
 0x9b9   : > { %7502 = vmatpush3.bf16.msra.mxu1 %v7951_v59 }
 0x9ba   : > { %7503 = vmatprep.subr.bf16.mxu1 %v7952_v24 }
 0x9bc   : > { %7392 = vmatmul.mubr.bf16.gmra.mrb[72].mxu1 %v10588_v23  ;;  %v7953_v23 = vld [vmem:[%s9719_s14 + $0x28] sm:$0xff]  }
 0x9bd   : > { %7395 = vmatprep.mubr.bf16.mxu1 %v10591_v3  ;;  %7504 = vmatpush3.bf16.msra.mxu1 %v7952_v24  ;;  %v7954_v3 = vld [vmem:[%s9719_s14 + $0x30] sm:$0xff]  }
 0x9be   : > { %7505 = vmatprep.subr.bf16.mxu1 %v7953_v23 }
 0x9c1   : > { %7506 = vmatpush3.bf16.msra.mxu1 %v7953_v23 }
 0x9c2   : > { %7507 = vmatprep.subr.bf16.mxu1 %v7954_v3 }
 0x9c4   : > { %7396 = vmatmul.mubr.bf16.gmra.mrb[76].mxu1 %v10599_v58  ;;  %v7955_v58 = vld [vmem:[%s9719_s14 + $0x38] sm:$0xff]   ;;  %s11172_s14 = scalar_lea.vmem [#allocation23], %s9675_s16  ;;  %s11173_s16 = sld [smem:[#allocation70_spill]] }
 0x9c5   : > { %7508 = vmatpush3.bf16.msra.mxu1 %v7954_v3 }
 0x9c6   : > { %7509 = vmatprep.subr.bf16.mxu1 %v7955_v58 }
 0x9c9   : > { %7510 = vmatpush3.bf16.msra.mxu1 %v7955_v58 }
 0x9ca   : > { %p6564_p7 = scmp.ne.s32.totalorder %s11173_s16, 2 }
 0x9cb   : > { %vm9011_vm3 = vmmov (!%p6564_p7), 0   ;;  %s11174_s0 = sld [smem:[#allocation49_spill]] (!%p6564_p7)  ;;  %s11175_s21 = sld [smem:[#allocation64_spill]] (!%p6564_p7) }
 0x9cc   : > { %s11176_s23 = sld [smem:[#allocation67_spill]] (!%p6564_p7) }
 0xa44   : > { %v7481_v41 = vpop.f32.mrb[80].mxu0 }
 0xa45   : > { %v10748_v49 = vadd.f32 %v7481_v41, %v10745_v32  ;;  %v5073_v5 = vpop.f32.mrb[81].mxu0 }
 0xa46   : > { %v10751_v48 = vadd.f32 %v10745_v32, %v5073_v5  ;;  %v7482_v11 = vpop.f32.mrb[82].mxu0 }
 0xa47   : > { %v5161_v39 = vsub.f32 0.0, %v10748_v49  ;;  %v10755_v15 = vadd.f32 %v7482_v11, %v10745_v32  ;;  %v5076_v12 = vpop.f32.mrb[83].mxu0 }
 0xa48   : > { %v5159_v20 = vsub.f32 0.0, %v10751_v48  ;;  %v10759_v1 = vadd.f32 %v10745_v32, %v5076_v12 }
 0xa49   : > { %v5179_v38 = vmul.f32 1.442695, %v5161_v39  ;;  %v5162_v29 = vsub.f32 0.0, %v10755_v15 }
 0xa4a   : > { %v5175_v13 = vmul.f32 1.442695, %v5159_v20  ;;  %v5160_v36 = vsub.f32 0.0, %v10759_v1 }
 0xa4b   : > { %8212 = vpow2.f32 %v5179_v38  ;;  %v5181_v55 = vmul.f32 1.442695, %v5162_v29 }
 0xa4c   : > { %8214 = vpow2.f32 %v5175_v13  ;;  %v5177_v2 = vmul.f32 1.442695, %v5160_v36  ;;  %v7485_v45 = vpop.f32.mrb[84].mxu0 }
 0xa4d   : > { %8216 = vpow2.f32 %v5181_v55  ;;  %v10764_v4 = vadd.f32 %v7485_v45, %v10745_v32  ;;  %v5089_v17 = vpop.f32.mrb[85].mxu0 }
 0xa4e   : > { %8218 = vpow2.f32 %v5177_v2  ;;  %v10767_v25 = vadd.f32 %v10745_v32, %v5089_v17  ;;  %v7486_v8 = vpop.f32.mrb[86].mxu0 }
 0xa4f   : > { %v5165_v62 = vsub.f32 0.0, %v10764_v4  ;;  %v10771_v22 = vadd.f32 %v7486_v8, %v10745_v32  ;;  %v5092_v10 = vpop.f32.mrb[87].mxu0 }
 0xa50   : > { %v5163_v7 = vsub.f32 0.0, %v10767_v25  ;;  %v10775_v27 = vadd.f32 %v10745_v32, %v5092_v10 }
 0xa51   : > { %v5187_v61 = vmul.f32 1.442695, %v5165_v62  ;;  %v5166_v60 = vsub.f32 0.0, %v10771_v22 }
 0xa52   : > { %v5183_v57 = vmul.f32 1.442695, %v5163_v7  ;;  %v5164_v54 = vsub.f32 0.0, %v10775_v27 }
 0xa53   : > { %8220 = vpow2.f32 %v5187_v61  ;;  %v5189_v33 = vmul.f32 1.442695, %v5166_v60 }
 0xa54   : > { %8222 = vpow2.f32 %v5183_v57  ;;  %v5185_v30 = vmul.f32 1.442695, %v5164_v54  ;;  %v7489_v42 = vpop.f32.mrb[88].mxu0 }
 0xa55   : > { %v8213_v6 = vpop.eup %8212  ;;  %8224 = vpow2.f32 %v5189_v33  ;;  %v10780_v28 = vadd.f32 %v7489_v42, %v10745_v32  ;;  %v5105_v19 = vpop.f32.mrb[89].mxu0 }
 0xa56   : > { %v8215_v50 = vpop.eup %8214  ;;  %v5209_v9 = vadd.f32 1.0, %v8213_v6  ;;  %8226 = vpow2.f32 %v5185_v30  ;;  %v10783_v16 = vadd.f32 %v10745_v32, %v5105_v19  ;;  %v7490_v0 = vpop.f32.mrb[90].mxu0 }
 0xa57   : > { %v8217_v40 = vpop.eup %8216  ;;  %v5207_v34 = vadd.f32 1.0, %v8215_v50  ;;  %v5169_v46 = vsub.f32 0.0, %v10780_v28  ;;  %v10787_v26 = vadd.f32 %v7490_v0, %v10745_v32  ;;  %v5108_v14 = vpop.f32.mrb[91].mxu0 }
 0xa58   : > { %v8219_v43 = vpop.eup %8218  ;;  %8228 = vrcp.f32 %v5209_v9  ;;  %v5210_v51 = vadd.f32 1.0, %v8217_v40  ;;  %v5167_v56 = vsub.f32 0.0, %v10783_v16  ;;  %v10791_v35 = vadd.f32 %v10745_v32, %v5108_v14 }
 0xa59   : > { %8230 = vrcp.f32 %v5207_v34  ;;  %v5208_v63 = vadd.f32 1.0, %v8219_v43  ;;  %v5195_v52 = vmul.f32 1.442695, %v5169_v46  ;;  %v5170_v53 = vsub.f32 0.0, %v10787_v26 }
 0xa5a   : > { %8232 = vrcp.f32 %v5210_v51  ;;  %v5191_v37 = vmul.f32 1.442695, %v5167_v56  ;;  %v5168_v18 = vsub.f32 0.0, %v10791_v35 }
 0xa5b   : > { %8234 = vrcp.f32 %v5208_v63  ;;  %v5197_v31 = vmul.f32 1.442695, %v5170_v53 }
 0xa5c   : > { %8236 = vpow2.f32 %v5195_v52  ;;  %v5193_v21 = vmul.f32 1.442695, %v5168_v18  ;;  %v7493_v47 = vpop.f32.mrb[92].mxu0 }
 0xa5d   : > { %v8221_v44 = vpop.eup %8220  ;;  %8238 = vpow2.f32 %v5191_v37  ;;  %v10796_v59 = vadd.f32 %v7493_v47, %v10745_v32  ;;  %v5121_v24 = vpop.f32.mrb[93].mxu0 }
 0xa5e   : > { %v8223_v23 = vpop.eup %8222  ;;  %v5213_v3 = vadd.f32 1.0, %v8221_v44  ;;  %8240 = vpow2.f32 %v5197_v31  ;;  %v10799_v58 = vadd.f32 %v10745_v32, %v5121_v24  ;;  %v7494_v41 = vpop.f32.mrb[94].mxu0 }
 0xa5f   : > { %v8225_v5 = vpop.eup %8224  ;;  %v5211_v11 = vadd.f32 1.0, %v8223_v23  ;;  %8242 = vpow2.f32 %v5193_v21  ;;  %v5173_v39 = vsub.f32 0.0, %v10796_v59  ;;  %v10803_v12 = vadd.f32 %v7494_v41, %v10745_v32  ;;  %v5124_v20 = vpop.f32.mrb[95].mxu0 }
 0xa60   : > { %v8227_v38 = vpop.eup %8226  ;;  %8244 = vrcp.f32 %v5213_v3  ;;  %v5214_v29 = vadd.f32 1.0, %v8225_v5  ;;  %v5171_v13 = vsub.f32 0.0, %v10799_v58  ;;  %v10807_v36 = vadd.f32 %v10745_v32, %v5124_v20 }
 0xa61   : > { %8246 = vrcp.f32 %v5211_v11  ;;  %v5212_v55 = vadd.f32 1.0, %v8227_v38  ;;  %v5203_v2 = vmul.f32 1.442695, %v5173_v39  ;;  %v5174_v45 = vsub.f32 0.0, %v10803_v12 }
 0xa62   : > { %v8229_v17 = vpop.eup %8228  ;;  %8248 = vrcp.f32 %v5214_v29  ;;  %v5199_v8 = vmul.f32 1.442695, %v5171_v13  ;;  %v5172_v62 = vsub.f32 0.0, %v10807_v36 }
 0xa63   : > { %v8231_v10 = vpop.eup %8230  ;;  %8250 = vrcp.f32 %v5212_v55  ;;  %v5205_v7 = vmul.f32 1.442695, %v5174_v45  ;;  %v5257_v32 = vmul.f32 %v8229_v17, %v10748_v49 }
 0xa64   : > { %v8233_v61 = vpop.eup %8232  ;;  %8252 = vpow2.f32 %v5203_v2  ;;  %v5201_v60 = vmul.f32 1.442695, %v5172_v62  ;;  %v5255_v30 = vmul.f32 %v8231_v10, %v10751_v48 }
 0xa65   : > { %v8235_v57 = vpop.eup %8234  ;;  %v5258_v54 = vmul.f32 %v8233_v61, %v10755_v15  ;;  %8254 = vpow2.f32 %v5199_v8  ;;  %v8277_v8 = vld [vmem:[#allocation3 + $0x10] sm:$0xff] }
 0xa66   : > { %v8237_v33 = vpop.eup %8236  ;;  %v5256_v42 = vmul.f32 %v8235_v57, %v10759_v1  ;;  %8256 = vpow2.f32 %v5205_v7  ;;  %v8278_v7 = vld [vmem:[#allocation3] sm:$0xff]  ;;  %v8279_v57 = vld [vmem:[#allocation3 + $0x18] sm:$0xff] }
 0xa67   : > { %v8239_v6 = vpop.eup %8238  ;;  %v5272_v19 = vpack.c.bf16 %v5258_v54, %v5257_v32  ;;  %v5217_v50 = vadd.f32 1.0, %v8237_v33  ;;  %8258 = vpow2.f32 %v5201_v60  ;;  %v8281_v54 = vld [vmem:[#allocation3 + $0x30] sm:$0xff] }
 0xa68   : > { %v8241_v9 = vpop.eup %8240  ;;  %v5215_v0 = vadd.f32 1.0, %v8239_v6  ;;  %v5271_v40 = vpack.c.bf16 %v5256_v42, %v5255_v30  ;;  %v8282_v42 = vld [vmem:[#allocation3 + $0x20] sm:$0xff] }
 0xa69   : > { %v8243_v34 = vpop.eup %8242  ;;  %8260 = vrcp.f32 %v5217_v50  ;;  %v5218_v46 = vadd.f32 1.0, %v8241_v9  ;;  %v8283_v50 = vld [vmem:[#allocation3 + $0x38] sm:$0xff] }
 0xa6a   : > { %v8245_v49 = vpop.eup %8244  ;;  %8262 = vrcp.f32 %v5215_v0  ;;  %v5216_v15 = vadd.f32 1.0, %v8243_v34  ;;  %7511 = vmatprep.mubr.bf16.mxu1 %v5271_v40  ;;  %v8284_v40 = vld [vmem:[#allocation3 + $0x28] sm:$0xff] }
 0xa6b   : > { %v8247_v14 = vpop.eup %8246  ;;  %8264 = vrcp.f32 %v5218_v46  ;;  %7512 = vmatmul.mubr.bf16.vlgmr.msra.gmra.mrb[80].mxu1 %v5272_v19  ;;  %v5261_v43 = vmul.f32 %v8245_v49, %v10764_v4  ;;  %v8285_v49 = vld [vmem:[#allocation3 + $0x50] sm:$0xff] }
 0xa6c   : > { %v8249_v48 = vpop.eup %8248  ;;  %8266 = vrcp.f32 %v5216_v15  ;;  %v5259_v63 = vmul.f32 %v8247_v14, %v10767_v25 }
 0xa6d   : > { %v8251_v1 = vpop.eup %8250  ;;  %v5262_v51 = vmul.f32 %v8249_v48, %v10771_v22  ;;  %v8286_v48 = vld [vmem:[#allocation3 + $0x40] sm:$0xff] }
 0xa6e   : > { %v8253_v56 = vpop.eup %8252  ;;  %v5260_v52 = vmul.f32 %v8251_v1, %v10775_v27 }
 0xa6f   : > { %v8255_v53 = vpop.eup %8254  ;;  %v5221_v37 = vadd.f32 1.0, %v8253_v56  ;;  %v5274_v18 = vpack.c.bf16 %v5262_v51, %v5261_v43  ;;  %v8287_v51 = vld [vmem:[#allocation3 + $0x58] sm:$0xff] }
 0xa70   : > { %v8257_v31 = vpop.eup %8256  ;;  %v5219_v21 = vadd.f32 1.0, %v8255_v53  ;;  %v5273_v47 = vpack.c.bf16 %v5260_v52, %v5259_v63  ;;  %v8288_v52 = vld [vmem:[#allocation3 + $0x48] sm:$0xff] }
 0xa71   : > { %v8259_v44 = vpop.eup %8258  ;;  %8268 = vrcp.f32 %v5221_v37  ;;  %v5222_v24 = vadd.f32 1.0, %v8257_v31 }
 0xa72   : > { %8270 = vrcp.f32 %v5219_v21  ;;  %v5220_v23 = vadd.f32 1.0, %v8259_v44  ;;  %7515 = vmatprep.mubr.bf16.mxu1 %v5273_v47  ;;  %v8290_v47 = vld [vmem:[#allocation3 + $0x60] sm:$0xff] }
 0xa73   : > { %v8261_v4 = vpop.eup %8260  ;;  %8272 = vrcp.f32 %v5222_v24  ;;  %7516 = vmatmul.mubr.bf16.gmra.mrb[84].mxu1 %v5274_v18  ;;  %v8289_v18 = vld [vmem:[#allocation3 + $0x70] sm:$0xff] }
 0xa74   : > { %v8263_v22 = vpop.eup %8262  ;;  %8274 = vrcp.f32 %v5220_v23  ;;  %v5265_v27 = vmul.f32 %v8261_v4, %v10780_v28  ;;  %v8291_v23 = vld [vmem:[#allocation3 + $0x78] sm:$0xff] }
 0xa75   : > { %v8265_v25 = vpop.eup %8264  ;;  %v5263_v5 = vmul.f32 %v8263_v22, %v10783_v16 }
 0xa76   : > { %v8267_v3 = vpop.eup %8266  ;;  %v5266_v41 = vmul.f32 %v8265_v25, %v10787_v26  ;;  %v8292_v25 = vld [vmem:[#allocation3 + $0x68] sm:$0xff] }
 0xa77   : > { %v5264_v11 = vmul.f32 %v8267_v3, %v10791_v35 }
 0xa78   : > { %v5276_v39 = vpack.c.bf16 %v5266_v41, %v5265_v27  ;;  %v10845_v41 = vld [vmem:[%s11172_s14] ss:$0 sm:$0xff] }
 0xa79   : > { %v5275_v20 = vpack.c.bf16 %v5264_v11, %v5263_v5  ;;  %v8293_v5 = vld [vmem:[#allocation2 + $0x10] sm:$0xff] }
 0xa7b   : > { %v8269_v38 = vpop.eup %8268  ;;  %7519 = vmatprep.mubr.bf16.mxu1 %v5275_v20  ;;  %v8294_v20 = vld [vmem:[#allocation2] sm:$0xff] }
 0xa7c   : > { %v8271_v29 = vpop.eup %8270  ;;  %7520 = vmatmul.mubr.bf16.gmra.mrb[88].mxu1 %v5276_v39  ;;  %v5269_v2 = vmul.f32 %v8269_v38, %v10796_v59 }
 0xa7d   : > { %v8273_v13 = vpop.eup %8272  ;;  %v5267_v28 = vmul.f32 %v8271_v29, %v10799_v58  ;;  %v8280_v58 = vld [vmem:[#allocation3 + $0x8] sm:$0xff] }
 0xa7e   : > { %v8275_v55 = vpop.eup %8274  ;;  %v5270_v45 = vmul.f32 %v8273_v13, %v10803_v12 }
 0xa7f   : > { %v5268_v26 = vmul.f32 %v8275_v55, %v10807_v36  ;;  %v7385_v17 = vpop.f32.mrb[64].mxu1  ;;  %v8295_v55 = vld [vmem:[#allocation2 + $0x18] sm:$0xff] }
 0xa80   : > { %v5278_v16 = vpack.c.bf16 %v5270_v45, %v5269_v2  ;;  %v7567_v35 = vadd.f32 %v8277_v8, %v7385_v17  ;;  %v4614_v62 = vpop.f32.mrb[65].mxu1 }
 0xa81   : > { %v5277_v10 = vpack.c.bf16 %v5268_v26, %v5267_v28  ;;  %v7568_v61 = vadd.f32 %v8278_v7, %v4614_v62  ;;  %v7386_v60 = vpop.f32.mrb[66].mxu1  ;;  %v8296_v26 = vld [vmem:[#allocation2 + $0x8] sm:$0xff]  ;;  %v8297_v62 = vld [vmem:[#allocation2 + $0x30] sm:$0xff] }
 0xa82   : > { %4695 = vst.msk [vmem:[#allocation3 + $0x10] sm:$0xff] %vm2772_vm2, %v7567_v35  ;;  %v7569_v32 = vadd.f32 %v8279_v57, %v7386_v60  ;;  %v4617_v59 = vpop.f32.mrb[67].mxu1 }
 0xa83   : > { %7523 = vmatprep.mubr.bf16.mxu1 %v5277_v10  ;;  %4693 = vst.msk [vmem:[#allocation3] sm:$0xff] %vm2772_vm2, %v7568_v61  ;;  %v7570_v12 = vadd.f32 %v8280_v58, %v4617_v59  ;;  %v8298_v61 = vld [vmem:[#allocation2 + $0x20] sm:$0xff]  ;;  %v8299_v59 = vld [vmem:[#allocation2 + $0x38] sm:$0xff] }
 0xa84   : > { %7524 = vmatmul.mubr.bf16.gmra.mrb[92].mxu1 %v5278_v16  ;;  %4696 = vst.msk [vmem:[#allocation3 + $0x18] sm:$0xff] %vm2772_vm2, %v7569_v32 }
 0xa85   : > { %4694 = vst.msk [vmem:[#allocation3 + $0x8] sm:$0xff] %vm2772_vm2, %v7570_v12 }
 0xa87   : > { %v7389_v36 = vpop.f32.mrb[68].mxu1 }
 0xa88   : > { %v7571_v33 = vadd.f32 %v8281_v54, %v7389_v36  ;;  %v4630_v30 = vpop.f32.mrb[69].mxu1  ;;  %v8300_v54 = vld [vmem:[#allocation2 + $0x28] sm:$0xff] }
 0xa89   : > { %v7572_v6 = vadd.f32 %v8282_v42, %v4630_v30  ;;  %v7390_v19 = vpop.f32.mrb[70].mxu1 }
 0xa8a   : > { %4699 = vst.msk [vmem:[#allocation3 + $0x30] sm:$0xff] %vm2772_vm2, %v7571_v33  ;;  %v7573_v9 = vadd.f32 %v8283_v50, %v7390_v19  ;;  %v4633_v0 = vpop.f32.mrb[71].mxu1  ;;  %v8301_v19 = vld [vmem:[#allocation2 + $0x50] sm:$0xff] }
 0xa8b   : > { %4697 = vst.msk [vmem:[#allocation3 + $0x20] sm:$0xff] %vm2772_vm2, %v7572_v6  ;;  %v7574_v34 = vadd.f32 %v8284_v40, %v4633_v0  ;;  %v8302_v0 = vld [vmem:[#allocation2 + $0x40] sm:$0xff] }
 0xa8c   : > { %4700 = vst.msk [vmem:[#allocation3 + $0x38] sm:$0xff] %vm2772_vm2, %v7573_v9 }
 0xa8d   : > { %4698 = vst.msk [vmem:[#allocation3 + $0x28] sm:$0xff] %vm2772_vm2, %v7574_v34 }
 0xa8f   : > { %v7393_v46 = vpop.f32.mrb[72].mxu1 }
 0xa90   : > { %v7575_v15 = vadd.f32 %v8285_v49, %v7393_v46  ;;  %v4646_v14 = vpop.f32.mrb[73].mxu1  ;;  %v8303_v49 = vld [vmem:[#allocation2 + $0x58] sm:$0xff] }
 0xa91   : > { %v7576_v1 = vadd.f32 %v8286_v48, %v4646_v14  ;;  %v7394_v43 = vpop.f32.mrb[74].mxu1 }
 0xa92   : > { %4703 = vst.msk [vmem:[#allocation3 + $0x50] sm:$0xff] %vm2772_vm2, %v7575_v15  ;;  %v7577_v56 = vadd.f32 %v8287_v51, %v7394_v43  ;;  %v4649_v63 = vpop.f32.mrb[75].mxu1 }
 0xa93   : > { %4701 = vst.msk [vmem:[#allocation3 + $0x40] sm:$0xff] %vm2772_vm2, %v7576_v1  ;;  %v7578_v53 = vadd.f32 %v8288_v52, %v4649_v63  ;;  %v8304_v1 = vld [vmem:[#allocation2 + $0x48] sm:$0xff]  ;;  %v8305_v52 = vld [vmem:[#allocation2 + $0x70] sm:$0xff] }
 0xa94   : > { %4704 = vst.msk [vmem:[#allocation3 + $0x58] sm:$0xff] %vm2772_vm2, %v7577_v56 }
 0xa95   : > { %4702 = vst.msk [vmem:[#allocation3 + $0x48] sm:$0xff] %vm2772_vm2, %v7578_v53 }
 0xa97   : > { %v7397_v37 = vpop.f32.mrb[76].mxu1 }
 0xa98   : > { %v7579_v31 = vadd.f32 %v8289_v18, %v7397_v37  ;;  %v4662_v21 = vpop.f32.mrb[77].mxu1  ;;  %v8306_v18 = vld [vmem:[#allocation2 + $0x60] sm:$0xff] }
 0xa99   : > { %v7580_v44 = vadd.f32 %v8290_v47, %v4662_v21  ;;  %v7398_v24 = vpop.f32.mrb[78].mxu1 }
 0xa9a   : > { %4707 = vst.msk [vmem:[#allocation3 + $0x70] sm:$0xff] %vm2772_vm2, %v7579_v31  ;;  %v7581_v4 = vadd.f32 %v8291_v23, %v7398_v24  ;;  %v4665_v22 = vpop.f32.mrb[79].mxu1 }
 0xa9b   : > { %4705 = vst.msk [vmem:[#allocation3 + $0x60] sm:$0xff] %vm2772_vm2, %v7580_v44  ;;  %v7582_v3 = vadd.f32 %v8292_v25, %v4665_v22  ;;  %v8307_v44 = vld [vmem:[#allocation2 + $0x78] sm:$0xff]  ;;  %v8308_v22 = vld [vmem:[#allocation2 + $0x68] sm:$0xff] }
 0xa9c   : > { %4708 = vst.msk [vmem:[#allocation3 + $0x78] sm:$0xff] %vm2772_vm2, %v7581_v4 }
 0xa9d   : > { %4706 = vst.msk [vmem:[#allocation3 + $0x68] sm:$0xff] %vm2772_vm2, %v7582_v3 }
 0xb3e   : > { %v7513_v27 = vpop.f32.mrb[80].mxu1 }
 0xb3f   : > { %v5442_v11 = vadd.f32 %v8293_v5, %v7513_v27  ;;  %v5377_v39 = vpop.f32.mrb[81].mxu1 }
 0xb40   : > { %v5440_v38 = vadd.f32 %v8294_v20, %v5377_v39  ;;  %v7514_v29 = vpop.f32.mrb[82].mxu1  ;;  %v9010_v39 = vmov (!%p6564_p7), 0.0  }
 0xb41   : > { %v10848_v13 = vadd.f32 %v10845_v41, %v5442_v11  ;;  %v5443_v2 = vadd.f32 %v8295_v55, %v7514_v29  ;;  %v5380_v45 = vpop.f32.mrb[83].mxu1  ;;  %v8309_v11 = vld [vmem:[#allocation24] sm:$0xff] (!%p6564_p7)   ;;  %7527 = vmatprep.subr.bf16.mxu0 (!%p6564_p7), %v9010_v39  ;;  %7547 = vmatprep.subr.bf16.mxu1 (!%p6564_p7), %v9010_v39  ;;  %v8311_v29 = vld [vmem:[#allocation24 + $0x10] sm:$0xff] (!%p6564_p7)   ;;  %v8312_v55 = vld [vmem:[#allocation24 + $0x18] sm:$0xff] (!%p6564_p7)  }
 0xb42   : > { %v10851_v28 = vadd.f32 %v10845_v41, %v5440_v38  ;;  %v5441_v17 = vadd.f32 %v8296_v26, %v5380_v45  ;;  %7543 = vmatprep.mubr.msk.bf16.mxu0 (!%p6564_p7), %vm9011_vm3, %v9010_v39  ;;  %7548 = vmatpush3.bf16.msra.mxu1 (!%p6564_p7), %v8309_v11  ;;  %v8313_v45 = vld [vmem:[#allocation24 + $0x20] sm:$0xff] (!%p6564_p7)   ;;  %v8314_v26 = vld [vmem:[#allocation24 + $0x28] sm:$0xff] (!%p6564_p7)  }
 0xb43   : > { %5481 = vst [vmem:[#allocation2 + $0x10] sm:$0xff] %v10848_v13  ;;  %v10855_v16 = vadd.f32 %v10845_v41, %v5443_v2  ;;  %7563 = vmatprep.mubr.msk.bf16.mxu1 (!%p6564_p7), %vm9011_vm3, %v9010_v39  ;;  %7549 = vmatprep.subr.bf16.mxu1 (!%p6564_p7), %v9010_v39 }
 0xb44   : > { %5479 = vst [vmem:[#allocation2] sm:$0xff] %v10851_v28  ;;  %v10859_v8 = vadd.f32 %v10845_v41, %v5441_v17 }
 0xb45   : > { %5482 = vst [vmem:[#allocation2 + $0x18] sm:$0xff] %v10855_v16  ;;  %v5501_v20 = vpack.c.bf16 (!%p6564_p7), %v10855_v16, %v10848_v13  ;;  %v8315_v16 = vld [vmem:[#allocation24 + $0x30] sm:$0xff] (!%p6564_p7)  }
 0xb46   : > { %5480 = vst [vmem:[#allocation2 + $0x8] sm:$0xff] %v10859_v8  ;;  %v7517_v35 = vpop.f32.mrb[84].mxu1  ;;  %v5500_v5 = vpack.c.bf16 (!%p6564_p7), %v10859_v8, %v10851_v28 }
 0xb47   : > { %v5446_v10 = vadd.f32 %v8297_v62, %v7517_v35  ;;  %v5393_v7 = vpop.f32.mrb[85].mxu1  ;;  %v5499_v35 = vld [vmem:[%s11174_s0] sm:$0xf] (!%p6564_p7)  ;;  %v8316_v62 = vld [vmem:[#allocation24 + $0x38] sm:$0xff] (!%p6564_p7)  }
 0xb48   : > { %v5444_v60 = vadd.f32 %v8298_v61, %v5393_v7  ;;  %v7518_v57 = vpop.f32.mrb[86].mxu1  ;;  %7528 = vmatpush3.bf16.msra.mxu0 (!%p6564_p7), %v5500_v5  ;;  %v8319_v7 = vld [vmem:[%s11175_s21 + $0x4] ss:$8 sps:$4 sm:$0xff] (!%p6564_p7)   ;;  %v8322_v61 = vld [vmem:[%s11175_s21 + $0x14] ss:$8 sps:$4 sm:$0xff] (!%p6564_p7)  }
 0xb49   : > { %v10864_v32 = vadd.f32 %v10845_v41, %v5446_v10  ;;  %v5447_v58 = vadd.f32 %v8299_v59, %v7518_v57  ;;  %v5396_v12 = vpop.f32.mrb[87].mxu1  ;;  %7529 = vmatprep.subr.bf16.mxu0 (!%p6564_p7), %v9010_v39  ;;  %v8317_v10 = vld [vmem:[%s11175_s21] ss:$8 sps:$4 sm:$0xff] (!%p6564_p7)   ;;  %v8325_v57 = vld [vmem:[%s11175_s21 + $0x24] ss:$8 sps:$4 sm:$0xff] (!%p6564_p7)  }
 0xb4a   : > { %v10867_v36 = vadd.f32 %v10845_v41, %v5444_v60  ;;  %v5445_v33 = vadd.f32 %v8300_v54, %v5396_v12  ;;  %v8320_v60 = vld [vmem:[%s11175_s21 + $0x10] ss:$8 sps:$4 sm:$0xff] (!%p6564_p7)   ;;  %v8328_v59 = vld [vmem:[%s11175_s21 + $0x34] ss:$8 sps:$4 sm:$0xff] (!%p6564_p7)   ;;  %v8331_v12 = vld [vmem:[%s11175_s21 + $0x44] ss:$8 sps:$4 sm:$0xff] (!%p6564_p7)  }
 0xb4b   : > { %5485 = vst [vmem:[#allocation2 + $0x30] sm:$0xff] %v10864_v32  ;;  %v10871_v30 = vadd.f32 %v10845_v41, %v5447_v58  ;;  %v8326_v58 = vld [vmem:[%s11175_s21 + $0x30] ss:$8 sps:$4 sm:$0xff] (!%p6564_p7)   ;;  %v8334_v54 = vld [vmem:[%s11175_s21 + $0x54] ss:$8 sps:$4 sm:$0xff] (!%p6564_p7)  }
 0xb4c   : > { %5483 = vst [vmem:[#allocation2 + $0x20] sm:$0xff] %v10867_v36  ;;  %v10875_v42 = vadd.f32 %v10845_v41, %v5445_v33  ;;  %7530 = vmatpush3.bf16.msra.mxu0 (!%p6564_p7), %v5501_v20  ;;  %v8332_v33 = vld [vmem:[%s11175_s21 + $0x50] ss:$8 sps:$4 sm:$0xff] (!%p6564_p7)  }
 0xb4d   : > { %5486 = vst [vmem:[#allocation2 + $0x38] sm:$0xff] %v10871_v30  ;;  %7531 = vmatprep.subr.bf16.mxu0 (!%p6564_p7), %v9010_v39  ;;  %v5503_v13 = vpack.c.bf16 (!%p6564_p7), %v10871_v30, %v10864_v32  ;;  %v8323_v32 = vld [vmem:[%s11175_s21 + $0x20] ss:$8 sps:$4 sm:$0xff] (!%p6564_p7)   ;;  %v8337_v30 = vld [vmem:[%s11175_s21 + $0x64] ss:$8 sps:$4 sm:$0xff] (!%p6564_p7)  }
 0xb4e   : > { %5484 = vst [vmem:[#allocation2 + $0x28] sm:$0xff] %v10875_v42  ;;  %v5502_v38 = vpack.c.bf16 (!%p6564_p7), %v10875_v42, %v10867_v36  ;;  %v8329_v36 = vld [vmem:[%s11175_s21 + $0x40] ss:$8 sps:$4 sm:$0xff] (!%p6564_p7)  }
 0xb4f   : > { %v7521_v6 = vpop.f32.mrb[88].mxu1  ;;  %v8335_v42 = vld [vmem:[%s11175_s21 + $0x60] ss:$8 sps:$4 sm:$0xff] (!%p6564_p7)  }
 0xb50   : > { %v5450_v50 = vadd.f32 %v8301_v19, %v7521_v6  ;;  %v5409_v9 = vpop.f32.mrb[89].mxu1  ;;  %7532 = vmatpush3.bf16.msra.mxu0 (!%p6564_p7), %v5502_v38 }
 0xb51   : > { %v5448_v40 = vadd.f32 %v8302_v0, %v5409_v9  ;;  %v7522_v34 = vpop.f32.mrb[90].mxu1  ;;  %7533 = vmatprep.subr.bf16.mxu0 (!%p6564_p7), %v9010_v39 }
 0xb52   : > { %v10880_v46 = vadd.f32 %v10845_v41, %v5450_v50  ;;  %v5451_v15 = vadd.f32 %v8303_v49, %v7522_v34  ;;  %v5412_v14 = vpop.f32.mrb[91].mxu1  ;;  %v8338_v34 = vld [vmem:[%s11175_s21 + $0x70] ss:$8 sps:$4 sm:$0xff] (!%p6564_p7)  }
 0xb53   : > { %v10883_v48 = vadd.f32 %v10845_v41, %v5448_v40  ;;  %v5449_v43 = vadd.f32 %v8304_v1, %v5412_v14  ;;  %v8340_v40 = vld [vmem:[%s11175_s21 + $0x74] ss:$8 sps:$4 sm:$0xff] (!%p6564_p7)   ;;  %v8343_v14 = vld [vmem:[#allocation29 + $0x48] sm:$0xff] (!%p6564_p7)   ;;  %v8345_v1 = vld [vmem:[#allocation29 + $0x50] sm:$0xff] (!%p6564_p7)  }
 0xb54   : > { %5489 = vst [vmem:[#allocation2 + $0x50] sm:$0xff] %v10880_v46  ;;  %v10887_v51 = vadd.f32 %v10845_v41, %v5451_v15  ;;  %7534 = vmatpush3.bf16.msra.mxu0 (!%p6564_p7), %v5503_v13  ;;  %v8341_v49 = vld [vmem:[#allocation29 + $0x40] sm:$0xff] (!%p6564_p7)  }
 0xb55   : > { %5487 = vst [vmem:[#allocation2 + $0x40] sm:$0xff] %v10883_v48  ;;  %v5472_v56 = vadd.f32 %v10845_v41, %v5449_v43  ;;  %7535 = vmatprep.subr.bf16.mxu0 (!%p6564_p7), %v9010_v39  ;;  %v8342_v15 = vld [vmem:[#allocation29] sm:$0xff] (!%p6564_p7)   ;;  %v8346_v43 = vld [vmem:[#allocation29 + $0x10] sm:$0xff] (!%p6564_p7)  }
 0xb56   : > { %5490 = vst [vmem:[#allocation2 + $0x58] sm:$0xff] %v10887_v51  ;;  %v5505_v28 = vpack.c.bf16 (!%p6564_p7), %v10887_v51, %v10880_v46  ;;  %v9012_v46 = vmov (!%p6564_p7), 0   ;;  %v8347_v51 = vld [vmem:[#allocation29 + $0x58] sm:$0xff] (!%p6564_p7)  }
 0xb57   : > { %5488 = vst [vmem:[#allocation2 + $0x48] sm:$0xff] %v5472_v56  ;;  %v7525_v63 = vpop.f32.mrb[92].mxu1  ;;  %v5504_v2 = vpack.c.bf16 (!%p6564_p7), %v5472_v56, %v10883_v48  ;;  %v8344_v48 = vld [vmem:[#allocation29 + $0x8] sm:$0xff] (!%p6564_p7)   ;;  %v8348_v56 = vld [vmem:[#allocation29 + $0x18] sm:$0xff] (!%p6564_p7)  }
 0xb58   : > { %v5454_v53 = vadd.f32 %v8305_v52, %v7525_v63  ;;  %v5425_v37 = vpop.f32.mrb[93].mxu1  ;;  %v8349_v63 = vld [vmem:[#allocation29 + $0x60] sm:$0xff] (!%p6564_p7)  }
 0xb59   : > { %v5452_v31 = vadd.f32 %v8306_v18, %v5425_v37  ;;  %v7526_v21 = vpop.f32.mrb[94].mxu1  ;;  %5498 = sbr.rel (%p6564_p7) target bundleno = 3788 (0xecc), region = 228  ;;  %7536 = vmatpush3.bf16.msra.mxu0 (!%p6564_p7), %v5504_v2  ;;  %v8350_v52 = vld [vmem:[#allocation29 + $0x20] sm:$0xff] (!%p6564_p7)   ;;  %v8352_v37 = vld [vmem:[#allocation29 + $0x28] sm:$0xff] (!%p6564_p7)   ;;  %v6565_v18 = vld [vmem:[#allocation26] ss:$0 sm:$0xff] (!%p6564_p7) }
 0xb5a   : > { %v10893_v47 = vadd.f32 %v10845_v41, %v5454_v53  ;;  %v5455_v24 = vadd.f32 %v8307_v44, %v7526_v21  ;;  %v5428_v23 = vpop.f32.mrb[95].mxu1  ;;  %7537 = vmatprep.subr.bf16.mxu0 (!%p6564_p7), %v9010_v39  ;;  %v8351_v53 = vld [vmem:[#allocation29 + $0x68] sm:$0xff] (!%p6564_p7)  }
 0xb5b   : > { %v5475_v4 = vadd.f32 %v10845_v41, %v5452_v31  ;;  %v5453_v25 = vadd.f32 %v8308_v22, %v5428_v23  ;;  %v8354_v22 = vld [vmem:[#allocation29 + $0x30] sm:$0xff] (!%p6564_p7)  }
 0xb5c   : > { %5493 = vst [vmem:[#allocation2 + $0x70] sm:$0xff] %v10893_v47  ;;  %v5478_v3 = vadd.f32 %v10845_v41, %v5455_v24 }
 0xb5d   : > { %5491 = vst [vmem:[#allocation2 + $0x60] sm:$0xff] %v5475_v4  ;;  %v5476_v27 = vadd.f32 %v10845_v41, %v5453_v25  ;;  %v8310_v41 = vld [vmem:[#allocation24 + $0x8] sm:$0xff] (!%p6564_p7)   ;;  %7538 = vmatpush3.bf16.msra.mxu0 (!%p6564_p7), %v5505_v28  ;;  %v8355_v25 = vld [vmem:[#allocation29 + $0x78] sm:$0xff] (!%p6564_p7)  }
 0xb5e   : > { %5494 = vst [vmem:[#allocation2 + $0x78] sm:$0xff] %v5478_v3  ;;  %7550 = vmatpush3.bf16.msra.mxu1 (!%p6564_p7), %v8310_v41  ;;  %7539 = vmatprep.subr.bf16.mxu0 (!%p6564_p7), %v9010_v39  ;;  %v5507_v8 = vpack.c.bf16 (!%p6564_p7), %v5478_v3, %v10893_v47  ;;  %v8356_v3 = vld [vmem:[#allocation29 + $0x38] sm:$0xff] (!%p6564_p7)  }
 0xb5f   : > { %5492 = vst [vmem:[#allocation2 + $0x68] sm:$0xff] %v5476_v27  ;;  %7551 = vmatprep.subr.bf16.mxu1 (!%p6564_p7), %v9010_v39  ;;  %v5506_v17 = vpack.c.bf16 (!%p6564_p7), %v5476_v27, %v5475_v4  ;;  %v8353_v4 = vld [vmem:[#allocation29 + $0x70] sm:$0xff] (!%p6564_p7)   ;;  %v5679_v27 = vlaneseq (!%p6564_p7) }
 0xb61   : > { %7540 = vmatpush3.bf16.msra.mxu0 %v5506_v17  ;;  %v5680_v5 = vshrl.u32 %v5679_v27, 7 }
 0xb62   : > { %7552 = vmatpush3.bf16.msra.mxu1 %v8311_v29  ;;  %7541 = vmatprep.subr.bf16.mxu0 %v9010_v39 }
 0xb63   : > { %7553 = vmatprep.subr.bf16.mxu1 %v9010_v39  ;;  %v5681_v11 = vsub.s32 0, %v5680_v5  ;;  %v5685_v20 = vsub.s32 1, %v5680_v5 }
 0xb65   : > { %7542 = vmatpush3.bf16.msra.mxu0 %v5507_v8 }
 0xb66   : > { %7554 = vmatpush3.bf16.msra.mxu1 %v8312_v55  ;;  %5769 = vmatprep.subr.bf16.mxu0 %v8319_v7 }
 0xb67   : > { %7555 = vmatprep.subr.bf16.mxu1 %v9010_v39 }
 0xb68   : > { %7544 = vmatmul.mubr.bf16.vlgmr.msra.gmra.mrb[0].mxu0 %v5499_v35 }
 0xb69   : > { %5770 = vmatpush1.bf16.msra.mxu0 %v8317_v10  ;;  %5801 = vmatprep.mubr.bf16.mxu0 %v9012_v46 }
 0xb6a   : > { %7556 = vmatpush3.bf16.msra.mxu1 %v8313_v45  ;;  %5771 = vmatprep.subr.bf16.mxu0 %v8322_v61 }
 0xb6b   : > { %7557 = vmatprep.subr.bf16.mxu1 %v9010_v39 }
 0xb6d   : > { %5772 = vmatpush1.bf16.msra.mxu0 %v8320_v60 }
 0xb6e   : > { %7558 = vmatpush3.bf16.msra.mxu1 %v8314_v26  ;;  %5773 = vmatprep.subr.bf16.mxu0 %v8325_v57 }
 0xb6f   : > { %7559 = vmatprep.subr.bf16.mxu1 %v9010_v39 }
 0xb71   : > { %5774 = vmatpush1.bf16.msra.mxu0 %v8323_v32 }
 0xb72   : > { %7560 = vmatpush3.bf16.msra.mxu1 %v8315_v16  ;;  %5775 = vmatprep.subr.bf16.mxu0 %v8328_v59 }
 0xb73   : > { %7561 = vmatprep.subr.bf16.mxu1 %v9010_v39  ;;  %v5677_v39 = vld [vmem:[#allocation27] sm:$0x3] }
 0xb74   : > { %v5682_v41 = vrot.slane %v5677_v39, %v5681_v11  ;;  %v5686_v38 = vrot.slane %v5677_v39, %v5685_v20 }
 0xb75   : > { %5776 = vmatpush1.bf16.msra.mxu0 %v8326_v58 }
 0xb76   : > { %7562 = vmatpush3.bf16.msra.mxu1 %v8316_v62  ;;  %5777 = vmatprep.subr.bf16.mxu0 %v8331_v12  ;;  %v6590_v62 = vld [vmem:[#allocation30] ss:$0 sm:$0xff] }
 0xb77   : > { %6925 = vmatprep.subr.bf16.mxu1 %v8341_v49 }
 0xb79   : > { %5778 = vmatpush1.bf16.msra.mxu0 %v8329_v36 }
 0xb7a   : > { %5779 = vmatprep.subr.bf16.mxu0 %v8334_v54 }
 0xb7d   : > { %5780 = vmatpush1.bf16.msra.mxu0 %v8332_v33 }
 0xb7e   : > { %5781 = vmatprep.subr.bf16.mxu0 %v8337_v30 }
 0xb81   : > { %5782 = vmatpush1.bf16.msra.mxu0 %v8335_v42 }
 0xb82   : > { %5783 = vmatprep.subr.bf16.mxu0 %v8340_v40 }
 0xb85   : > { %5784 = vmatpush1.bf16.msra.mxu0 %v8338_v34 }
 0xc3b   : > { %v5542_v6 = vpop.f32.mrb[0].mxu0 }
 0xc3c   : > { %v5548_v19 = vpack.c.bf16 %v5542_v6, %v5542_v6  ;;  %v7545_v50 = vpop.f32.mrb[1].mxu0 }
 0xc3d   : > { %v5545_v9 = vpop.f32.mrb[2].mxu0 }
 0xc3e   : > { %v7546_v0 = vpop.f32.mrb[3].mxu0  ;;  %7564 = vmatmul.mubr.bf16.vlgmr.msra.gmra.mrb[0].mxu1 %v5548_v19 }
 0xc3f   : > { %6926 = vmatpush3.bf16.msra.mxu1 %v8342_v15 }
 0xc40   : > { %6927 = vmatprep.subr.bf16.mxu1 %v8343_v14 }
 0xc43   : > { %6928 = vmatpush3.bf16.msra.mxu1 %v8344_v48 }
 0xc44   : > { %6929 = vmatprep.subr.bf16.mxu1 %v8345_v1 }
 0xc47   : > { %6930 = vmatpush3.bf16.msra.mxu1 %v8346_v43 }
 0xc48   : > { %6931 = vmatprep.subr.bf16.mxu1 %v8347_v51 }
 0xc4b   : > { %6932 = vmatpush3.bf16.msra.mxu1 %v8348_v56 }
 0xc4c   : > { %6933 = vmatprep.subr.bf16.mxu1 %v8349_v63 }
 0xc4f   : > { %6934 = vmatpush3.bf16.msra.mxu1 %v8350_v52 }
 0xc50   : > { %6935 = vmatprep.subr.bf16.mxu1 %v8351_v53 }
 0xc53   : > { %6936 = vmatpush3.bf16.msra.mxu1 %v8352_v37 }
 0xc54   : > { %6937 = vmatprep.subr.bf16.mxu1 %v8353_v4 }
 0xc57   : > { %6938 = vmatpush3.bf16.msra.mxu1 %v8354_v22 }
 0xc58   : > { %6939 = vmatprep.subr.bf16.mxu1 %v8355_v25 }
 0xc5b   : > { %6940 = vmatpush3.bf16.msra.mxu1 %v8356_v3 }
 0xd11   : > { %v5654_v31 = vpop.f32.mrb[0].mxu1 }
 0xd12   : > { %v5655_v21 = vadd.f32 %v6565_v18, %v5654_v31  ;;  %v7565_v47 = vpop.f32.mrb[1].mxu1 }
 0xd13   : > { %v5657_v44 = vpop.f32.mrb[2].mxu1 }
 0xd14   : > { %v5660_v24 = vpack.c.bf16 %v5655_v21, %v5655_v21  ;;  %v7566_v23 = vpop.f32.mrb[3].mxu1 }
 0xd16   : > { %5802 = vmatmul.mubr.bf16.vlgmr.msra.gmra.mrb[4].mxu0 %v5660_v24 }
 0xde9   : > { %v5803_v29 = vpop.f32.mrb[4].mxu0 }
 0xdea   : > { %v5804_v13 = vadd.f32 %v5803_v29, %v5682_v41  ;;  %v5805_v55 = vpop.f32.mrb[5].mxu0 }
 0xdeb   : > { %v5806_v2 = vadd.f32 %v5805_v55, %v5686_v38  ;;  %v5807_v45 = vpop.f32.mrb[6].mxu0 }
 0xdec   : > { %v5810_v28 = vmax.f32 %v5804_v13, 0.0  ;;  %v5808_v26 = vpop.f32.mrb[7].mxu0 }
 0xded   : > { %v5811_v17 = vmax.f32 %v5806_v2, 0.0 }
 0xdee   : > { %v5812_v8 = vpack.c.bf16 %v5810_v28, %v5810_v28 }
 0xdef   : > { %v5813_v16 = vpack.c.bf16 %v5811_v17, %v5811_v17 }
 0xdf1   : > { %5981 = vmatprep.mubr.bf16.mxu1 %v5813_v16 }
 0xdf2   : > { %5982 = vmatmul.mubr.bf16.vlgmr.msra.gmra.mrb[4].mxu1 %v5812_v8 }
 0xec5   : > { %v6941_v35 = vpop.f32.mrb[4].mxu1 }
 0xec6   : > { %v6942_v10 = vpop.f32.mrb[5].mxu1 }
 0xec7   : > { %v6943_v7 = vadd.f32 %v6942_v10, %v6941_v35  ;;  %v6944_v61 = vpop.f32.mrb[6].mxu1 }
 0xec8   : > { %v6945_v60 = vpop.f32.mrb[7].mxu1 }
 0xec9   : > { %v5984_v57 = vadd.f32 %v6943_v7, %v6590_v62 }
 0xecb   : > { %5989 = vst [vmem:[%s11176_s23] sm:$0xff] %v5984_v57 }
 0xecc PF: > { %s11177_s2 = sld [smem:[#allocation72_spill]]  ;;  %s11178_s28 = sld [smem:[#allocation68_spill]] }
 0xecd   : > { %s11179_s0 = sld [smem:[#allocation69_spill]]  ;;  %s11180_s1 = sld [smem:[#allocation73_spill]] }
 0xed2   : > { %p94_p10 = scmp.ge.s32.totalorder %s11177_s2, 5  }
 0xed4   :  { %96 = sbr.rel (!%p94_p10) target bundleno = 81 (0x51), region = 395 }
 0xedb   :  { %6001 = vsyncpa [#allocation5], 1 }
 0xedc   :  { %6003 = vsyncpa [#allocation5 + $0x1], 1 }
 0xedd   :  { %6004 = vsyncpa [#allocation7], 1 }
 0xede   :  { %6006 = vsyncpa [#allocation7 + $0x1], 1 }
 0xedf   :  { %6007 = vsyncpa [#allocation10], 1 }
 0xee0   :  { %6009 = vsyncpa [#allocation10 + $0x1], 1 }
 0xee1   :  { %6010 = vsyncpa [#allocation13], 1 }
 0xee2   :  { %6012 = vsyncpa [#allocation13 + $0x1], 1 }
 0xee3   :  { %6013 = vsyncpa [#allocation16], 1 }
 0xee4   :  { %6015 = vsyncpa [#allocation16 + $0x1], 1 }
 0xee5   :  { %6016 = vsyncpa [#allocation19], 1 }
 0xee6   :  { %6018 = vsyncpa [#allocation19 + $0x1], 1 }
 0xee7   :  { %6019 = vsyncpa [#allocation22], 1 }
 0xee8   :  { %6021 = vsyncpa [#allocation22 + $0x1], 1 }
 0xee9   :  { %6022 = vsyncpa [#allocation25], 1 }
 0xeea   :  { %6023 = vsyncpa [#allocation28], 1 }
 0xeeb   :  { %6024 = vsyncpa [#allocation31], 1 }

</bundles_post_ra>
